<compile_context>
chip_gen: v7x
topology: tpu7x:2x2x1
jax: 0.10.0
libtpu: 0.0.40
codegen_flags: <defaults>
</compile_context>

<pallas_src>
import jax
import jax.numpy as jnp
from jax import lax
from jax.experimental import pallas as pl
from jax.experimental.pallas import tpu as pltpu

KH = KW = 7
PAD = 3
LANES = 128
SUBLANES = 8


def _round_up(x, m):
    return ((x + m - 1) // m) * m


def _choose_tiling(B, C, Cout, H, W, scratch_budget=12 * 1024 * 1024):
    """Pick (batch-pack factor bp, H tile size, padded row pitch)."""
    # Batch packing: bp batch elements share the 8 f32 sublanes (bp*C <= 8),
    # bp must divide B.
    bp = 1
    for d in range(min(B, max(1, SUBLANES // C)), 0, -1):
        if B % d == 0:
            bp = d
            break

    pitch = _round_up(W + KW - 1, SUBLANES)

    def vmem_bytes(th):
        qw = (th - 1) * pitch + W
        smax = (KH - 1) * pitch + (KW - 1)
        win = _round_up(max(qw + smax, (th + KH - 1) * pitch), LANES)
        xpad = bp * C * win                  # padded-window scratch
        av = bp * C * th * W                 # compacted depthwise result
        xblk = 2 * bp * C * H * W            # double-buffered input block
        oblk = 2 * bp * Cout * th * W        # double-buffered output block
        return 4 * (xpad + av + xblk + oblk)

    aligned = [th for th in range(H, 0, -1)
               if H % th == 0 and (th == H or (th * W) % LANES == 0)]
    anydiv = [th for th in range(H, 0, -1) if H % th == 0]
    for cands in (aligned, anydiv):          # prefer lane-dense output tiles
        for th in cands:
            if vmem_bytes(th) <= scratch_budget:
                return bp, th, pitch
    return bp, 1, pitch


def _make_kernel(bp, C, Cout, H, W, tile_h, ht, pitch, win, qw):
    tile_hw = tile_h * W
    nwin = tile_h + KH - 1                   # padded window rows per tile

    def kernel(x_ref, dw_ref, pw_ref, bf_ref, o_ref, xpad_ref, av_ref):
        # x_ref   : (bp, C, H, W)        bp batch elements (NCHW)
        # dw_ref  : (bp*C, 49)           depthwise weights (tiled over bp)
        # pw_ref  : (Cout, C)            pointwise weights
        # bf_ref  : (Cout, 1)            fused bias = pw @ dw_b + pw_b
        # o_ref   : (bp, Cout, tile_hw)  lane-dense NCHW-flat output tile
        # xpad_ref: (bp*C, win)          zero-padded, row-pitched flat window
        # av_ref  : (bp*C, tile_hw)      depthwise result, valid columns only

        # ---- in-kernel zero padding: build THIS tile's window only ----
        xpad_ref[...] = jnp.zeros_like(xpad_ref)
        if ht == 1:
            # Fully static row indices (the common small-image case).
            for hr in range(nwin):
                h = hr - PAD
                if 0 <= h < H:
                    off = hr * pitch + PAD
                    for bi in range(bp):
                        xpad_ref[bi * C:(bi + 1) * C, off:off + W] = \
                            x_ref[bi, :, h, :]
        else:
            t = pl.program_id(1)
            for hr in range(nwin):
                h = t * tile_h + (hr - PAD)
                off = hr * pitch + PAD

                @pl.when(jnp.logical_and(h >= 0, h < H))
                def _copy(h=h, off=off):
                    for bi in range(bp):
                        xpad_ref[bi * C:(bi + 1) * C, off:off + W] = \
                            x_ref[bi, :, h, :]

        xwin = xpad_ref[...]                 # (bp*C, win)
        dw = dw_ref[...]                     # (bp*C, 49), hoisted

        # ---- depthwise 7x7: 49 shifted FMAs over flattened spatial ----
        # Per-kernel-row partial sums keep the dependent add chain short.
        acc = None
        for kh in range(KH):
            base = kh * pitch
            part = xwin[:, base:base + qw] * dw[:, kh * KW:kh * KW + 1]
            for kw in range(1, KW):
                s = base + kw
                k = kh * KW + kw
                part = part + xwin[:, s:s + qw] * dw[:, k:k + 1]
            acc = part if acc is None else acc + part

        # ---- drop pitch-slack columns -> dense (bp*C, tile_h*W) ----
        for hr in range(tile_h):
            av_ref[:, hr * W:(hr + 1) * W] = acc[:, hr * pitch:hr * pitch + W]

        # ---- pointwise 1x1 on the MXU, bias fused ----
        av = av_ref[...]
        pw = pw_ref[...]
        bf = bf_ref[...]
        for bi in range(bp):
            y = jnp.dot(pw, av[bi * C:(bi + 1) * C, :],
                        preferred_element_type=jnp.float32)
            o_ref[bi] = (y + bf).astype(o_ref.dtype)

    return kernel


def depthwise_conv7(x_nchw, dw_w, dw_b, pw_w, pw_b):
    """x_nchw: (B, C, H, W). dw_w: (C,1,7,7), dw_b: (C,),
    pw_w: (Cout,C,1,1), pw_b: (Cout,). Returns (B, Cout, H, W)."""
    B, C, H, W = x_nchw.shape
    Cout = pw_w.shape[0]

    bp, tile_h, pitch = _choose_tiling(B, C, Cout, H, W)
    ht = H // tile_h
    tile_hw = tile_h * W
    qw = (tile_h - 1) * pitch + W                 # accumulator width per tile
    smax = (KH - 1) * pitch + (KW - 1)            # largest tap shift
    win = _round_up(max(qw + smax, (tile_h + KH - 1) * pitch), LANES)

    # Parameter-only preprocessing (tiny): flatten + tile the depthwise
    # weights, fold the depthwise bias through the pointwise conv:
    #   pw@(dw(x)+dw_b)+pw_b = pw@dw(x) + (pw@dw_b + pw_b)
    dw_flat = dw_w[:, 0, :, :].reshape(C, KH * KW).astype(jnp.float32)     # (C,49)
    dw_tiled = jnp.tile(dw_flat, (bp, 1))                                  # (bp*C,49)
    pw_2d = pw_w[:, :, 0, 0].astype(jnp.float32)                           # (Cout,C)
    b_fused = (pw_2d @ dw_b.astype(jnp.float32)
               + pw_b.astype(jnp.float32)).reshape(Cout, 1)                # (Cout,1)

    kernel = _make_kernel(bp, C, Cout, H, W, tile_h, ht, pitch, win, qw)

    # NOTE: the input block is the full (bp,C,H,W) image group — fine for the
    # small spatial sizes this module targets; extremely large images would
    # additionally need the input halo-tiled along H to bound VMEM.
    out_flat = pl.pallas_call(
        kernel,
        out_shape=jax.ShapeDtypeStruct((B, Cout, H * W), jnp.float32),
        grid_spec=pltpu.PrefetchScalarGridSpec(
            num_scalar_prefetch=0,
            grid=(B // bp, ht),
            in_specs=[
                pl.BlockSpec((bp, C, H, W), lambda b, t: (b, 0, 0, 0)),
                pl.BlockSpec((bp * C, KH * KW), lambda b, t: (0, 0)),
                pl.BlockSpec((Cout, C), lambda b, t: (0, 0)),
                pl.BlockSpec((Cout, 1), lambda b, t: (0, 0)),
            ],
            out_specs=pl.BlockSpec((bp, Cout, tile_hw), lambda b, t: (b, 0, t)),
            scratch_shapes=[
                pltpu.VMEM((bp * C, win), jnp.float32),
                pltpu.VMEM((bp * C, tile_hw), jnp.float32),
            ],
        ),
        compiler_params=pltpu.CompilerParams(
            dimension_semantics=("parallel", "parallel"),
            vmem_limit_bytes=64 * 1024 * 1024,
        ),
    )(x_nchw.astype(jnp.float32), dw_tiled, pw_2d, b_fused)

    return out_flat.reshape(B, Cout, H, W)        # free reshape (contiguous)


def _reference(x_nchw, dw_w, dw_b, pw_w, pw_b):
    C = x_nchw.shape[1]
    out = lax.conv_general_dilated(
        x_nchw, dw_w, window_strides=(1, 1), padding=((PAD, PAD), (PAD, PAD)),
        feature_group_count=C,
        dimension_numbers=("NCHW", "OIHW", "NCHW"))
    out = out + dw_b[None, :, None, None]
    out = lax.conv_general_dilated(
        out, pw_w, window_strides=(1, 1), padding=((0, 0), (0, 0)),
        dimension_numbers=("NCHW", "OIHW", "NCHW"))
    out = out + pw_b[None, :, None, None]
    return out


if __name__ == "__main__":
    B, in_ch, out_ch, H, W = 2, 4, 8, 16, 16

    key = jax.random.PRNGKey(0)
    k1, k2, k3, k4, k5 = jax.random.split(key, 5)

    x = jax.random.normal(k1, (B, in_ch, H, W), dtype=jnp.float32)

    # Deterministic parameter init matching nn.Conv2d parameter shapes.
    fan_dw = 1 * KH * KW
    dw_weight = jax.random.uniform(k2, (in_ch, 1, KH, KW), jnp.float32,
                                   minval=-1.0, maxval=1.0) / jnp.sqrt(fan_dw)
    dw_bias = jax.random.uniform(k3, (in_ch,), jnp.float32,
                                 minval=-1.0, maxval=1.0) / jnp.sqrt(fan_dw)
    fan_pw = in_ch * 1 * 1
    pw_weight = jax.random.uniform(k4, (out_ch, in_ch, 1, 1), jnp.float32,
                                   minval=-1.0, maxval=1.0) / jnp.sqrt(fan_pw)
    pw_bias = jax.random.uniform(k5, (out_ch,), jnp.float32,
                                 minval=-1.0, maxval=1.0) / jnp.sqrt(fan_pw)

    out = depthwise_conv7(x, dw_weight, dw_bias, pw_weight, pw_bias)
    out = jax.block_until_ready(out)

    ref = _reference(x, dw_weight, dw_bias, pw_weight, pw_bias)
    assert out.shape == (B, out_ch, H, W)
    assert jnp.allclose(out, ref, atol=1e-4, rtol=1e-4), "mismatch vs reference"

    print("KERNEL_OK")
</pallas_src>

<mosaic_0001>
module attributes {stable_mosaic.version = 11 : i64} {
  func.func @kernel(%arg0: i32, %arg1: i32, %arg2: memref<2x4x16x16xf32, #tpu.memory_space<vmem>>, %arg3: memref<8x49xf32, #tpu.memory_space<vmem>>, %arg4: memref<8x4xf32, #tpu.memory_space<vmem>>, %arg5: memref<8x1xf32, #tpu.memory_space<vmem>>, %arg6: memref<2x8x256xf32, #tpu.memory_space<vmem>>, %arg7: memref<8x640xf32, #tpu.memory_space<vmem>>, %arg8: memref<8x256xf32, #tpu.memory_space<vmem>>) attributes {dimension_semantics = [#tpu.dimension_semantics<parallel>, #tpu.dimension_semantics<parallel>], iteration_bounds = array<i64: 1, 1>, scalar_prefetch = 0 : i64, scratch_operands = 2 : i64, tpu.core_type = #tpu.core_type<tc>, window_params = [{transform_indices = @transform_0, window_bounds = array<i64: 2, 4, 16, 16>}, {pipeline_mode = #tpu.pipeline_mode<synchronous>, transform_indices = @transform_1, window_bounds = array<i64: 8, 49>}, {pipeline_mode = #tpu.pipeline_mode<synchronous>, transform_indices = @transform_2, window_bounds = array<i64: 8, 4>}, {pipeline_mode = #tpu.pipeline_mode<synchronous>, transform_indices = @transform_3, window_bounds = array<i64: 8, 1>}, {transform_indices = @transform_4, window_bounds = array<i64: 2, 8, 256>}]} {
    %cst = arith.constant 0.000000e+00 : f32
    %0 = vector.broadcast %cst : f32 to vector<8x640xf32>
    %c0 = arith.constant 0 : index
    %c0_0 = arith.constant 0 : index
    %1 = vector.load %arg7[%c0, %c0_0] : memref<8x640xf32, #tpu.memory_space<vmem>>, vector<8x640xf32>
    tpu.vector_store %arg7[%c0, %c0_0], %0 {strides = array<i32>} : memref<8x640xf32, #tpu.memory_space<vmem>>, vector<8x640xf32>,
    %c0_1 = arith.constant 0 : index
    %c0_2 = arith.constant 0 : index
    %c0_3 = arith.constant 0 : index
    %c0_4 = arith.constant 0 : index
    %2 = vector.load %arg2[%c0_1, %c0_2, %c0_3, %c0_4] : memref<2x4x16x16xf32, #tpu.memory_space<vmem>>, vector<1x4x1x16xf32>
    %3 = vector.shape_cast %2 : vector<1x4x1x16xf32> to vector<4x16xf32>
    %c0_5 = arith.constant 0 : index
    %c75 = arith.constant 75 : index
    %4 = vector.load %arg7[%c0_5, %c75] : memref<8x640xf32, #tpu.memory_space<vmem>>, vector<4x16xf32>
    tpu.vector_store %arg7[%c0_5, %c75], %3 {strides = array<i32>} : memref<8x640xf32, #tpu.memory_space<vmem>>, vector<4x16xf32>,
    %c1 = arith.constant 1 : index
    %c0_6 = arith.constant 0 : index
    %c0_7 = arith.constant 0 : index
    %c0_8 = arith.constant 0 : index
    %5 = vector.load %arg2[%c1, %c0_6, %c0_7, %c0_8] : memref<2x4x16x16xf32, #tpu.memory_space<vmem>>, vector<1x4x1x16xf32>
    %6 = vector.shape_cast %5 : vector<1x4x1x16xf32> to vector<4x16xf32>
    %c4 = arith.constant 4 : index
    %c75_9 = arith.constant 75 : index
    %7 = vector.load %arg7[%c4, %c75_9] : memref<8x640xf32, #tpu.memory_space<vmem>>, vector<4x16xf32>
    tpu.vector_store %arg7[%c4, %c75_9], %6 {strides = array<i32>} : memref<8x640xf32, #tpu.memory_space<vmem>>, vector<4x16xf32>,
    %c0_10 = arith.constant 0 : index
    %c0_11 = arith.constant 0 : index
    %c1_12 = arith.constant 1 : index
    %c0_13 = arith.constant 0 : index
    %8 = vector.load %arg2[%c0_10, %c0_11, %c1_12, %c0_13] : memref<2x4x16x16xf32, #tpu.memory_space<vmem>>, vector<1x4x1x16xf32>
    %9 = vector.shape_cast %8 : vector<1x4x1x16xf32> to vector<4x16xf32>
    %c0_14 = arith.constant 0 : index
    %c99 = arith.constant 99 : index
    %10 = vector.load %arg7[%c0_14, %c99] : memref<8x640xf32, #tpu.memory_space<vmem>>, vector<4x16xf32>
    tpu.vector_store %arg7[%c0_14, %c99], %9 {strides = array<i32>} : memref<8x640xf32, #tpu.memory_space<vmem>>, vector<4x16xf32>,
    %c1_15 = arith.constant 1 : index
    %c0_16 = arith.constant 0 : index
    %c1_17 = arith.constant 1 : index
    %c0_18 = arith.constant 0 : index
    %11 = vector.load %arg2[%c1_15, %c0_16, %c1_17, %c0_18] : memref<2x4x16x16xf32, #tpu.memory_space<vmem>>, vector<1x4x1x16xf32>
    %12 = vector.shape_cast %11 : vector<1x4x1x16xf32> to vector<4x16xf32>
    %c4_19 = arith.constant 4 : index
    %c99_20 = arith.constant 99 : index
    %13 = vector.load %arg7[%c4_19, %c99_20] : memref<8x640xf32, #tpu.memory_space<vmem>>, vector<4x16xf32>
    tpu.vector_store %arg7[%c4_19, %c99_20], %12 {strides = array<i32>} : memref<8x640xf32, #tpu.memory_space<vmem>>, vector<4x16xf32>,
    %c0_21 = arith.constant 0 : index
    %c0_22 = arith.constant 0 : index
    %c2 = arith.constant 2 : index
    %c0_23 = arith.constant 0 : index
    %14 = vector.load %arg2[%c0_21, %c0_22, %c2, %c0_23] : memref<2x4x16x16xf32, #tpu.memory_space<vmem>>, vector<1x4x1x16xf32>
    %15 = vector.shape_cast %14 : vector<1x4x1x16xf32> to vector<4x16xf32>
    %c0_24 = arith.constant 0 : index
    %c123 = arith.constant 123 : index
    %16 = vector.load %arg7[%c0_24, %c123] : memref<8x640xf32, #tpu.memory_space<vmem>>, vector<4x16xf32>
    tpu.vector_store %arg7[%c0_24, %c123], %15 {strides = array<i32>} : memref<8x640xf32, #tpu.memory_space<vmem>>, vector<4x16xf32>,
    %c1_25 = arith.constant 1 : index
    %c0_26 = arith.constant 0 : index
    %c2_27 = arith.constant 2 : index
    %c0_28 = arith.constant 0 : index
    %17 = vector.load %arg2[%c1_25, %c0_26, %c2_27, %c0_28] : memref<2x4x16x16xf32, #tpu.memory_space<vmem>>, vector<1x4x1x16xf32>
    %18 = vector.shape_cast %17 : vector<1x4x1x16xf32> to vector<4x16xf32>
    %c4_29 = arith.constant 4 : index
    %c123_30 = arith.constant 123 : index
    %19 = vector.load %arg7[%c4_29, %c123_30] : memref<8x640xf32, #tpu.memory_space<vmem>>, vector<4x16xf32>
    tpu.vector_store %arg7[%c4_29, %c123_30], %18 {strides = array<i32>} : memref<8x640xf32, #tpu.memory_space<vmem>>, vector<4x16xf32>,
    %c0_31 = arith.constant 0 : index
    %c0_32 = arith.constant 0 : index
    %c3 = arith.constant 3 : index
    %c0_33 = arith.constant 0 : index
    %20 = vector.load %arg2[%c0_31, %c0_32, %c3, %c0_33] : memref<2x4x16x16xf32, #tpu.memory_space<vmem>>, vector<1x4x1x16xf32>
    %21 = vector.shape_cast %20 : vector<1x4x1x16xf32> to vector<4x16xf32>
    %c0_34 = arith.constant 0 : index
    %c147 = arith.constant 147 : index
    %22 = vector.load %arg7[%c0_34, %c147] : memref<8x640xf32, #tpu.memory_space<vmem>>, vector<4x16xf32>
    tpu.vector_store %arg7[%c0_34, %c147], %21 {strides = array<i32>} : memref<8x640xf32, #tpu.memory_space<vmem>>, vector<4x16xf32>,
    %c1_35 = arith.constant 1 : index
    %c0_36 = arith.constant 0 : index
    %c3_37 = arith.constant 3 : index
    %c0_38 = arith.constant 0 : index
    %23 = vector.load %arg2[%c1_35, %c0_36, %c3_37, %c0_38] : memref<2x4x16x16xf32, #tpu.memory_space<vmem>>, vector<1x4x1x16xf32>
    %24 = vector.shape_cast %23 : vector<1x4x1x16xf32> to vector<4x16xf32>
    %c4_39 = arith.constant 4 : index
    %c147_40 = arith.constant 147 : index
    %25 = vector.load %arg7[%c4_39, %c147_40] : memref<8x640xf32, #tpu.memory_space<vmem>>, vector<4x16xf32>
    tpu.vector_store %arg7[%c4_39, %c147_40], %24 {strides = array<i32>} : memref<8x640xf32, #tpu.memory_space<vmem>>, vector<4x16xf32>,
    %c0_41 = arith.constant 0 : index
    %c0_42 = arith.constant 0 : index
    %c4_43 = arith.constant 4 : index
    %c0_44 = arith.constant 0 : index
    %26 = vector.load %arg2[%c0_41, %c0_42, %c4_43, %c0_44] : memref<2x4x16x16xf32, #tpu.memory_space<vmem>>, vector<1x4x1x16xf32>
    %27 = vector.shape_cast %26 : vector<1x4x1x16xf32> to vector<4x16xf32>
    %c0_45 = arith.constant 0 : index
    %c171 = arith.constant 171 : index
    %28 = vector.load %arg7[%c0_45, %c171] : memref<8x640xf32, #tpu.memory_space<vmem>>, vector<4x16xf32>
    tpu.vector_store %arg7[%c0_45, %c171], %27 {strides = array<i32>} : memref<8x640xf32, #tpu.memory_space<vmem>>, vector<4x16xf32>,
    %c1_46 = arith.constant 1 : index
    %c0_47 = arith.constant 0 : index
    %c4_48 = arith.constant 4 : index
    %c0_49 = arith.constant 0 : index
    %29 = vector.load %arg2[%c1_46, %c0_47, %c4_48, %c0_49] : memref<2x4x16x16xf32, #tpu.memory_space<vmem>>, vector<1x4x1x16xf32>
    %30 = vector.shape_cast %29 : vector<1x4x1x16xf32> to vector<4x16xf32>
    %c4_50 = arith.constant 4 : index
    %c171_51 = arith.constant 171 : index
    %31 = vector.load %arg7[%c4_50, %c171_51] : memref<8x640xf32, #tpu.memory_space<vmem>>, vector<4x16xf32>
    tpu.vector_store %arg7[%c4_50, %c171_51], %30 {strides = array<i32>} : memref<8x640xf32, #tpu.memory_space<vmem>>, vector<4x16xf32>,
    %c0_52 = arith.constant 0 : index
    %c0_53 = arith.constant 0 : index
    %c5 = arith.constant 5 : index
    %c0_54 = arith.constant 0 : index
    %32 = vector.load %arg2[%c0_52, %c0_53, %c5, %c0_54] : memref<2x4x16x16xf32, #tpu.memory_space<vmem>>, vector<1x4x1x16xf32>
    %33 = vector.shape_cast %32 : vector<1x4x1x16xf32> to vector<4x16xf32>
    %c0_55 = arith.constant 0 : index
    %c195 = arith.constant 195 : index
    %34 = vector.load %arg7[%c0_55, %c195] : memref<8x640xf32, #tpu.memory_space<vmem>>, vector<4x16xf32>
    tpu.vector_store %arg7[%c0_55, %c195], %33 {strides = array<i32>} : memref<8x640xf32, #tpu.memory_space<vmem>>, vector<4x16xf32>,
    %c1_56 = arith.constant 1 : index
    %c0_57 = arith.constant 0 : index
    %c5_58 = arith.constant 5 : index
    %c0_59 = arith.constant 0 : index
    %35 = vector.load %arg2[%c1_56, %c0_57, %c5_58, %c0_59] : memref<2x4x16x16xf32, #tpu.memory_space<vmem>>, vector<1x4x1x16xf32>
    %36 = vector.shape_cast %35 : vector<1x4x1x16xf32> to vector<4x16xf32>
    %c4_60 = arith.constant 4 : index
    %c195_61 = arith.constant 195 : index
    %37 = vector.load %arg7[%c4_60, %c195_61] : memref<8x640xf32, #tpu.memory_space<vmem>>, vector<4x16xf32>
    tpu.vector_store %arg7[%c4_60, %c195_61], %36 {strides = array<i32>} : memref<8x640xf32, #tpu.memory_space<vmem>>, vector<4x16xf32>,
    %c0_62 = arith.constant 0 : index
    %c0_63 = arith.constant 0 : index
    %c6 = arith.constant 6 : index
    %c0_64 = arith.constant 0 : index
    %38 = vector.load %arg2[%c0_62, %c0_63, %c6, %c0_64] : memref<2x4x16x16xf32, #tpu.memory_space<vmem>>, vector<1x4x1x16xf32>
    %39 = vector.shape_cast %38 : vector<1x4x1x16xf32> to vector<4x16xf32>
    %c0_65 = arith.constant 0 : index
    %c219 = arith.constant 219 : index
    %40 = vector.load %arg7[%c0_65, %c219] : memref<8x640xf32, #tpu.memory_space<vmem>>, vector<4x16xf32>
    tpu.vector_store %arg7[%c0_65, %c219], %39 {strides = array<i32>} : memref<8x640xf32, #tpu.memory_space<vmem>>, vector<4x16xf32>,
    %c1_66 = arith.constant 1 : index
    %c0_67 = arith.constant 0 : index
    %c6_68 = arith.constant 6 : index
    %c0_69 = arith.constant 0 : index
    %41 = vector.load %arg2[%c1_66, %c0_67, %c6_68, %c0_69] : memref<2x4x16x16xf32, #tpu.memory_space<vmem>>, vector<1x4x1x16xf32>
    %42 = vector.shape_cast %41 : vector<1x4x1x16xf32> to vector<4x16xf32>
    %c4_70 = arith.constant 4 : index
    %c219_71 = arith.constant 219 : index
    %43 = vector.load %arg7[%c4_70, %c219_71] : memref<8x640xf32, #tpu.memory_space<vmem>>, vector<4x16xf32>
    tpu.vector_store %arg7[%c4_70, %c219_71], %42 {strides = array<i32>} : memref<8x640xf32, #tpu.memory_space<vmem>>, vector<4x16xf32>,
    %c0_72 = arith.constant 0 : index
    %c0_73 = arith.constant 0 : index
    %c7 = arith.constant 7 : index
    %c0_74 = arith.constant 0 : index
    %44 = vector.load %arg2[%c0_72, %c0_73, %c7, %c0_74] : memref<2x4x16x16xf32, #tpu.memory_space<vmem>>, vector<1x4x1x16xf32>
    %45 = vector.shape_cast %44 : vector<1x4x1x16xf32> to vector<4x16xf32>
    %c0_75 = arith.constant 0 : index
    %c243 = arith.constant 243 : index
    %46 = vector.load %arg7[%c0_75, %c243] : memref<8x640xf32, #tpu.memory_space<vmem>>, vector<4x16xf32>
    tpu.vector_store %arg7[%c0_75, %c243], %45 {strides = array<i32>} : memref<8x640xf32, #tpu.memory_space<vmem>>, vector<4x16xf32>,
    %c1_76 = arith.constant 1 : index
    %c0_77 = arith.constant 0 : index
    %c7_78 = arith.constant 7 : index
    %c0_79 = arith.constant 0 : index
    %47 = vector.load %arg2[%c1_76, %c0_77, %c7_78, %c0_79] : memref<2x4x16x16xf32, #tpu.memory_space<vmem>>, vector<1x4x1x16xf32>
    %48 = vector.shape_cast %47 : vector<1x4x1x16xf32> to vector<4x16xf32>
    %c4_80 = arith.constant 4 : index
    %c243_81 = arith.constant 243 : index
    %49 = vector.load %arg7[%c4_80, %c243_81] : memref<8x640xf32, #tpu.memory_space<vmem>>, vector<4x16xf32>
    tpu.vector_store %arg7[%c4_80, %c243_81], %48 {strides = array<i32>} : memref<8x640xf32, #tpu.memory_space<vmem>>, vector<4x16xf32>,
    %c0_82 = arith.constant 0 : index
    %c0_83 = arith.constant 0 : index
    %c8 = arith.constant 8 : index
    %c0_84 = arith.constant 0 : index
    %50 = vector.load %arg2[%c0_82, %c0_83, %c8, %c0_84] : memref<2x4x16x16xf32, #tpu.memory_space<vmem>>, vector<1x4x1x16xf32>
    %51 = vector.shape_cast %50 : vector<1x4x1x16xf32> to vector<4x16xf32>
    %c0_85 = arith.constant 0 : index
    %c267 = arith.constant 267 : index
    %52 = vector.load %arg7[%c0_85, %c267] : memref<8x640xf32, #tpu.memory_space<vmem>>, vector<4x16xf32>
    tpu.vector_store %arg7[%c0_85, %c267], %51 {strides = array<i32>} : memref<8x640xf32, #tpu.memory_space<vmem>>, vector<4x16xf32>,
    %c1_86 = arith.constant 1 : index
    %c0_87 = arith.constant 0 : index
    %c8_88 = arith.constant 8 : index
    %c0_89 = arith.constant 0 : index
    %53 = vector.load %arg2[%c1_86, %c0_87, %c8_88, %c0_89] : memref<2x4x16x16xf32, #tpu.memory_space<vmem>>, vector<1x4x1x16xf32>
    %54 = vector.shape_cast %53 : vector<1x4x1x16xf32> to vector<4x16xf32>
    %c4_90 = arith.constant 4 : index
    %c267_91 = arith.constant 267 : index
    %55 = vector.load %arg7[%c4_90, %c267_91] : memref<8x640xf32, #tpu.memory_space<vmem>>, vector<4x16xf32>
    tpu.vector_store %arg7[%c4_90, %c267_91], %54 {strides = array<i32>} : memref<8x640xf32, #tpu.memory_space<vmem>>, vector<4x16xf32>,
    %c0_92 = arith.constant 0 : index
    %c0_93 = arith.constant 0 : index
    %c9 = arith.constant 9 : index
    %c0_94 = arith.constant 0 : index
    %56 = vector.load %arg2[%c0_92, %c0_93, %c9, %c0_94] : memref<2x4x16x16xf32, #tpu.memory_space<vmem>>, vector<1x4x1x16xf32>
    %57 = vector.shape_cast %56 : vector<1x4x1x16xf32> to vector<4x16xf32>
    %c0_95 = arith.constant 0 : index
    %c291 = arith.constant 291 : index
    %58 = vector.load %arg7[%c0_95, %c291] : memref<8x640xf32, #tpu.memory_space<vmem>>, vector<4x16xf32>
    tpu.vector_store %arg7[%c0_95, %c291], %57 {strides = array<i32>} : memref<8x640xf32, #tpu.memory_space<vmem>>, vector<4x16xf32>,
    %c1_96 = arith.constant 1 : index
    %c0_97 = arith.constant 0 : index
    %c9_98 = arith.constant 9 : index
    %c0_99 = arith.constant 0 : index
    %59 = vector.load %arg2[%c1_96, %c0_97, %c9_98, %c0_99] : memref<2x4x16x16xf32, #tpu.memory_space<vmem>>, vector<1x4x1x16xf32>
    %60 = vector.shape_cast %59 : vector<1x4x1x16xf32> to vector<4x16xf32>
    %c4_100 = arith.constant 4 : index
    %c291_101 = arith.constant 291 : index
    %61 = vector.load %arg7[%c4_100, %c291_101] : memref<8x640xf32, #tpu.memory_space<vmem>>, vector<4x16xf32>
    tpu.vector_store %arg7[%c4_100, %c291_101], %60 {strides = array<i32>} : memref<8x640xf32, #tpu.memory_space<vmem>>, vector<4x16xf32>,
    %c0_102 = arith.constant 0 : index
    %c0_103 = arith.constant 0 : index
    %c10 = arith.constant 10 : index
    %c0_104 = arith.constant 0 : index
    %62 = vector.load %arg2[%c0_102, %c0_103, %c10, %c0_104] : memref<2x4x16x16xf32, #tpu.memory_space<vmem>>, vector<1x4x1x16xf32>
    %63 = vector.shape_cast %62 : vector<1x4x1x16xf32> to vector<4x16xf32>
    %c0_105 = arith.constant 0 : index
    %c315 = arith.constant 315 : index
    %64 = vector.load %arg7[%c0_105, %c315] : memref<8x640xf32, #tpu.memory_space<vmem>>, vector<4x16xf32>
    tpu.vector_store %arg7[%c0_105, %c315], %63 {strides = array<i32>} : memref<8x640xf32, #tpu.memory_space<vmem>>, vector<4x16xf32>,
    %c1_106 = arith.constant 1 : index
    %c0_107 = arith.constant 0 : index
    %c10_108 = arith.constant 10 : index
    %c0_109 = arith.constant 0 : index
    %65 = vector.load %arg2[%c1_106, %c0_107, %c10_108, %c0_109] : memref<2x4x16x16xf32, #tpu.memory_space<vmem>>, vector<1x4x1x16xf32>
    %66 = vector.shape_cast %65 : vector<1x4x1x16xf32> to vector<4x16xf32>
    %c4_110 = arith.constant 4 : index
    %c315_111 = arith.constant 315 : index
    %67 = vector.load %arg7[%c4_110, %c315_111] : memref<8x640xf32, #tpu.memory_space<vmem>>, vector<4x16xf32>
    tpu.vector_store %arg7[%c4_110, %c315_111], %66 {strides = array<i32>} : memref<8x640xf32, #tpu.memory_space<vmem>>, vector<4x16xf32>,
    %c0_112 = arith.constant 0 : index
    %c0_113 = arith.constant 0 : index
    %c11 = arith.constant 11 : index
    %c0_114 = arith.constant 0 : index
    %68 = vector.load %arg2[%c0_112, %c0_113, %c11, %c0_114] : memref<2x4x16x16xf32, #tpu.memory_space<vmem>>, vector<1x4x1x16xf32>
    %69 = vector.shape_cast %68 : vector<1x4x1x16xf32> to vector<4x16xf32>
    %c0_115 = arith.constant 0 : index
    %c339 = arith.constant 339 : index
    %70 = vector.load %arg7[%c0_115, %c339] : memref<8x640xf32, #tpu.memory_space<vmem>>, vector<4x16xf32>
    tpu.vector_store %arg7[%c0_115, %c339], %69 {strides = array<i32>} : memref<8x640xf32, #tpu.memory_space<vmem>>, vector<4x16xf32>,
    %c1_116 = arith.constant 1 : index
    %c0_117 = arith.constant 0 : index
    %c11_118 = arith.constant 11 : index
    %c0_119 = arith.constant 0 : index
    %71 = vector.load %arg2[%c1_116, %c0_117, %c11_118, %c0_119] : memref<2x4x16x16xf32, #tpu.memory_space<vmem>>, vector<1x4x1x16xf32>
    %72 = vector.shape_cast %71 : vector<1x4x1x16xf32> to vector<4x16xf32>
    %c4_120 = arith.constant 4 : index
    %c339_121 = arith.constant 339 : index
    %73 = vector.load %arg7[%c4_120, %c339_121] : memref<8x640xf32, #tpu.memory_space<vmem>>, vector<4x16xf32>
    tpu.vector_store %arg7[%c4_120, %c339_121], %72 {strides = array<i32>} : memref<8x640xf32, #tpu.memory_space<vmem>>, vector<4x16xf32>,
    %c0_122 = arith.constant 0 : index
    %c0_123 = arith.constant 0 : index
    %c12 = arith.constant 12 : index
    %c0_124 = arith.constant 0 : index
    %74 = vector.load %arg2[%c0_122, %c0_123, %c12, %c0_124] : memref<2x4x16x16xf32, #tpu.memory_space<vmem>>, vector<1x4x1x16xf32>
    %75 = vector.shape_cast %74 : vector<1x4x1x16xf32> to vector<4x16xf32>
    %c0_125 = arith.constant 0 : index
    %c363 = arith.constant 363 : index
    %76 = vector.load %arg7[%c0_125, %c363] : memref<8x640xf32, #tpu.memory_space<vmem>>, vector<4x16xf32>
    tpu.vector_store %arg7[%c0_125, %c363], %75 {strides = array<i32>} : memref<8x640xf32, #tpu.memory_space<vmem>>, vector<4x16xf32>,
    %c1_126 = arith.constant 1 : index
    %c0_127 = arith.constant 0 : index
    %c12_128 = arith.constant 12 : index
    %c0_129 = arith.constant 0 : index
    %77 = vector.load %arg2[%c1_126, %c0_127, %c12_128, %c0_129] : memref<2x4x16x16xf32, #tpu.memory_space<vmem>>, vector<1x4x1x16xf32>
    %78 = vector.shape_cast %77 : vector<1x4x1x16xf32> to vector<4x16xf32>
    %c4_130 = arith.constant 4 : index
    %c363_131 = arith.constant 363 : index
    %79 = vector.load %arg7[%c4_130, %c363_131] : memref<8x640xf32, #tpu.memory_space<vmem>>, vector<4x16xf32>
    tpu.vector_store %arg7[%c4_130, %c363_131], %78 {strides = array<i32>} : memref<8x640xf32, #tpu.memory_space<vmem>>, vector<4x16xf32>,
    %c0_132 = arith.constant 0 : index
    %c0_133 = arith.constant 0 : index
    %c13 = arith.constant 13 : index
    %c0_134 = arith.constant 0 : index
    %80 = vector.load %arg2[%c0_132, %c0_133, %c13, %c0_134] : memref<2x4x16x16xf32, #tpu.memory_space<vmem>>, vector<1x4x1x16xf32>
    %81 = vector.shape_cast %80 : vector<1x4x1x16xf32> to vector<4x16xf32>
    %c0_135 = arith.constant 0 : index
    %c387 = arith.constant 387 : index
    %82 = vector.load %arg7[%c0_135, %c387] : memref<8x640xf32, #tpu.memory_space<vmem>>, vector<4x16xf32>
    tpu.vector_store %arg7[%c0_135, %c387], %81 {strides = array<i32>} : memref<8x640xf32, #tpu.memory_space<vmem>>, vector<4x16xf32>,
    %c1_136 = arith.constant 1 : index
    %c0_137 = arith.constant 0 : index
    %c13_138 = arith.constant 13 : index
    %c0_139 = arith.constant 0 : index
    %83 = vector.load %arg2[%c1_136, %c0_137, %c13_138, %c0_139] : memref<2x4x16x16xf32, #tpu.memory_space<vmem>>, vector<1x4x1x16xf32>
    %84 = vector.shape_cast %83 : vector<1x4x1x16xf32> to vector<4x16xf32>
    %c4_140 = arith.constant 4 : index
    %c387_141 = arith.constant 387 : index
    %85 = vector.load %arg7[%c4_140, %c387_141] : memref<8x640xf32, #tpu.memory_space<vmem>>, vector<4x16xf32>
    tpu.vector_store %arg7[%c4_140, %c387_141], %84 {strides = array<i32>} : memref<8x640xf32, #tpu.memory_space<vmem>>, vector<4x16xf32>,
    %c0_142 = arith.constant 0 : index
    %c0_143 = arith.constant 0 : index
    %c14 = arith.constant 14 : index
    %c0_144 = arith.constant 0 : index
    %86 = vector.load %arg2[%c0_142, %c0_143, %c14, %c0_144] : memref<2x4x16x16xf32, #tpu.memory_space<vmem>>, vector<1x4x1x16xf32>
    %87 = vector.shape_cast %86 : vector<1x4x1x16xf32> to vector<4x16xf32>
    %c0_145 = arith.constant 0 : index
    %c411 = arith.constant 411 : index
    %88 = vector.load %arg7[%c0_145, %c411] : memref<8x640xf32, #tpu.memory_space<vmem>>, vector<4x16xf32>
    tpu.vector_store %arg7[%c0_145, %c411], %87 {strides = array<i32>} : memref<8x640xf32, #tpu.memory_space<vmem>>, vector<4x16xf32>,
    %c1_146 = arith.constant 1 : index
    %c0_147 = arith.constant 0 : index
    %c14_148 = arith.constant 14 : index
    %c0_149 = arith.constant 0 : index
    %89 = vector.load %arg2[%c1_146, %c0_147, %c14_148, %c0_149] : memref<2x4x16x16xf32, #tpu.memory_space<vmem>>, vector<1x4x1x16xf32>
    %90 = vector.shape_cast %89 : vector<1x4x1x16xf32> to vector<4x16xf32>
    %c4_150 = arith.constant 4 : index
    %c411_151 = arith.constant 411 : index
    %91 = vector.load %arg7[%c4_150, %c411_151] : memref<8x640xf32, #tpu.memory_space<vmem>>, vector<4x16xf32>
    tpu.vector_store %arg7[%c4_150, %c411_151], %90 {strides = array<i32>} : memref<8x640xf32, #tpu.memory_space<vmem>>, vector<4x16xf32>,
    %c0_152 = arith.constant 0 : index
    %c0_153 = arith.constant 0 : index
    %c15 = arith.constant 15 : index
    %c0_154 = arith.constant 0 : index
    %92 = vector.load %arg2[%c0_152, %c0_153, %c15, %c0_154] : memref<2x4x16x16xf32, #tpu.memory_space<vmem>>, vector<1x4x1x16xf32>
    %93 = vector.shape_cast %92 : vector<1x4x1x16xf32> to vector<4x16xf32>
    %c0_155 = arith.constant 0 : index
    %c435 = arith.constant 435 : index
    %94 = vector.load %arg7[%c0_155, %c435] : memref<8x640xf32, #tpu.memory_space<vmem>>, vector<4x16xf32>
    tpu.vector_store %arg7[%c0_155, %c435], %93 {strides = array<i32>} : memref<8x640xf32, #tpu.memory_space<vmem>>, vector<4x16xf32>,
    %c1_156 = arith.constant 1 : index
    %c0_157 = arith.constant 0 : index
    %c15_158 = arith.constant 15 : index
    %c0_159 = arith.constant 0 : index
    %95 = vector.load %arg2[%c1_156, %c0_157, %c15_158, %c0_159] : memref<2x4x16x16xf32, #tpu.memory_space<vmem>>, vector<1x4x1x16xf32>
    %96 = vector.shape_cast %95 : vector<1x4x1x16xf32> to vector<4x16xf32>
    %c4_160 = arith.constant 4 : index
    %c435_161 = arith.constant 435 : index
    %97 = vector.load %arg7[%c4_160, %c435_161] : memref<8x640xf32, #tpu.memory_space<vmem>>, vector<4x16xf32>
    tpu.vector_store %arg7[%c4_160, %c435_161], %96 {strides = array<i32>} : memref<8x640xf32, #tpu.memory_space<vmem>>, vector<4x16xf32>,
    %c0_162 = arith.constant 0 : index
    %c0_163 = arith.constant 0 : index
    %98 = vector.load %arg7[%c0_162, %c0_163] : memref<8x640xf32, #tpu.memory_space<vmem>>, vector<8x640xf32>
    %c0_164 = arith.constant 0 : index
    %c0_165 = arith.constant 0 : index
    %99 = vector.load %arg3[%c0_164, %c0_165] : memref<8x49xf32, #tpu.memory_space<vmem>>, vector<8x49xf32>
    %100 = vector.extract_strided_slice %98 {offsets = [0, 0], sizes = [8, 376], strides = [1, 1]} : vector<8x640xf32> to vector<8x376xf32>
    %101 = vector.extract_strided_slice %99 {offsets = [0, 0], sizes = [8, 1], strides = [1, 1]} : vector<8x49xf32> to vector<8x1xf32>
    %102 = vector.broadcast %101 : vector<8x1xf32> to vector<8x376xf32>
    %103 = arith.mulf %100, %102 : vector<8x376xf32>
    %104 = vector.extract_strided_slice %98 {offsets = [0, 1], sizes = [8, 376], strides = [1, 1]} : vector<8x640xf32> to vector<8x376xf32>
    %105 = vector.extract_strided_slice %99 {offsets = [0, 1], sizes = [8, 1], strides = [1, 1]} : vector<8x49xf32> to vector<8x1xf32>
    %106 = vector.broadcast %105 : vector<8x1xf32> to vector<8x376xf32>
    %107 = arith.mulf %104, %106 : vector<8x376xf32>
    %108 = arith.addf %103, %107 : vector<8x376xf32>
    %109 = vector.extract_strided_slice %98 {offsets = [0, 2], sizes = [8, 376], strides = [1, 1]} : vector<8x640xf32> to vector<8x376xf32>
    %110 = vector.extract_strided_slice %99 {offsets = [0, 2], sizes = [8, 1], strides = [1, 1]} : vector<8x49xf32> to vector<8x1xf32>
    %111 = vector.broadcast %110 : vector<8x1xf32> to vector<8x376xf32>
    %112 = arith.mulf %109, %111 : vector<8x376xf32>
    %113 = arith.addf %108, %112 : vector<8x376xf32>
    %114 = vector.extract_strided_slice %98 {offsets = [0, 3], sizes = [8, 376], strides = [1, 1]} : vector<8x640xf32> to vector<8x376xf32>
    %115 = vector.extract_strided_slice %99 {offsets = [0, 3], sizes = [8, 1], strides = [1, 1]} : vector<8x49xf32> to vector<8x1xf32>
    %116 = vector.broadcast %115 : vector<8x1xf32> to vector<8x376xf32>
    %117 = arith.mulf %114, %116 : vector<8x376xf32>
    %118 = arith.addf %113, %117 : vector<8x376xf32>
    %119 = vector.extract_strided_slice %98 {offsets = [0, 4], sizes = [8, 376], strides = [1, 1]} : vector<8x640xf32> to vector<8x376xf32>
    %120 = vector.extract_strided_slice %99 {offsets = [0, 4], sizes = [8, 1], strides = [1, 1]} : vector<8x49xf32> to vector<8x1xf32>
    %121 = vector.broadcast %120 : vector<8x1xf32> to vector<8x376xf32>
    %122 = arith.mulf %119, %121 : vector<8x376xf32>
    %123 = arith.addf %118, %122 : vector<8x376xf32>
    %124 = vector.extract_strided_slice %98 {offsets = [0, 5], sizes = [8, 376], strides = [1, 1]} : vector<8x640xf32> to vector<8x376xf32>
    %125 = vector.extract_strided_slice %99 {offsets = [0, 5], sizes = [8, 1], strides = [1, 1]} : vector<8x49xf32> to vector<8x1xf32>
    %126 = vector.broadcast %125 : vector<8x1xf32> to vector<8x376xf32>
    %127 = arith.mulf %124, %126 : vector<8x376xf32>
    %128 = arith.addf %123, %127 : vector<8x376xf32>
    %129 = vector.extract_strided_slice %98 {offsets = [0, 6], sizes = [8, 376], strides = [1, 1]} : vector<8x640xf32> to vector<8x376xf32>
    %130 = vector.extract_strided_slice %99 {offsets = [0, 6], sizes = [8, 1], strides = [1, 1]} : vector<8x49xf32> to vector<8x1xf32>
    %131 = vector.broadcast %130 : vector<8x1xf32> to vector<8x376xf32>
    %132 = arith.mulf %129, %131 : vector<8x376xf32>
    %133 = arith.addf %128, %132 : vector<8x376xf32>
    %134 = vector.extract_strided_slice %98 {offsets = [0, 24], sizes = [8, 376], strides = [1, 1]} : vector<8x640xf32> to vector<8x376xf32>
    %135 = vector.extract_strided_slice %99 {offsets = [0, 7], sizes = [8, 1], strides = [1, 1]} : vector<8x49xf32> to vector<8x1xf32>
    %136 = vector.broadcast %135 : vector<8x1xf32> to vector<8x376xf32>
    %137 = arith.mulf %134, %136 : vector<8x376xf32>
    %138 = vector.extract_strided_slice %98 {offsets = [0, 25], sizes = [8, 376], strides = [1, 1]} : vector<8x640xf32> to vector<8x376xf32>
    %139 = vector.extract_strided_slice %99 {offsets = [0, 8], sizes = [8, 1], strides = [1, 1]} : vector<8x49xf32> to vector<8x1xf32>
    %140 = vector.broadcast %139 : vector<8x1xf32> to vector<8x376xf32>
    %141 = arith.mulf %138, %140 : vector<8x376xf32>
    %142 = arith.addf %137, %141 : vector<8x376xf32>
    %143 = vector.extract_strided_slice %98 {offsets = [0, 26], sizes = [8, 376], strides = [1, 1]} : vector<8x640xf32> to vector<8x376xf32>
    %144 = vector.extract_strided_slice %99 {offsets = [0, 9], sizes = [8, 1], strides = [1, 1]} : vector<8x49xf32> to vector<8x1xf32>
    %145 = vector.broadcast %144 : vector<8x1xf32> to vector<8x376xf32>
    %146 = arith.mulf %143, %145 : vector<8x376xf32>
    %147 = arith.addf %142, %146 : vector<8x376xf32>
    %148 = vector.extract_strided_slice %98 {offsets = [0, 27], sizes = [8, 376], strides = [1, 1]} : vector<8x640xf32> to vector<8x376xf32>
    %149 = vector.extract_strided_slice %99 {offsets = [0, 10], sizes = [8, 1], strides = [1, 1]} : vector<8x49xf32> to vector<8x1xf32>
    %150 = vector.broadcast %149 : vector<8x1xf32> to vector<8x376xf32>
    %151 = arith.mulf %148, %150 : vector<8x376xf32>
    %152 = arith.addf %147, %151 : vector<8x376xf32>
    %153 = vector.extract_strided_slice %98 {offsets = [0, 28], sizes = [8, 376], strides = [1, 1]} : vector<8x640xf32> to vector<8x376xf32>
    %154 = vector.extract_strided_slice %99 {offsets = [0, 11], sizes = [8, 1], strides = [1, 1]} : vector<8x49xf32> to vector<8x1xf32>
    %155 = vector.broadcast %154 : vector<8x1xf32> to vector<8x376xf32>
    %156 = arith.mulf %153, %155 : vector<8x376xf32>
    %157 = arith.addf %152, %156 : vector<8x376xf32>
    %158 = vector.extract_strided_slice %98 {offsets = [0, 29], sizes = [8, 376], strides = [1, 1]} : vector<8x640xf32> to vector<8x376xf32>
    %159 = vector.extract_strided_slice %99 {offsets = [0, 12], sizes = [8, 1], strides = [1, 1]} : vector<8x49xf32> to vector<8x1xf32>
    %160 = vector.broadcast %159 : vector<8x1xf32> to vector<8x376xf32>
    %161 = arith.mulf %158, %160 : vector<8x376xf32>
    %162 = arith.addf %157, %161 : vector<8x376xf32>
    %163 = vector.extract_strided_slice %98 {offsets = [0, 30], sizes = [8, 376], strides = [1, 1]} : vector<8x640xf32> to vector<8x376xf32>
    %164 = vector.extract_strided_slice %99 {offsets = [0, 13], sizes = [8, 1], strides = [1, 1]} : vector<8x49xf32> to vector<8x1xf32>
    %165 = vector.broadcast %164 : vector<8x1xf32> to vector<8x376xf32>
    %166 = arith.mulf %163, %165 : vector<8x376xf32>
    %167 = arith.addf %162, %166 : vector<8x376xf32>
    %168 = arith.addf %133, %167 : vector<8x376xf32>
    %169 = vector.extract_strided_slice %98 {offsets = [0, 48], sizes = [8, 376], strides = [1, 1]} : vector<8x640xf32> to vector<8x376xf32>
    %170 = vector.extract_strided_slice %99 {offsets = [0, 14], sizes = [8, 1], strides = [1, 1]} : vector<8x49xf32> to vector<8x1xf32>
    %171 = vector.broadcast %170 : vector<8x1xf32> to vector<8x376xf32>
    %172 = arith.mulf %169, %171 : vector<8x376xf32>
    %173 = vector.extract_strided_slice %98 {offsets = [0, 49], sizes = [8, 376], strides = [1, 1]} : vector<8x640xf32> to vector<8x376xf32>
    %174 = vector.extract_strided_slice %99 {offsets = [0, 15], sizes = [8, 1], strides = [1, 1]} : vector<8x49xf32> to vector<8x1xf32>
    %175 = vector.broadcast %174 : vector<8x1xf32> to vector<8x376xf32>
    %176 = arith.mulf %173, %175 : vector<8x376xf32>
    %177 = arith.addf %172, %176 : vector<8x376xf32>
    %178 = vector.extract_strided_slice %98 {offsets = [0, 50], sizes = [8, 376], strides = [1, 1]} : vector<8x640xf32> to vector<8x376xf32>
    %179 = vector.extract_strided_slice %99 {offsets = [0, 16], sizes = [8, 1], strides = [1, 1]} : vector<8x49xf32> to vector<8x1xf32>
    %180 = vector.broadcast %179 : vector<8x1xf32> to vector<8x376xf32>
    %181 = arith.mulf %178, %180 : vector<8x376xf32>
    %182 = arith.addf %177, %181 : vector<8x376xf32>
    %183 = vector.extract_strided_slice %98 {offsets = [0, 51], sizes = [8, 376], strides = [1, 1]} : vector<8x640xf32> to vector<8x376xf32>
    %184 = vector.extract_strided_slice %99 {offsets = [0, 17], sizes = [8, 1], strides = [1, 1]} : vector<8x49xf32> to vector<8x1xf32>
    %185 = vector.broadcast %184 : vector<8x1xf32> to vector<8x376xf32>
    %186 = arith.mulf %183, %185 : vector<8x376xf32>
    %187 = arith.addf %182, %186 : vector<8x376xf32>
    %188 = vector.extract_strided_slice %98 {offsets = [0, 52], sizes = [8, 376], strides = [1, 1]} : vector<8x640xf32> to vector<8x376xf32>
    %189 = vector.extract_strided_slice %99 {offsets = [0, 18], sizes = [8, 1], strides = [1, 1]} : vector<8x49xf32> to vector<8x1xf32>
    %190 = vector.broadcast %189 : vector<8x1xf32> to vector<8x376xf32>
    %191 = arith.mulf %188, %190 : vector<8x376xf32>
    %192 = arith.addf %187, %191 : vector<8x376xf32>
    %193 = vector.extract_strided_slice %98 {offsets = [0, 53], sizes = [8, 376], strides = [1, 1]} : vector<8x640xf32> to vector<8x376xf32>
    %194 = vector.extract_strided_slice %99 {offsets = [0, 19], sizes = [8, 1], strides = [1, 1]} : vector<8x49xf32> to vector<8x1xf32>
    %195 = vector.broadcast %194 : vector<8x1xf32> to vector<8x376xf32>
    %196 = arith.mulf %193, %195 : vector<8x376xf32>
    %197 = arith.addf %192, %196 : vector<8x376xf32>
    %198 = vector.extract_strided_slice %98 {offsets = [0, 54], sizes = [8, 376], strides = [1, 1]} : vector<8x640xf32> to vector<8x376xf32>
    %199 = vector.extract_strided_slice %99 {offsets = [0, 20], sizes = [8, 1], strides = [1, 1]} : vector<8x49xf32> to vector<8x1xf32>
    %200 = vector.broadcast %199 : vector<8x1xf32> to vector<8x376xf32>
    %201 = arith.mulf %198, %200 : vector<8x376xf32>
    %202 = arith.addf %197, %201 : vector<8x376xf32>
    %203 = arith.addf %168, %202 : vector<8x376xf32>
    %204 = vector.extract_strided_slice %98 {offsets = [0, 72], sizes = [8, 376], strides = [1, 1]} : vector<8x640xf32> to vector<8x376xf32>
    %205 = vector.extract_strided_slice %99 {offsets = [0, 21], sizes = [8, 1], strides = [1, 1]} : vector<8x49xf32> to vector<8x1xf32>
    %206 = vector.broadcast %205 : vector<8x1xf32> to vector<8x376xf32>
    %207 = arith.mulf %204, %206 : vector<8x376xf32>
    %208 = vector.extract_strided_slice %98 {offsets = [0, 73], sizes = [8, 376], strides = [1, 1]} : vector<8x640xf32> to vector<8x376xf32>
    %209 = vector.extract_strided_slice %99 {offsets = [0, 22], sizes = [8, 1], strides = [1, 1]} : vector<8x49xf32> to vector<8x1xf32>
    %210 = vector.broadcast %209 : vector<8x1xf32> to vector<8x376xf32>
    %211 = arith.mulf %208, %210 : vector<8x376xf32>
    %212 = arith.addf %207, %211 : vector<8x376xf32>
    %213 = vector.extract_strided_slice %98 {offsets = [0, 74], sizes = [8, 376], strides = [1, 1]} : vector<8x640xf32> to vector<8x376xf32>
    %214 = vector.extract_strided_slice %99 {offsets = [0, 23], sizes = [8, 1], strides = [1, 1]} : vector<8x49xf32> to vector<8x1xf32>
    %215 = vector.broadcast %214 : vector<8x1xf32> to vector<8x376xf32>
    %216 = arith.mulf %213, %215 : vector<8x376xf32>
    %217 = arith.addf %212, %216 : vector<8x376xf32>
    %218 = vector.extract_strided_slice %98 {offsets = [0, 75], sizes = [8, 376], strides = [1, 1]} : vector<8x640xf32> to vector<8x376xf32>
    %219 = vector.extract_strided_slice %99 {offsets = [0, 24], sizes = [8, 1], strides = [1, 1]} : vector<8x49xf32> to vector<8x1xf32>
    %220 = vector.broadcast %219 : vector<8x1xf32> to vector<8x376xf32>
    %221 = arith.mulf %218, %220 : vector<8x376xf32>
    %222 = arith.addf %217, %221 : vector<8x376xf32>
    %223 = vector.extract_strided_slice %98 {offsets = [0, 76], sizes = [8, 376], strides = [1, 1]} : vector<8x640xf32> to vector<8x376xf32>
    %224 = vector.extract_strided_slice %99 {offsets = [0, 25], sizes = [8, 1], strides = [1, 1]} : vector<8x49xf32> to vector<8x1xf32>
    %225 = vector.broadcast %224 : vector<8x1xf32> to vector<8x376xf32>
    %226 = arith.mulf %223, %225 : vector<8x376xf32>
    %227 = arith.addf %222, %226 : vector<8x376xf32>
    %228 = vector.extract_strided_slice %98 {offsets = [0, 77], sizes = [8, 376], strides = [1, 1]} : vector<8x640xf32> to vector<8x376xf32>
    %229 = vector.extract_strided_slice %99 {offsets = [0, 26], sizes = [8, 1], strides = [1, 1]} : vector<8x49xf32> to vector<8x1xf32>
    %230 = vector.broadcast %229 : vector<8x1xf32> to vector<8x376xf32>
    %231 = arith.mulf %228, %230 : vector<8x376xf32>
    %232 = arith.addf %227, %231 : vector<8x376xf32>
    %233 = vector.extract_strided_slice %98 {offsets = [0, 78], sizes = [8, 376], strides = [1, 1]} : vector<8x640xf32> to vector<8x376xf32>
    %234 = vector.extract_strided_slice %99 {offsets = [0, 27], sizes = [8, 1], strides = [1, 1]} : vector<8x49xf32> to vector<8x1xf32>
    %235 = vector.broadcast %234 : vector<8x1xf32> to vector<8x376xf32>
    %236 = arith.mulf %233, %235 : vector<8x376xf32>
    %237 = arith.addf %232, %236 : vector<8x376xf32>
    %238 = arith.addf %203, %237 : vector<8x376xf32>
    %239 = vector.extract_strided_slice %98 {offsets = [0, 96], sizes = [8, 376], strides = [1, 1]} : vector<8x640xf32> to vector<8x376xf32>
    %240 = vector.extract_strided_slice %99 {offsets = [0, 28], sizes = [8, 1], strides = [1, 1]} : vector<8x49xf32> to vector<8x1xf32>
    %241 = vector.broadcast %240 : vector<8x1xf32> to vector<8x376xf32>
    %242 = arith.mulf %239, %241 : vector<8x376xf32>
    %243 = vector.extract_strided_slice %98 {offsets = [0, 97], sizes = [8, 376], strides = [1, 1]} : vector<8x640xf32> to vector<8x376xf32>
    %244 = vector.extract_strided_slice %99 {offsets = [0, 29], sizes = [8, 1], strides = [1, 1]} : vector<8x49xf32> to vector<8x1xf32>
    %245 = vector.broadcast %244 : vector<8x1xf32> to vector<8x376xf32>
    %246 = arith.mulf %243, %245 : vector<8x376xf32>
    %247 = arith.addf %242, %246 : vector<8x376xf32>
    %248 = vector.extract_strided_slice %98 {offsets = [0, 98], sizes = [8, 376], strides = [1, 1]} : vector<8x640xf32> to vector<8x376xf32>
    %249 = vector.extract_strided_slice %99 {offsets = [0, 30], sizes = [8, 1], strides = [1, 1]} : vector<8x49xf32> to vector<8x1xf32>
    %250 = vector.broadcast %249 : vector<8x1xf32> to vector<8x376xf32>
    %251 = arith.mulf %248, %250 : vector<8x376xf32>
    %252 = arith.addf %247, %251 : vector<8x376xf32>
    %253 = vector.extract_strided_slice %98 {offsets = [0, 99], sizes = [8, 376], strides = [1, 1]} : vector<8x640xf32> to vector<8x376xf32>
    %254 = vector.extract_strided_slice %99 {offsets = [0, 31], sizes = [8, 1], strides = [1, 1]} : vector<8x49xf32> to vector<8x1xf32>
    %255 = vector.broadcast %254 : vector<8x1xf32> to vector<8x376xf32>
    %256 = arith.mulf %253, %255 : vector<8x376xf32>
    %257 = arith.addf %252, %256 : vector<8x376xf32>
    %258 = vector.extract_strided_slice %98 {offsets = [0, 100], sizes = [8, 376], strides = [1, 1]} : vector<8x640xf32> to vector<8x376xf32>
    %259 = vector.extract_strided_slice %99 {offsets = [0, 32], sizes = [8, 1], strides = [1, 1]} : vector<8x49xf32> to vector<8x1xf32>
    %260 = vector.broadcast %259 : vector<8x1xf32> to vector<8x376xf32>
    %261 = arith.mulf %258, %260 : vector<8x376xf32>
    %262 = arith.addf %257, %261 : vector<8x376xf32>
    %263 = vector.extract_strided_slice %98 {offsets = [0, 101], sizes = [8, 376], strides = [1, 1]} : vector<8x640xf32> to vector<8x376xf32>
    %264 = vector.extract_strided_slice %99 {offsets = [0, 33], sizes = [8, 1], strides = [1, 1]} : vector<8x49xf32> to vector<8x1xf32>
    %265 = vector.broadcast %264 : vector<8x1xf32> to vector<8x376xf32>
    %266 = arith.mulf %263, %265 : vector<8x376xf32>
    %267 = arith.addf %262, %266 : vector<8x376xf32>
    %268 = vector.extract_strided_slice %98 {offsets = [0, 102], sizes = [8, 376], strides = [1, 1]} : vector<8x640xf32> to vector<8x376xf32>
    %269 = vector.extract_strided_slice %99 {offsets = [0, 34], sizes = [8, 1], strides = [1, 1]} : vector<8x49xf32> to vector<8x1xf32>
    %270 = vector.broadcast %269 : vector<8x1xf32> to vector<8x376xf32>
    %271 = arith.mulf %268, %270 : vector<8x376xf32>
    %272 = arith.addf %267, %271 : vector<8x376xf32>
    %273 = arith.addf %238, %272 : vector<8x376xf32>
    %274 = vector.extract_strided_slice %98 {offsets = [0, 120], sizes = [8, 376], strides = [1, 1]} : vector<8x640xf32> to vector<8x376xf32>
    %275 = vector.extract_strided_slice %99 {offsets = [0, 35], sizes = [8, 1], strides = [1, 1]} : vector<8x49xf32> to vector<8x1xf32>
    %276 = vector.broadcast %275 : vector<8x1xf32> to vector<8x376xf32>
    %277 = arith.mulf %274, %276 : vector<8x376xf32>
    %278 = vector.extract_strided_slice %98 {offsets = [0, 121], sizes = [8, 376], strides = [1, 1]} : vector<8x640xf32> to vector<8x376xf32>
    %279 = vector.extract_strided_slice %99 {offsets = [0, 36], sizes = [8, 1], strides = [1, 1]} : vector<8x49xf32> to vector<8x1xf32>
    %280 = vector.broadcast %279 : vector<8x1xf32> to vector<8x376xf32>
    %281 = arith.mulf %278, %280 : vector<8x376xf32>
    %282 = arith.addf %277, %281 : vector<8x376xf32>
    %283 = vector.extract_strided_slice %98 {offsets = [0, 122], sizes = [8, 376], strides = [1, 1]} : vector<8x640xf32> to vector<8x376xf32>
    %284 = vector.extract_strided_slice %99 {offsets = [0, 37], sizes = [8, 1], strides = [1, 1]} : vector<8x49xf32> to vector<8x1xf32>
    %285 = vector.broadcast %284 : vector<8x1xf32> to vector<8x376xf32>
    %286 = arith.mulf %283, %285 : vector<8x376xf32>
    %287 = arith.addf %282, %286 : vector<8x376xf32>
    %288 = vector.extract_strided_slice %98 {offsets = [0, 123], sizes = [8, 376], strides = [1, 1]} : vector<8x640xf32> to vector<8x376xf32>
    %289 = vector.extract_strided_slice %99 {offsets = [0, 38], sizes = [8, 1], strides = [1, 1]} : vector<8x49xf32> to vector<8x1xf32>
    %290 = vector.broadcast %289 : vector<8x1xf32> to vector<8x376xf32>
    %291 = arith.mulf %288, %290 : vector<8x376xf32>
    %292 = arith.addf %287, %291 : vector<8x376xf32>
    %293 = vector.extract_strided_slice %98 {offsets = [0, 124], sizes = [8, 376], strides = [1, 1]} : vector<8x640xf32> to vector<8x376xf32>
    %294 = vector.extract_strided_slice %99 {offsets = [0, 39], sizes = [8, 1], strides = [1, 1]} : vector<8x49xf32> to vector<8x1xf32>
    %295 = vector.broadcast %294 : vector<8x1xf32> to vector<8x376xf32>
    %296 = arith.mulf %293, %295 : vector<8x376xf32>
    %297 = arith.addf %292, %296 : vector<8x376xf32>
    %298 = vector.extract_strided_slice %98 {offsets = [0, 125], sizes = [8, 376], strides = [1, 1]} : vector<8x640xf32> to vector<8x376xf32>
    %299 = vector.extract_strided_slice %99 {offsets = [0, 40], sizes = [8, 1], strides = [1, 1]} : vector<8x49xf32> to vector<8x1xf32>
    %300 = vector.broadcast %299 : vector<8x1xf32> to vector<8x376xf32>
    %301 = arith.mulf %298, %300 : vector<8x376xf32>
    %302 = arith.addf %297, %301 : vector<8x376xf32>
    %303 = vector.extract_strided_slice %98 {offsets = [0, 126], sizes = [8, 376], strides = [1, 1]} : vector<8x640xf32> to vector<8x376xf32>
    %304 = vector.extract_strided_slice %99 {offsets = [0, 41], sizes = [8, 1], strides = [1, 1]} : vector<8x49xf32> to vector<8x1xf32>
    %305 = vector.broadcast %304 : vector<8x1xf32> to vector<8x376xf32>
    %306 = arith.mulf %303, %305 : vector<8x376xf32>
    %307 = arith.addf %302, %306 : vector<8x376xf32>
    %308 = arith.addf %273, %307 : vector<8x376xf32>
    %309 = vector.extract_strided_slice %98 {offsets = [0, 144], sizes = [8, 376], strides = [1, 1]} : vector<8x640xf32> to vector<8x376xf32>
    %310 = vector.extract_strided_slice %99 {offsets = [0, 42], sizes = [8, 1], strides = [1, 1]} : vector<8x49xf32> to vector<8x1xf32>
    %311 = vector.broadcast %310 : vector<8x1xf32> to vector<8x376xf32>
    %312 = arith.mulf %309, %311 : vector<8x376xf32>
    %313 = vector.extract_strided_slice %98 {offsets = [0, 145], sizes = [8, 376], strides = [1, 1]} : vector<8x640xf32> to vector<8x376xf32>
    %314 = vector.extract_strided_slice %99 {offsets = [0, 43], sizes = [8, 1], strides = [1, 1]} : vector<8x49xf32> to vector<8x1xf32>
    %315 = vector.broadcast %314 : vector<8x1xf32> to vector<8x376xf32>
    %316 = arith.mulf %313, %315 : vector<8x376xf32>
    %317 = arith.addf %312, %316 : vector<8x376xf32>
    %318 = vector.extract_strided_slice %98 {offsets = [0, 146], sizes = [8, 376], strides = [1, 1]} : vector<8x640xf32> to vector<8x376xf32>
    %319 = vector.extract_strided_slice %99 {offsets = [0, 44], sizes = [8, 1], strides = [1, 1]} : vector<8x49xf32> to vector<8x1xf32>
    %320 = vector.broadcast %319 : vector<8x1xf32> to vector<8x376xf32>
    %321 = arith.mulf %318, %320 : vector<8x376xf32>
    %322 = arith.addf %317, %321 : vector<8x376xf32>
    %323 = vector.extract_strided_slice %98 {offsets = [0, 147], sizes = [8, 376], strides = [1, 1]} : vector<8x640xf32> to vector<8x376xf32>
    %324 = vector.extract_strided_slice %99 {offsets = [0, 45], sizes = [8, 1], strides = [1, 1]} : vector<8x49xf32> to vector<8x1xf32>
    %325 = vector.broadcast %324 : vector<8x1xf32> to vector<8x376xf32>
    %326 = arith.mulf %323, %325 : vector<8x376xf32>
    %327 = arith.addf %322, %326 : vector<8x376xf32>
    %328 = vector.extract_strided_slice %98 {offsets = [0, 148], sizes = [8, 376], strides = [1, 1]} : vector<8x640xf32> to vector<8x376xf32>
    %329 = vector.extract_strided_slice %99 {offsets = [0, 46], sizes = [8, 1], strides = [1, 1]} : vector<8x49xf32> to vector<8x1xf32>
    %330 = vector.broadcast %329 : vector<8x1xf32> to vector<8x376xf32>
    %331 = arith.mulf %328, %330 : vector<8x376xf32>
    %332 = arith.addf %327, %331 : vector<8x376xf32>
    %333 = vector.extract_strided_slice %98 {offsets = [0, 149], sizes = [8, 376], strides = [1, 1]} : vector<8x640xf32> to vector<8x376xf32>
    %334 = vector.extract_strided_slice %99 {offsets = [0, 47], sizes = [8, 1], strides = [1, 1]} : vector<8x49xf32> to vector<8x1xf32>
    %335 = vector.broadcast %334 : vector<8x1xf32> to vector<8x376xf32>
    %336 = arith.mulf %333, %335 : vector<8x376xf32>
    %337 = arith.addf %332, %336 : vector<8x376xf32>
    %338 = vector.extract_strided_slice %98 {offsets = [0, 150], sizes = [8, 376], strides = [1, 1]} : vector<8x640xf32> to vector<8x376xf32>
    %339 = vector.extract_strided_slice %99 {offsets = [0, 48], sizes = [8, 1], strides = [1, 1]} : vector<8x49xf32> to vector<8x1xf32>
    %340 = vector.broadcast %339 : vector<8x1xf32> to vector<8x376xf32>
    %341 = arith.mulf %338, %340 : vector<8x376xf32>
    %342 = arith.addf %337, %341 : vector<8x376xf32>
    %343 = arith.addf %308, %342 : vector<8x376xf32>
    %344 = vector.extract_strided_slice %343 {offsets = [0, 0], sizes = [8, 16], strides = [1, 1]} : vector<8x376xf32> to vector<8x16xf32>
    %c0_166 = arith.constant 0 : index
    %c0_167 = arith.constant 0 : index
    %345 = vector.load %arg8[%c0_166, %c0_167] : memref<8x256xf32, #tpu.memory_space<vmem>>, vector<8x16xf32>
    tpu.vector_store %arg8[%c0_166, %c0_167], %344 {strides = array<i32>} : memref<8x256xf32, #tpu.memory_space<vmem>>, vector<8x16xf32>,
    %346 = vector.extract_strided_slice %343 {offsets = [0, 24], sizes = [8, 16], strides = [1, 1]} : vector<8x376xf32> to vector<8x16xf32>
    %c0_168 = arith.constant 0 : index
    %c16 = arith.constant 16 : index
    %347 = vector.load %arg8[%c0_168, %c16] : memref<8x256xf32, #tpu.memory_space<vmem>>, vector<8x16xf32>
    tpu.vector_store %arg8[%c0_168, %c16], %346 {strides = array<i32>} : memref<8x256xf32, #tpu.memory_space<vmem>>, vector<8x16xf32>,
    %348 = vector.extract_strided_slice %343 {offsets = [0, 48], sizes = [8, 16], strides = [1, 1]} : vector<8x376xf32> to vector<8x16xf32>
    %c0_169 = arith.constant 0 : index
    %c32 = arith.constant 32 : index
    %349 = vector.load %arg8[%c0_169, %c32] : memref<8x256xf32, #tpu.memory_space<vmem>>, vector<8x16xf32>
    tpu.vector_store %arg8[%c0_169, %c32], %348 {strides = array<i32>} : memref<8x256xf32, #tpu.memory_space<vmem>>, vector<8x16xf32>,
    %350 = vector.extract_strided_slice %343 {offsets = [0, 72], sizes = [8, 16], strides = [1, 1]} : vector<8x376xf32> to vector<8x16xf32>
    %c0_170 = arith.constant 0 : index
    %c48 = arith.constant 48 : index
    %351 = vector.load %arg8[%c0_170, %c48] : memref<8x256xf32, #tpu.memory_space<vmem>>, vector<8x16xf32>
    tpu.vector_store %arg8[%c0_170, %c48], %350 {strides = array<i32>} : memref<8x256xf32, #tpu.memory_space<vmem>>, vector<8x16xf32>,
    %352 = vector.extract_strided_slice %343 {offsets = [0, 96], sizes = [8, 16], strides = [1, 1]} : vector<8x376xf32> to vector<8x16xf32>
    %c0_171 = arith.constant 0 : index
    %c64 = arith.constant 64 : index
    %353 = vector.load %arg8[%c0_171, %c64] : memref<8x256xf32, #tpu.memory_space<vmem>>, vector<8x16xf32>
    tpu.vector_store %arg8[%c0_171, %c64], %352 {strides = array<i32>} : memref<8x256xf32, #tpu.memory_space<vmem>>, vector<8x16xf32>,
    %354 = vector.extract_strided_slice %343 {offsets = [0, 120], sizes = [8, 16], strides = [1, 1]} : vector<8x376xf32> to vector<8x16xf32>
    %c0_172 = arith.constant 0 : index
    %c80 = arith.constant 80 : index
    %355 = vector.load %arg8[%c0_172, %c80] : memref<8x256xf32, #tpu.memory_space<vmem>>, vector<8x16xf32>
    tpu.vector_store %arg8[%c0_172, %c80], %354 {strides = array<i32>} : memref<8x256xf32, #tpu.memory_space<vmem>>, vector<8x16xf32>,
    %356 = vector.extract_strided_slice %343 {offsets = [0, 144], sizes = [8, 16], strides = [1, 1]} : vector<8x376xf32> to vector<8x16xf32>
    %c0_173 = arith.constant 0 : index
    %c96 = arith.constant 96 : index
    %357 = vector.load %arg8[%c0_173, %c96] : memref<8x256xf32, #tpu.memory_space<vmem>>, vector<8x16xf32>
    tpu.vector_store %arg8[%c0_173, %c96], %356 {strides = array<i32>} : memref<8x256xf32, #tpu.memory_space<vmem>>, vector<8x16xf32>,
    %358 = vector.extract_strided_slice %343 {offsets = [0, 168], sizes = [8, 16], strides = [1, 1]} : vector<8x376xf32> to vector<8x16xf32>
    %c0_174 = arith.constant 0 : index
    %c112 = arith.constant 112 : index
    %359 = vector.load %arg8[%c0_174, %c112] : memref<8x256xf32, #tpu.memory_space<vmem>>, vector<8x16xf32>
    tpu.vector_store %arg8[%c0_174, %c112], %358 {strides = array<i32>} : memref<8x256xf32, #tpu.memory_space<vmem>>, vector<8x16xf32>,
    %360 = vector.extract_strided_slice %343 {offsets = [0, 192], sizes = [8, 16], strides = [1, 1]} : vector<8x376xf32> to vector<8x16xf32>
    %c0_175 = arith.constant 0 : index
    %c128 = arith.constant 128 : index
    %361 = vector.load %arg8[%c0_175, %c128] : memref<8x256xf32, #tpu.memory_space<vmem>>, vector<8x16xf32>
    tpu.vector_store %arg8[%c0_175, %c128], %360 {strides = array<i32>} : memref<8x256xf32, #tpu.memory_space<vmem>>, vector<8x16xf32>,
    %362 = vector.extract_strided_slice %343 {offsets = [0, 216], sizes = [8, 16], strides = [1, 1]} : vector<8x376xf32> to vector<8x16xf32>
    %c0_176 = arith.constant 0 : index
    %c144 = arith.constant 144 : index
    %363 = vector.load %arg8[%c0_176, %c144] : memref<8x256xf32, #tpu.memory_space<vmem>>, vector<8x16xf32>
    tpu.vector_store %arg8[%c0_176, %c144], %362 {strides = array<i32>} : memref<8x256xf32, #tpu.memory_space<vmem>>, vector<8x16xf32>,
    %364 = vector.extract_strided_slice %343 {offsets = [0, 240], sizes = [8, 16], strides = [1, 1]} : vector<8x376xf32> to vector<8x16xf32>
    %c0_177 = arith.constant 0 : index
    %c160 = arith.constant 160 : index
    %365 = vector.load %arg8[%c0_177, %c160] : memref<8x256xf32, #tpu.memory_space<vmem>>, vector<8x16xf32>
    tpu.vector_store %arg8[%c0_177, %c160], %364 {strides = array<i32>} : memref<8x256xf32, #tpu.memory_space<vmem>>, vector<8x16xf32>,
    %366 = vector.extract_strided_slice %343 {offsets = [0, 264], sizes = [8, 16], strides = [1, 1]} : vector<8x376xf32> to vector<8x16xf32>
    %c0_178 = arith.constant 0 : index
    %c176 = arith.constant 176 : index
    %367 = vector.load %arg8[%c0_178, %c176] : memref<8x256xf32, #tpu.memory_space<vmem>>, vector<8x16xf32>
    tpu.vector_store %arg8[%c0_178, %c176], %366 {strides = array<i32>} : memref<8x256xf32, #tpu.memory_space<vmem>>, vector<8x16xf32>,
    %368 = vector.extract_strided_slice %343 {offsets = [0, 288], sizes = [8, 16], strides = [1, 1]} : vector<8x376xf32> to vector<8x16xf32>
    %c0_179 = arith.constant 0 : index
    %c192 = arith.constant 192 : index
    %369 = vector.load %arg8[%c0_179, %c192] : memref<8x256xf32, #tpu.memory_space<vmem>>, vector<8x16xf32>
    tpu.vector_store %arg8[%c0_179, %c192], %368 {strides = array<i32>} : memref<8x256xf32, #tpu.memory_space<vmem>>, vector<8x16xf32>,
    %370 = vector.extract_strided_slice %343 {offsets = [0, 312], sizes = [8, 16], strides = [1, 1]} : vector<8x376xf32> to vector<8x16xf32>
    %c0_180 = arith.constant 0 : index
    %c208 = arith.constant 208 : index
    %371 = vector.load %arg8[%c0_180, %c208] : memref<8x256xf32, #tpu.memory_space<vmem>>, vector<8x16xf32>
    tpu.vector_store %arg8[%c0_180, %c208], %370 {strides = array<i32>} : memref<8x256xf32, #tpu.memory_space<vmem>>, vector<8x16xf32>,
    %372 = vector.extract_strided_slice %343 {offsets = [0, 336], sizes = [8, 16], strides = [1, 1]} : vector<8x376xf32> to vector<8x16xf32>
    %c0_181 = arith.constant 0 : index
    %c224 = arith.constant 224 : index
    %373 = vector.load %arg8[%c0_181, %c224] : memref<8x256xf32, #tpu.memory_space<vmem>>, vector<8x16xf32>
    tpu.vector_store %arg8[%c0_181, %c224], %372 {strides = array<i32>} : memref<8x256xf32, #tpu.memory_space<vmem>>, vector<8x16xf32>,
    %374 = vector.extract_strided_slice %343 {offsets = [0, 360], sizes = [8, 16], strides = [1, 1]} : vector<8x376xf32> to vector<8x16xf32>
    %c0_182 = arith.constant 0 : index
    %c240 = arith.constant 240 : index
    %375 = vector.load %arg8[%c0_182, %c240] : memref<8x256xf32, #tpu.memory_space<vmem>>, vector<8x16xf32>
    tpu.vector_store %arg8[%c0_182, %c240], %374 {strides = array<i32>} : memref<8x256xf32, #tpu.memory_space<vmem>>, vector<8x16xf32>,
    %c0_183 = arith.constant 0 : index
    %c0_184 = arith.constant 0 : index
    %376 = vector.load %arg8[%c0_183, %c0_184] : memref<8x256xf32, #tpu.memory_space<vmem>>, vector<8x256xf32>
    %c0_185 = arith.constant 0 : index
    %c0_186 = arith.constant 0 : index
    %377 = vector.load %arg4[%c0_185, %c0_186] : memref<8x4xf32, #tpu.memory_space<vmem>>, vector<8x4xf32>
    %c0_187 = arith.constant 0 : index
    %c0_188 = arith.constant 0 : index
    %378 = vector.load %arg5[%c0_187, %c0_188] : memref<8x1xf32, #tpu.memory_space<vmem>>, vector<8x1xf32>
    %379 = vector.extract_strided_slice %376 {offsets = [0, 0], sizes = [4, 256], strides = [1, 1]} : vector<8x256xf32> to vector<4x256xf32>
    %cst_189 = arith.constant dense<0.000000e+00> : vector<8x256xf32>
    %380 = tpu.matmul %377, %379, %cst_189 {dimension_numbers = #tpu.dot_dimension_numbers<[1], [0], [0], [1], [0, 0, 1, 1], [], []>} : vector<8x4xf32>, vector<4x256xf32>, vector<8x256xf32> -> vector<8x256xf32>
    %381 = vector.broadcast %378 : vector<8x1xf32> to vector<8x256xf32>
    %382 = arith.addf %380, %381 : vector<8x256xf32>
    %c0_190 = arith.constant 0 : index
    %c0_191 = arith.constant 0 : index
    %c0_192 = arith.constant 0 : index
    %383 = vector.load %arg6[%c0_190, %c0_191, %c0_192] : memref<2x8x256xf32, #tpu.memory_space<vmem>>, vector<1x8x256xf32>
    %384 = vector.shape_cast %383 : vector<1x8x256xf32> to vector<8x256xf32>
    %385 = vector.shape_cast %382 : vector<8x256xf32> to vector<1x8x256xf32>
    tpu.vector_store %arg6[%c0_190, %c0_191, %c0_192], %385 {strides = array<i32>} : memref<2x8x256xf32, #tpu.memory_space<vmem>>, vector<1x8x256xf32>,
    %386 = vector.extract_strided_slice %376 {offsets = [4, 0], sizes = [4, 256], strides = [1, 1]} : vector<8x256xf32> to vector<4x256xf32>
    %cst_193 = arith.constant dense<0.000000e+00> : vector<8x256xf32>
    %387 = tpu.matmul %377, %386, %cst_193 {dimension_numbers = #tpu.dot_dimension_numbers<[1], [0], [0], [1], [0, 0, 1, 1], [], []>} : vector<8x4xf32>, vector<4x256xf32>, vector<8x256xf32> -> vector<8x256xf32>
    %388 = vector.broadcast %378 : vector<8x1xf32> to vector<8x256xf32>
    %389 = arith.addf %387, %388 : vector<8x256xf32>
    %c1_194 = arith.constant 1 : index
    %c0_195 = arith.constant 0 : index
    %c0_196 = arith.constant 0 : index
    %390 = vector.load %arg6[%c1_194, %c0_195, %c0_196] : memref<2x8x256xf32, #tpu.memory_space<vmem>>, vector<1x8x256xf32>
    %391 = vector.shape_cast %390 : vector<1x8x256xf32> to vector<8x256xf32>
    %392 = vector.shape_cast %389 : vector<8x256xf32> to vector<1x8x256xf32>
    tpu.vector_store %arg6[%c1_194, %c0_195, %c0_196], %392 {strides = array<i32>} : memref<2x8x256xf32, #tpu.memory_space<vmem>>, vector<1x8x256xf32>,
    return
  }
  func.func @transform_0(%arg0: i32, %arg1: i32) -> (i32, i32, i32, i32) {
    %c0_i32 = arith.constant 0 : i32
    %c0_i32_0 = arith.constant 0 : i32
    %c0_i32_1 = arith.constant 0 : i32
    %c0_i32_2 = arith.constant 0 : i32
    return %arg0, %c0_i32, %c0_i32_0, %c0_i32_1 : i32, i32, i32, i32
  }
  func.func @transform_1(%arg0: i32, %arg1: i32) -> (i32, i32) {
    %c0_i32 = arith.constant 0 : i32
    %c0_i32_0 = arith.constant 0 : i32
    %c0_i32_1 = arith.constant 0 : i32
    return %c0_i32, %c0_i32_0 : i32, i32
  }
  func.func @transform_2(%arg0: i32, %arg1: i32) -> (i32, i32) {
    %c0_i32 = arith.constant 0 : i32
    %c0_i32_0 = arith.constant 0 : i32
    %c0_i32_1 = arith.constant 0 : i32
    return %c0_i32, %c0_i32_0 : i32, i32
  }
  func.func @transform_3(%arg0: i32, %arg1: i32) -> (i32, i32) {
    %c0_i32 = arith.constant 0 : i32
    %c0_i32_0 = arith.constant 0 : i32
    %c0_i32_1 = arith.constant 0 : i32
    return %c0_i32, %c0_i32_0 : i32, i32
  }
  func.func @transform_4(%arg0: i32, %arg1: i32) -> (i32, i32, i32) {
    %c0_i32 = arith.constant 0 : i32
    %c0_i32_0 = arith.constant 0 : i32
    return %arg0, %c0_i32, %arg1 : i32, i32, i32
  }
}

</mosaic_0001>

<bundles_post_ra>
// kernel: tpu_custom_call.1
= control target key start
LH: loop header
LB: loop body
LE: loop exit
PB: predicated region body
PF: predicated region fallthrough
CT: control target
= control target key end

     0   :  { %9 = vsyncpa [#allocation5], 0  ;;  %s4334_s0 = inlined_call_operand.hbm [shape: f32[2,4,16,16], index: 0, kind: input, shape index: {}]   ;;  %s4335_s1 = inlined_call_operand.hbm [shape: f32[8,49], index: 1, kind: input, shape index: {}]   ;;  %s4336_s2 = inlined_call_operand.hbm [shape: f32[8,4], index: 2, kind: input, shape index: {}]   ;;  %s4337_s3 = inlined_call_operand.hbm [shape: f32[8,1], index: 3, kind: input, shape index: {}]   ;;  %s4338_s4 = inlined_call_operand.hbm [shape: f32[2,8,256], index: 4, kind: output, shape index: {}]  }
   0x1   :  { %10 = vsyncpa [#allocation8], 0 }
   0x2   :  { %11 = vsyncpa [#allocation11], 0 }
   0x3   :  { %12 = vsyncpa [#allocation6], 0  ;;  %s2712_s15 = smov [#allocation7]   ;;  %s2713_s17 = smov [#allocation4]  }
   0x4   :  { %s31_s16 = sshll.u32 %s2712_s15, 4  ;;  %s18_s18 = sshll.u32 %s2713_s17, 4  ;;  %s32_s16 = int_to_ptr.vmem [resolvable:$true] %s31_s16  ;;  %s2830_s18 = int_to_ptr.vmem [resolvable:$true] %s18_s18 }
   0x5   :  { %s2594_s21 = scalar_lea.hbm %s4335_s1, 128 }
   0x6   :  { %p2595_p0 = scmp.ne.s32.totalorder %s4335_s1, %s2594_s21  ;;  %p2598_p1 = scmp.lt.u32.totalorder %s2594_s21, %s4335_s1 }
   0x8   :  { %p2600_p2 = pnand %p2598_p1, %p2595_p0 }
   0xa   :  { %2603 = shalt.err (!%p2600_p2)
}
   0xb   :  { %s2604_s26 = scalar_lea.vmem %s32_s16, 128  ;;  %p2609_p4 = scmp.lt.s32.totalorder %s32_s16, %s32_s16 }
   0xc   :  { %p2605_p3 = scmp.ne.s32.totalorder %s32_s16, %s2604_s26  ;;  %p2610_p5 = scmp.lt.s32.totalorder %s2604_s26, %s2604_s26 }
   0xe   :  { %p2611_p6 = por %p2610_p5, %p2609_p4 }
  0x10   :  { %p2612_p7 = pnand %p2611_p6, %p2605_p3 }
  0x12   :  { %2615 = shalt.err (!%p2612_p7)
}
  0x13   :  { %34 = dma.hbm_to_vmem [thread:$0]  %s4335_s1, 128, %s32_s16, [#allocation8]  }
  0x14   :  { %s2616_s5 = scalar_lea.hbm %s4334_s0, 2048 }
  0x15   :  { %p2617_p8 = scmp.ne.s32.totalorder %s4334_s0, %s2616_s5  ;;  %p2620_p9 = scmp.lt.u32.totalorder %s2616_s5, %s4334_s0 }
  0x17   :  { %p2622_p10 = pnand %p2620_p9, %p2617_p8 }
  0x19   :  { %2625 = shalt.err (!%p2622_p10)
}
  0x1a   :  { %s2626_s10 = scalar_lea.vmem %s2830_s18, 2048  ;;  %p2631_p12 = scmp.lt.s32.totalorder %s2830_s18, %s2830_s18 }
  0x1b   :  { %p2627_p11 = scmp.ne.s32.totalorder %s2830_s18, %s2626_s10  ;;  %p2632_p13 = scmp.lt.s32.totalorder %s2626_s10, %s2626_s10 }
  0x1d   :  { %p2633_p0 = por %p2632_p13, %p2631_p12 }
  0x1f   :  { %p2634_p1 = pnand %p2633_p0, %p2627_p11 }
  0x21   :  { %2637 = shalt.err (!%p2634_p1)
}
  0x22   :  { %s2714_s1 = smov 128   ;;  %s2715_s11 = smov 8  }
  0x23   :  { %24 = dma.hbm_to_vmem [thread:$0]  %s4334_s0, 2048, %s2830_s18, [#allocation5], %s2714_s1, %s2714_s1, %s2715_s11  }
  0x24   :  { %s2716_s14 = smov [#allocation9]   ;;  %s2717_s16 = smov [#allocation10]  }
  0x25   :  { %s41_s15 = sshll.u32 %s2716_s14, 4  ;;  %s51_s17 = sshll.u32 %s2717_s16, 4  ;;  %s42_s15 = int_to_ptr.vmem [resolvable:$true] %s41_s15  ;;  %s52_s17 = int_to_ptr.vmem [resolvable:$true] %s51_s17 }
  0x26   :  { %s2638_s21 = scalar_lea.hbm %s4336_s2, 128 }
  0x27   :  { %p2639_p2 = scmp.ne.s32.totalorder %s4336_s2, %s2638_s21  ;;  %p2642_p3 = scmp.lt.u32.totalorder %s2638_s21, %s4336_s2 }
  0x29   :  { %p2644_p4 = pnand %p2642_p3, %p2639_p2 }
  0x2b   :  { %2647 = shalt.err (!%p2644_p4)
}
  0x2c   :  { %s2648_s0 = scalar_lea.vmem %s42_s15, 128  ;;  %p2653_p6 = scmp.lt.s32.totalorder %s42_s15, %s42_s15 }
  0x2d   :  { %p2649_p5 = scmp.ne.s32.totalorder %s42_s15, %s2648_s0  ;;  %p2654_p7 = scmp.lt.s32.totalorder %s2648_s0, %s2648_s0 }
  0x2f   :  { %p2655_p8 = por %p2654_p7, %p2653_p6 }
  0x31   :  { %p2656_p9 = pnand %p2655_p8, %p2649_p5 }
  0x33   :  { %2659 = shalt.err (!%p2656_p9)
}
  0x34   :  { %44 = dma.hbm_to_vmem [thread:$0]  %s4336_s2, 128, %s42_s15, [#allocation8]  }
  0x35   :  { %s2660_s29 = scalar_lea.hbm %s4337_s3, 128 }
  0x36   :  { %p2661_p10 = scmp.ne.s32.totalorder %s4337_s3, %s2660_s29  ;;  %p2664_p11 = scmp.lt.u32.totalorder %s2660_s29, %s4337_s3 }
  0x38   :  { %p2666_p12 = pnand %p2664_p11, %p2661_p10 }
  0x3a   :  { %2669 = shalt.err (!%p2666_p12)
}
  0x3b   :  { %s2670_s8 = scalar_lea.vmem %s52_s17, 128  ;;  %p2675_p0 = scmp.lt.s32.totalorder %s52_s17, %s52_s17 }
  0x3c   :  { %p2671_p13 = scmp.ne.s32.totalorder %s52_s17, %s2670_s8  ;;  %p2676_p1 = scmp.lt.s32.totalorder %s2670_s8, %s2670_s8 }
  0x3e   :  { %p2677_p2 = por %p2676_p1, %p2675_p0 }
  0x40   :  { %p2678_p3 = pnand %p2677_p2, %p2671_p13 }
  0x42   :  { %2681 = shalt.err (!%p2678_p3)
}
  0x43   :  { %54 = dma.hbm_to_vmem [thread:$0]  %s4337_s3, 128, %s52_s17, [#allocation11]  }
  0x44   :  { %2704 = dma.done.wait [#allocation5], 2048  }
  0x45   :  { %2705 = vsyncadd [#allocation5], 4294965248 }
  0x46   :  { %2706 = dma.done.wait [#allocation8], 256  }
  0x47   :  { %2707 = vsyncadd [#allocation8], 4294967040 }
  0x48   :  { %2708 = dma.done.wait [#allocation11], 128  }
  0x49   :  { %2709 = vsyncadd [#allocation11], 4294967168  ;;  %v2718_v0 = vmov 1   ;;  %v2719_v1 = vmov 0   ;;  %vm81_vm0 = vcmask 1041409   ;;  %v2720_v2 = vmov 0.0  }
  0x4a   :  { %2539 = vset.pattern.permute.xlu1 %v2718_v0  ;;  %2538 = vset.pattern.permute.xlu0 %v2719_v1  ;;  %67 = vst [vmem:[#allocation2] sm:$0xff] %v2720_v2  ;;  %71 = vst [vmem:[#allocation2 + $0x20] sm:$0xff] %v2720_v2  ;;  %vm84_vm1 = vcmask 1042434   ;;  %vm87_vm2 = vcmask 1043459   ;;  %vm105_vm3 = vcmask 1045509   ;;  %vm108_vm4 = vcmask 1046534  }
  0x4b   :  { %68 = vst [vmem:[#allocation2 + $0x8] sm:$0xff] %v2720_v2  ;;  %69 = vst [vmem:[#allocation2 + $0x10] sm:$0xff] %v2720_v2  ;;  %2331 = vmatprep.mubr.f32.mxu0 %v2720_v2  ;;  %2410 = vmatprep.mubr.f32.mxu1 %v2720_v2  ;;  %v118_v3 = vld [vmem:[#allocation4 + $0x1] sm:$0x1]  ;;  %v119_v4 = vld [vmem:[#allocation4 + $0x11] sm:$0x1] }
  0x4c   :  { %70 = vst [vmem:[#allocation2 + $0x18] sm:$0xff] %v2720_v2  ;;  %v120_v5 = vld [vmem:[#allocation4 + $0x21] sm:$0x1]  ;;  %v121_v6 = vld [vmem:[#allocation4 + $0x31] sm:$0x1]  ;;  %v126_v7 = vrot.slane %v119_v4, 7 }
  0x4d   :  { %v128_v8 = vrot.slane %v120_v5, 6  ;;  %v72_v9 = vld [vmem:[#allocation4] sm:$0x1]  ;;  %v130_v10 = vrot.slane %v121_v6, 5  ;;  %v73_v11 = vld [vmem:[#allocation4 + $0x10] sm:$0x1] }
  0x4e   :  { %v74_v12 = vld [vmem:[#allocation4 + $0x20] sm:$0x1]  ;;  %vm111_vm5 = vcmask 1047559   ;;  %v127_v13 = vsel %vm81_vm0, %v126_v7, %v118_v3  ;;  %v75_v14 = vld [vmem:[#allocation4 + $0x30] sm:$0x1]  ;;  %v80_v15 = vrot.slane %v73_v11, 7 }
  0x4f   :  { %v83_v16 = vrot.slane %v74_v12, 6  ;;  %v137_v17 = vld [vmem:[#allocation4 + $0x41] sm:$0x1]  ;;  %v129_v18 = vsel %vm84_vm1, %v128_v8, %v127_v13  ;;  %v86_v19 = vrot.slane %v75_v14, 5  ;;  %v138_v20 = vld [vmem:[#allocation4 + $0x51] sm:$0x1] }
  0x50   :  { %v139_v21 = vld [vmem:[#allocation4 + $0x61] sm:$0x1]  ;;  %v145_v22 = vrot.slane %v137_v17, 4  ;;  %v131_v23 = vsel %vm87_vm2, %v130_v10, %v129_v18  ;;  %v82_v24 = vsel %vm81_vm0, %v80_v15, %v72_v9  ;;  %v140_v25 = vld [vmem:[#allocation4 + $0x71] sm:$0x1]  ;;  %v146_v26 = vrot.slane %v138_v20, 3 }
  0x51   :  { %v148_v27 = vrot.slane %v139_v21, 2  ;;  %v95_v28 = vld [vmem:[#allocation4 + $0x40] sm:$0x1]  ;;  %s2721_s3 = smov 99   ;;  %v85_v29 = vsel %vm84_vm1, %v83_v16, %v82_v24  ;;  %v150_v30 = vrot.slane %v140_v25, 1  ;;  %s2722_s10 = smov 75  }
  0x52   :  { %132 = vrot.lane.b32.xlu1 %v131_v23, %s2721_s3  ;;  %v96_v31 = vld [vmem:[#allocation4 + $0x50] sm:$0x1]  ;;  %v97_v32 = vld [vmem:[#allocation4 + $0x60] sm:$0x1]  ;;  %v103_v33 = vrot.slane %v95_v28, 4  ;;  %v88_v34 = vsel %vm87_vm2, %v86_v19, %v85_v29  ;;  %v147_v35 = vsel %vm105_vm3, %v146_v26, %v145_v22  ;;  %s2723_s1 = smov 123  }
  0x53   :  { %v98_v36 = vld [vmem:[#allocation4 + $0x70] sm:$0x1]  ;;  %v104_v37 = vrot.slane %v96_v31, 3  ;;  %v107_v38 = vrot.slane %v97_v32, 2  ;;  %v178_v39 = vld [vmem:[#allocation4 + $0x42] sm:$0x1]  ;;  %89 = vrot.lane.b32.xlu0 %v88_v34, %s2722_s10  ;;  %v149_v40 = vsel %vm108_vm4, %v148_v27, %v147_v35 }
  0x54   :  { %v110_v41 = vrot.slane %v98_v36, 1  ;;  %v179_v42 = vld [vmem:[#allocation4 + $0x52] sm:$0x1]  ;;  %v180_v43 = vld [vmem:[#allocation4 + $0x62] sm:$0x1]  ;;  %v186_v44 = vrot.slane %v178_v39, 4  ;;  %v151_v45 = vsel %vm111_vm5, %v150_v30, %v149_v40 }
  0x55   :  { %v106_v46 = vsel %vm105_vm3, %v104_v37, %v103_v33  ;;  %v181_v47 = vld [vmem:[#allocation4 + $0x72] sm:$0x1]  ;;  %v187_v48 = vrot.slane %v179_v42, 3  ;;  %v189_v49 = vrot.slane %v180_v43, 2  ;;  %v157_v50 = vld [vmem:[#allocation4 + $0x2] sm:$0x1] }
  0x56   :  { %152 = vrot.lane.b32.xlu1 %v151_v45, %s2721_s3  ;;  %v109_v51 = vsel %vm108_vm4, %v107_v38, %v106_v46  ;;  %v191_v52 = vrot.slane %v181_v47, 1  ;;  %v158_v53 = vld [vmem:[#allocation4 + $0x12] sm:$0x1]  ;;  %v159_v54 = vld [vmem:[#allocation4 + $0x22] sm:$0x1]  ;;  %s2724_s12 = smov 19  }
  0x57   :  { %v112_v55 = vsel %vm111_vm5, %v110_v41, %v109_v51  ;;  %v188_v56 = vsel %vm105_vm3, %v187_v48, %v186_v44  ;;  %v160_v57 = vld [vmem:[#allocation4 + $0x32] sm:$0x1]  ;;  %v165_v58 = vrot.slane %v158_v53, 7  ;;  %v167_v59 = vrot.slane %v159_v54, 6  ;;  %v219_v60 = vld [vmem:[#allocation4 + $0x43] sm:$0x1] }
  0x58   :  { %113 = vrot.lane.b32.xlu0 %v112_v55, %s2722_s10  ;;  %v190_v61 = vsel %vm108_vm4, %v189_v49, %v188_v56  ;;  %v169_v62 = vrot.slane %v160_v57, 5  ;;  %v220_v63 = vld [vmem:[#allocation4 + $0x53] sm:$0x1]  ;;  %v221_v0 = vld [vmem:[#allocation4 + $0x63] sm:$0x1]  ;;  %v227_v2 = vrot.slane %v219_v60, 4 }
  0x59   :  { %v192_v3 = vsel %vm111_vm5, %v191_v52, %v190_v61  ;;  %v166_v4 = vsel %vm81_vm0, %v165_v58, %v157_v50  ;;  %v222_v5 = vld [vmem:[#allocation4 + $0x73] sm:$0x1]  ;;  %v228_v6 = vrot.slane %v220_v63, 3  ;;  %v230_v7 = vrot.slane %v221_v0, 2  ;;  %v200_v8 = vld [vmem:[#allocation4 + $0x3] sm:$0x1] }
  0x5a   :  { %193 = vrot.lane.b32.xlu1 %v192_v3, %s2723_s1  ;;  %v168_v9 = vsel %vm84_vm1, %v167_v59, %v166_v4  ;;  %v232_v10 = vrot.slane %v222_v5, 1  ;;  %v201_v11 = vld [vmem:[#allocation4 + $0x13] sm:$0x1]  ;;  %v202_v12 = vld [vmem:[#allocation4 + $0x23] sm:$0x1]  ;;  %s2725_s13 = smov 43  }
  0x5b   :  { %v170_v13 = vsel %vm87_vm2, %v169_v62, %v168_v9  ;;  %v229_v14 = vsel %vm105_vm3, %v228_v6, %v227_v2  ;;  %v203_v15 = vld [vmem:[#allocation4 + $0x33] sm:$0x1]  ;;  %v208_v16 = vrot.slane %v201_v11, 7  ;;  %v210_v17 = vrot.slane %v202_v12, 6  ;;  %v258_v18 = vld [vmem:[#allocation4 + $0x44] sm:$0x1] }
  0x5c   :  { %171 = vrot.lane.b32.xlu0 %v170_v13, %s2723_s1  ;;  %v231_v19 = vsel %vm108_vm4, %v230_v7, %v229_v14  ;;  %v212_v20 = vrot.slane %v203_v15, 5  ;;  %v259_v21 = vld [vmem:[#allocation4 + $0x54] sm:$0x1]  ;;  %v260_v22 = vld [vmem:[#allocation4 + $0x64] sm:$0x1]  ;;  %v266_v23 = vrot.slane %v258_v18, 4 }
  0x5d   :  { %v233_v24 = vsel %vm111_vm5, %v232_v10, %v231_v19  ;;  %v209_v25 = vsel %vm81_vm0, %v208_v16, %v200_v8  ;;  %v261_v26 = vld [vmem:[#allocation4 + $0x74] sm:$0x1]  ;;  %v267_v27 = vrot.slane %v259_v21, 3  ;;  %v269_v28 = vrot.slane %v260_v22, 2  ;;  %v239_v29 = vld [vmem:[#allocation4 + $0x4] sm:$0x1] }
  0x5e   :  { %234 = vrot.lane.b32.xlu1 %v233_v24, %s2724_s12  ;;  %v211_v30 = vsel %vm84_vm1, %v210_v17, %v209_v25  ;;  %v271_v31 = vrot.slane %v261_v26, 1  ;;  %v240_v32 = vld [vmem:[#allocation4 + $0x14] sm:$0x1]  ;;  %v241_v33 = vld [vmem:[#allocation4 + $0x24] sm:$0x1]  ;;  %s2726_s14 = smov 67  }
  0x5f   :  { %v213_v34 = vsel %vm87_vm2, %v212_v20, %v211_v30  ;;  %v268_v35 = vsel %vm105_vm3, %v267_v27, %v266_v23  ;;  %v242_v36 = vld [vmem:[#allocation4 + $0x34] sm:$0x1]  ;;  %v247_v37 = vrot.slane %v240_v32, 7  ;;  %v249_v38 = vrot.slane %v241_v33, 6  ;;  %v297_v39 = vld [vmem:[#allocation4 + $0x45] sm:$0x1] }
  0x60   :  { %214 = vrot.lane.b32.xlu0 %v213_v34, %s2724_s12  ;;  %v270_v40 = vsel %vm108_vm4, %v269_v28, %v268_v35  ;;  %v251_v41 = vrot.slane %v242_v36, 5  ;;  %v298_v42 = vld [vmem:[#allocation4 + $0x55] sm:$0x1]  ;;  %v299_v43 = vld [vmem:[#allocation4 + $0x65] sm:$0x1]  ;;  %v305_v44 = vrot.slane %v297_v39, 4 }
  0x61   :  { %v272_v45 = vsel %vm111_vm5, %v271_v31, %v270_v40  ;;  %v248_v46 = vsel %vm81_vm0, %v247_v37, %v239_v29  ;;  %v300_v47 = vld [vmem:[#allocation4 + $0x75] sm:$0x1]  ;;  %v306_v48 = vrot.slane %v298_v42, 3  ;;  %v308_v49 = vrot.slane %v299_v43, 2  ;;  %v278_v50 = vld [vmem:[#allocation4 + $0x5] sm:$0x1] }
  0x62   :  { %273 = vrot.lane.b32.xlu1 %v272_v45, %s2725_s13  ;;  %v250_v51 = vsel %vm84_vm1, %v249_v38, %v248_v46  ;;  %v310_v52 = vrot.slane %v300_v47, 1  ;;  %v279_v53 = vld [vmem:[#allocation4 + $0x15] sm:$0x1]  ;;  %v280_v54 = vld [vmem:[#allocation4 + $0x25] sm:$0x1]  ;;  %s2727_s15 = smov 91  }
  0x63   :  { %v252_v55 = vsel %vm87_vm2, %v251_v41, %v250_v51  ;;  %v307_v56 = vsel %vm105_vm3, %v306_v48, %v305_v44  ;;  %v281_v57 = vld [vmem:[#allocation4 + $0x35] sm:$0x1]  ;;  %v286_v58 = vrot.slane %v279_v53, 7  ;;  %v288_v59 = vrot.slane %v280_v54, 6  ;;  %v336_v60 = vld [vmem:[#allocation4 + $0x46] sm:$0x1] }
  0x64   :  { %253 = vrot.lane.b32.xlu0 %v252_v55, %s2725_s13  ;;  %v309_v61 = vsel %vm108_vm4, %v308_v49, %v307_v56  ;;  %v290_v62 = vrot.slane %v281_v57, 5  ;;  %v337_v63 = vld [vmem:[#allocation4 + $0x56] sm:$0x1]  ;;  %v338_v0 = vld [vmem:[#allocation4 + $0x66] sm:$0x1]  ;;  %v344_v2 = vrot.slane %v336_v60, 4 }
  0x65   :  { %v311_v3 = vsel %vm111_vm5, %v310_v52, %v309_v61  ;;  %v287_v4 = vsel %vm81_vm0, %v286_v58, %v278_v50  ;;  %v339_v5 = vld [vmem:[#allocation4 + $0x76] sm:$0x1]  ;;  %v345_v6 = vrot.slane %v337_v63, 3  ;;  %v347_v7 = vrot.slane %v338_v0, 2  ;;  %v317_v8 = vld [vmem:[#allocation4 + $0x6] sm:$0x1] }
  0x66   :  { %312 = vrot.lane.b32.xlu1 %v311_v3, %s2726_s14  ;;  %v289_v9 = vsel %vm84_vm1, %v288_v59, %v287_v4  ;;  %v349_v10 = vrot.slane %v339_v5, 1  ;;  %v318_v11 = vld [vmem:[#allocation4 + $0x16] sm:$0x1]  ;;  %v319_v12 = vld [vmem:[#allocation4 + $0x26] sm:$0x1]  ;;  %s2728_s16 = smov 115  }
  0x67   :  { %v291_v13 = vsel %vm87_vm2, %v290_v62, %v289_v9  ;;  %v346_v14 = vsel %vm105_vm3, %v345_v6, %v344_v2  ;;  %v320_v15 = vld [vmem:[#allocation4 + $0x36] sm:$0x1]  ;;  %v325_v16 = vrot.slane %v318_v11, 7  ;;  %v327_v17 = vrot.slane %v319_v12, 6  ;;  %v377_v18 = vld [vmem:[#allocation4 + $0x47] sm:$0x1] }
  0x68   :  { %292 = vrot.lane.b32.xlu0 %v291_v13, %s2726_s14  ;;  %v348_v19 = vsel %vm108_vm4, %v347_v7, %v346_v14  ;;  %v329_v20 = vrot.slane %v320_v15, 5  ;;  %v378_v21 = vld [vmem:[#allocation4 + $0x57] sm:$0x1]  ;;  %v379_v22 = vld [vmem:[#allocation4 + $0x67] sm:$0x1]  ;;  %v385_v23 = vrot.slane %v377_v18, 4 }
  0x69   :  { %v350_v24 = vsel %vm111_vm5, %v349_v10, %v348_v19  ;;  %v326_v25 = vsel %vm81_vm0, %v325_v16, %v317_v8  ;;  %v380_v26 = vld [vmem:[#allocation4 + $0x77] sm:$0x1]  ;;  %v386_v27 = vrot.slane %v378_v21, 3  ;;  %v388_v28 = vrot.slane %v379_v22, 2  ;;  %v356_v29 = vld [vmem:[#allocation4 + $0x7] sm:$0x1] }
  0x6a   :  { %351 = vrot.lane.b32.xlu1 %v350_v24, %s2727_s15  ;;  %v328_v30 = vsel %vm84_vm1, %v327_v17, %v326_v25  ;;  %v390_v31 = vrot.slane %v380_v26, 1  ;;  %v357_v32 = vld [vmem:[#allocation4 + $0x17] sm:$0x1]  ;;  %v358_v33 = vld [vmem:[#allocation4 + $0x27] sm:$0x1]  ;;  %s2729_s17 = smov 11  }
  0x6b   :  { %v330_v34 = vsel %vm87_vm2, %v329_v20, %v328_v30  ;;  %v387_v35 = vsel %vm105_vm3, %v386_v27, %v385_v23  ;;  %v359_v36 = vld [vmem:[#allocation4 + $0x37] sm:$0x1]  ;;  %v364_v37 = vrot.slane %v357_v32, 7  ;;  %v366_v38 = vrot.slane %v358_v33, 6  ;;  %v418_v39 = vld [vmem:[#allocation4 + $0x48] sm:$0x1] }
  0x6c   :  { %331 = vrot.lane.b32.xlu0 %v330_v34, %s2727_s15  ;;  %v389_v40 = vsel %vm108_vm4, %v388_v28, %v387_v35  ;;  %v368_v41 = vrot.slane %v359_v36, 5  ;;  %v419_v42 = vld [vmem:[#allocation4 + $0x58] sm:$0x1]  ;;  %v420_v43 = vld [vmem:[#allocation4 + $0x68] sm:$0x1]  ;;  %v426_v44 = vrot.slane %v418_v39, 4 }
  0x6d   :  { %v391_v45 = vsel %vm111_vm5, %v390_v31, %v389_v40  ;;  %v365_v46 = vsel %vm81_vm0, %v364_v37, %v356_v29  ;;  %v421_v47 = vld [vmem:[#allocation4 + $0x78] sm:$0x1]  ;;  %v427_v48 = vrot.slane %v419_v42, 3  ;;  %v429_v49 = vrot.slane %v420_v43, 2  ;;  %v399_v50 = vld [vmem:[#allocation4 + $0x8] sm:$0x1] }
  0x6e   :  { %392 = vrot.lane.b32.xlu1 %v391_v45, %s2728_s16  ;;  %v367_v51 = vsel %vm84_vm1, %v366_v38, %v365_v46  ;;  %v431_v52 = vrot.slane %v421_v47, 1  ;;  %v400_v53 = vld [vmem:[#allocation4 + $0x18] sm:$0x1]  ;;  %v401_v54 = vld [vmem:[#allocation4 + $0x28] sm:$0x1]  ;;  %s2730_s19 = smov 35  }
  0x6f   :  { %v369_v55 = vsel %vm87_vm2, %v368_v41, %v367_v51  ;;  %v428_v56 = vsel %vm105_vm3, %v427_v48, %v426_v44  ;;  %v402_v57 = vld [vmem:[#allocation4 + $0x38] sm:$0x1]  ;;  %v407_v58 = vrot.slane %v400_v53, 7  ;;  %v409_v59 = vrot.slane %v401_v54, 6  ;;  %v457_v60 = vld [vmem:[#allocation4 + $0x49] sm:$0x1] }
  0x70   :  { %370 = vrot.lane.b32.xlu0 %v369_v55, %s2728_s16  ;;  %v430_v61 = vsel %vm108_vm4, %v429_v49, %v428_v56  ;;  %v411_v62 = vrot.slane %v402_v57, 5  ;;  %v458_v63 = vld [vmem:[#allocation4 + $0x59] sm:$0x1]  ;;  %v459_v0 = vld [vmem:[#allocation4 + $0x69] sm:$0x1]  ;;  %v465_v2 = vrot.slane %v457_v60, 4 }
  0x71   :  { %v432_v3 = vsel %vm111_vm5, %v431_v52, %v430_v61  ;;  %v408_v4 = vsel %vm81_vm0, %v407_v58, %v399_v50  ;;  %v460_v5 = vld [vmem:[#allocation4 + $0x79] sm:$0x1]  ;;  %v466_v6 = vrot.slane %v458_v63, 3  ;;  %v468_v7 = vrot.slane %v459_v0, 2  ;;  %v438_v8 = vld [vmem:[#allocation4 + $0x9] sm:$0x1] }
  0x72   :  { %433 = vrot.lane.b32.xlu1 %v432_v3, %s2729_s17  ;;  %v410_v9 = vsel %vm84_vm1, %v409_v59, %v408_v4  ;;  %v470_v10 = vrot.slane %v460_v5, 1  ;;  %v439_v11 = vld [vmem:[#allocation4 + $0x19] sm:$0x1]  ;;  %v440_v12 = vld [vmem:[#allocation4 + $0x29] sm:$0x1]  ;;  %s2731_s20 = smov 59  }
  0x73   :  { %v412_v13 = vsel %vm87_vm2, %v411_v62, %v410_v9  ;;  %v467_v14 = vsel %vm105_vm3, %v466_v6, %v465_v2  ;;  %v441_v15 = vld [vmem:[#allocation4 + $0x39] sm:$0x1]  ;;  %v446_v16 = vrot.slane %v439_v11, 7  ;;  %v448_v17 = vrot.slane %v440_v12, 6  ;;  %v496_v18 = vld [vmem:[#allocation4 + $0x4a] sm:$0x1] }
  0x74   :  { %413 = vrot.lane.b32.xlu0 %v412_v13, %s2729_s17  ;;  %v469_v19 = vsel %vm108_vm4, %v468_v7, %v467_v14  ;;  %v450_v20 = vrot.slane %v441_v15, 5  ;;  %v497_v21 = vld [vmem:[#allocation4 + $0x5a] sm:$0x1]  ;;  %v498_v22 = vld [vmem:[#allocation4 + $0x6a] sm:$0x1]  ;;  %v504_v23 = vrot.slane %v496_v18, 4 }
  0x75   :  { %v471_v24 = vsel %vm111_vm5, %v470_v10, %v469_v19  ;;  %v447_v25 = vsel %vm81_vm0, %v446_v16, %v438_v8  ;;  %v499_v26 = vld [vmem:[#allocation4 + $0x7a] sm:$0x1]  ;;  %v505_v27 = vrot.slane %v497_v21, 3  ;;  %v507_v28 = vrot.slane %v498_v22, 2  ;;  %v477_v29 = vld [vmem:[#allocation4 + $0xa] sm:$0x1] }
  0x76   :  { %472 = vrot.lane.b32.xlu1 %v471_v24, %s2730_s19  ;;  %v449_v30 = vsel %vm84_vm1, %v448_v17, %v447_v25  ;;  %v509_v31 = vrot.slane %v499_v26, 1  ;;  %v478_v32 = vld [vmem:[#allocation4 + $0x1a] sm:$0x1]  ;;  %v479_v33 = vld [vmem:[#allocation4 + $0x2a] sm:$0x1]  ;;  %s2732_s21 = smov 83  }
  0x77   :  { %v451_v34 = vsel %vm87_vm2, %v450_v20, %v449_v30  ;;  %v506_v35 = vsel %vm105_vm3, %v505_v27, %v504_v23  ;;  %v480_v36 = vld [vmem:[#allocation4 + $0x3a] sm:$0x1]  ;;  %v485_v37 = vrot.slane %v478_v32, 7  ;;  %v487_v38 = vrot.slane %v479_v33, 6  ;;  %v535_v39 = vld [vmem:[#allocation4 + $0x4b] sm:$0x1] }
  0x78   :  { %452 = vrot.lane.b32.xlu0 %v451_v34, %s2730_s19  ;;  %v508_v40 = vsel %vm108_vm4, %v507_v28, %v506_v35  ;;  %v489_v41 = vrot.slane %v480_v36, 5  ;;  %v536_v42 = vld [vmem:[#allocation4 + $0x5b] sm:$0x1]  ;;  %v537_v43 = vld [vmem:[#allocation4 + $0x6b] sm:$0x1]  ;;  %v543_v44 = vrot.slane %v535_v39, 4 }
  0x79   :  { %v510_v45 = vsel %vm111_vm5, %v509_v31, %v508_v40  ;;  %v486_v46 = vsel %vm81_vm0, %v485_v37, %v477_v29  ;;  %v538_v47 = vld [vmem:[#allocation4 + $0x7b] sm:$0x1]  ;;  %v544_v48 = vrot.slane %v536_v42, 3  ;;  %v546_v49 = vrot.slane %v537_v43, 2  ;;  %v516_v50 = vld [vmem:[#allocation4 + $0xb] sm:$0x1] }
  0x7a   :  { %511 = vrot.lane.b32.xlu1 %v510_v45, %s2731_s20  ;;  %v488_v51 = vsel %vm84_vm1, %v487_v38, %v486_v46  ;;  %v548_v52 = vrot.slane %v538_v47, 1  ;;  %v517_v53 = vld [vmem:[#allocation4 + $0x1b] sm:$0x1]  ;;  %v518_v54 = vld [vmem:[#allocation4 + $0x2b] sm:$0x1]  ;;  %s2733_s22 = smov 107  }
  0x7b   :  { %v490_v55 = vsel %vm87_vm2, %v489_v41, %v488_v51  ;;  %v545_v56 = vsel %vm105_vm3, %v544_v48, %v543_v44  ;;  %v519_v57 = vld [vmem:[#allocation4 + $0x3b] sm:$0x1]  ;;  %v524_v58 = vrot.slane %v517_v53, 7  ;;  %v526_v59 = vrot.slane %v518_v54, 6  ;;  %v574_v60 = vld [vmem:[#allocation4 + $0x4c] sm:$0x1] }
  0x7c   :  { %491 = vrot.lane.b32.xlu0 %v490_v55, %s2731_s20  ;;  %v547_v61 = vsel %vm108_vm4, %v546_v49, %v545_v56  ;;  %v528_v62 = vrot.slane %v519_v57, 5  ;;  %v575_v63 = vld [vmem:[#allocation4 + $0x5c] sm:$0x1]  ;;  %v576_v0 = vld [vmem:[#allocation4 + $0x6c] sm:$0x1]  ;;  %v582_v2 = vrot.slane %v574_v60, 4 }
  0x7d   :  { %v549_v3 = vsel %vm111_vm5, %v548_v52, %v547_v61  ;;  %v525_v4 = vsel %vm81_vm0, %v524_v58, %v516_v50  ;;  %v577_v5 = vld [vmem:[#allocation4 + $0x7c] sm:$0x1]  ;;  %v583_v6 = vrot.slane %v575_v63, 3  ;;  %v585_v7 = vrot.slane %v576_v0, 2  ;;  %v555_v8 = vld [vmem:[#allocation4 + $0xc] sm:$0x1] }
  0x7e   :  { %550 = vrot.lane.b32.xlu1 %v549_v3, %s2732_s21  ;;  %v527_v9 = vsel %vm84_vm1, %v526_v59, %v525_v4  ;;  %v587_v10 = vrot.slane %v577_v5, 1  ;;  %v556_v11 = vld [vmem:[#allocation4 + $0x1c] sm:$0x1]  ;;  %v557_v12 = vld [vmem:[#allocation4 + $0x2c] sm:$0x1]  ;;  %s2734_s23 = smov 3  }
  0x7f   :  { %v529_v13 = vsel %vm87_vm2, %v528_v62, %v527_v9  ;;  %v584_v14 = vsel %vm105_vm3, %v583_v6, %v582_v2  ;;  %v558_v15 = vld [vmem:[#allocation4 + $0x3c] sm:$0x1]  ;;  %v563_v16 = vrot.slane %v556_v11, 7  ;;  %v565_v17 = vrot.slane %v557_v12, 6  ;;  %v613_v18 = vld [vmem:[#allocation4 + $0x4d] sm:$0x1] }
  0x80   :  { %530 = vrot.lane.b32.xlu0 %v529_v13, %s2732_s21  ;;  %v586_v19 = vsel %vm108_vm4, %v585_v7, %v584_v14  ;;  %v567_v20 = vrot.slane %v558_v15, 5  ;;  %v614_v21 = vld [vmem:[#allocation4 + $0x5d] sm:$0x1]  ;;  %v615_v22 = vld [vmem:[#allocation4 + $0x6d] sm:$0x1]  ;;  %v621_v23 = vrot.slane %v613_v18, 4 }
  0x81   :  { %v588_v24 = vsel %vm111_vm5, %v587_v10, %v586_v19  ;;  %v564_v25 = vsel %vm81_vm0, %v563_v16, %v555_v8  ;;  %v616_v26 = vld [vmem:[#allocation4 + $0x7d] sm:$0x1]  ;;  %v622_v27 = vrot.slane %v614_v21, 3  ;;  %v624_v28 = vrot.slane %v615_v22, 2  ;;  %v594_v29 = vld [vmem:[#allocation4 + $0xd] sm:$0x1] }
  0x82   :  { %589 = vrot.lane.b32.xlu1 %v588_v24, %s2733_s22  ;;  %v566_v30 = vsel %vm84_vm1, %v565_v17, %v564_v25  ;;  %v626_v31 = vrot.slane %v616_v26, 1  ;;  %v595_v32 = vld [vmem:[#allocation4 + $0x1d] sm:$0x1]  ;;  %v596_v33 = vld [vmem:[#allocation4 + $0x2d] sm:$0x1]  ;;  %s2735_s24 = smov 27  }
  0x83   :  { %v568_v34 = vsel %vm87_vm2, %v567_v20, %v566_v30  ;;  %v623_v35 = vsel %vm105_vm3, %v622_v27, %v621_v23  ;;  %v597_v36 = vld [vmem:[#allocation4 + $0x3d] sm:$0x1]  ;;  %v602_v37 = vrot.slane %v595_v32, 7  ;;  %v604_v38 = vrot.slane %v596_v33, 6  ;;  %v652_v39 = vld [vmem:[#allocation4 + $0x4e] sm:$0x1] }
  0x84   :  { %569 = vrot.lane.b32.xlu0 %v568_v34, %s2733_s22  ;;  %v625_v40 = vsel %vm108_vm4, %v624_v28, %v623_v35  ;;  %v606_v41 = vrot.slane %v597_v36, 5  ;;  %v653_v42 = vld [vmem:[#allocation4 + $0x5e] sm:$0x1]  ;;  %v654_v43 = vld [vmem:[#allocation4 + $0x6e] sm:$0x1]  ;;  %v660_v44 = vrot.slane %v652_v39, 4 }
  0x85   :  { %v627_v45 = vsel %vm111_vm5, %v626_v31, %v625_v40  ;;  %v603_v46 = vsel %vm81_vm0, %v602_v37, %v594_v29  ;;  %v655_v47 = vld [vmem:[#allocation4 + $0x7e] sm:$0x1]  ;;  %v661_v48 = vrot.slane %v653_v42, 3  ;;  %v663_v49 = vrot.slane %v654_v43, 2  ;;  %v633_v50 = vld [vmem:[#allocation4 + $0xe] sm:$0x1] }
  0x86   :  { %628 = vrot.lane.b32.xlu1 %v627_v45, %s2734_s23  ;;  %v605_v51 = vsel %vm84_vm1, %v604_v38, %v603_v46  ;;  %v665_v52 = vrot.slane %v655_v47, 1  ;;  %v634_v53 = vld [vmem:[#allocation4 + $0x1e] sm:$0x1]  ;;  %v635_v54 = vld [vmem:[#allocation4 + $0x2e] sm:$0x1]  ;;  %s2736_s25 = smov 51  }
  0x87   :  { %v607_v55 = vsel %vm87_vm2, %v606_v41, %v605_v51  ;;  %v662_v56 = vsel %vm105_vm3, %v661_v48, %v660_v44  ;;  %v636_v57 = vld [vmem:[#allocation4 + $0x3e] sm:$0x1]  ;;  %v641_v58 = vrot.slane %v634_v53, 7  ;;  %v643_v59 = vrot.slane %v635_v54, 6  ;;  %v691_v60 = vld [vmem:[#allocation4 + $0x4f] sm:$0x1] }
  0x88   :  { %608 = vrot.lane.b32.xlu0 %v607_v55, %s2734_s23  ;;  %v664_v61 = vsel %vm108_vm4, %v663_v49, %v662_v56  ;;  %v645_v62 = vrot.slane %v636_v57, 5  ;;  %v692_v63 = vld [vmem:[#allocation4 + $0x5f] sm:$0x1]  ;;  %v693_v0 = vld [vmem:[#allocation4 + $0x6f] sm:$0x1]  ;;  %v699_v2 = vrot.slane %v691_v60, 4 }
  0x89   :  { %v666_v3 = vsel %vm111_vm5, %v665_v52, %v664_v61  ;;  %v642_v4 = vsel %vm81_vm0, %v641_v58, %v633_v50  ;;  %v694_v5 = vld [vmem:[#allocation4 + $0x7f] sm:$0x1]  ;;  %v700_v6 = vrot.slane %v692_v63, 3  ;;  %v702_v7 = vrot.slane %v693_v0, 2  ;;  %v672_v8 = vld [vmem:[#allocation4 + $0xf] sm:$0x1] }
  0x8a   :  { %667 = vrot.lane.b32.xlu1 %v666_v3, %s2735_s24  ;;  %v644_v9 = vsel %vm84_vm1, %v643_v59, %v642_v4  ;;  %v704_v10 = vrot.slane %v694_v5, 1  ;;  %v673_v11 = vld [vmem:[#allocation4 + $0x1f] sm:$0x1]  ;;  %v674_v12 = vld [vmem:[#allocation4 + $0x2f] sm:$0x1]  ;;  %v2985_v24 = vld [vmem:[#allocation7] sm:$0xff] }
  0x8b   :  { %v646_v13 = vsel %vm87_vm2, %v645_v62, %v644_v9  ;;  %v701_v14 = vsel %vm105_vm3, %v700_v6, %v699_v2  ;;  %v675_v15 = vld [vmem:[#allocation4 + $0x3f] sm:$0x1]  ;;  %v680_v16 = vrot.slane %v673_v11, 7  ;;  %v682_v17 = vrot.slane %v674_v12, 6  ;;  %s2746_s0 = smov 127   ;;  %s2747_s18 = smov 125  }
  0x8c   :  { %647 = vrot.lane.b32.xlu0 %v646_v13, %s2735_s24  ;;  %v703_v18 = vsel %vm108_vm4, %v702_v7, %v701_v14  ;;  %v684_v19 = vrot.slane %v675_v15, 5  ;;  %v2737_v25 = vmov 3   ;;  %v2738_v26 = vmov 2   ;;  %s2748_s26 = smov 126   ;;  %s2749_s27 = smov 124  }
  0x8d   :  { %v705_v20 = vsel %vm111_vm5, %v704_v10, %v703_v18  ;;  %v681_v21 = vsel %vm81_vm0, %v680_v16, %v672_v8  ;;  %v2739_v27 = vmov 4   ;;  %v2740_v28 = vmov 8   ;;  %s2750_s28 = smov 122   ;;  %s2789_s29 = smov 104  }
  0x8e   :  { %706 = vrot.lane.b32.xlu1 %v705_v20, %s2736_s25  ;;  %v683_v22 = vsel %vm84_vm1, %v682_v17, %v681_v21  ;;  %v2741_v29 = vmov 5   ;;  %v2742_v30 = vmov 9   ;;  %v2743_v31 = vmov 6   ;;  %s2790_s30 = smov 80   ;;  %s2791_s5 = smov 56  }
  0x8f   :  { %v685_v23 = vsel %vm87_vm2, %v684_v19, %v683_v22  ;;  %v2744_v32 = vmov 7   ;;  %vm92_vm6 = vcmask 740952   ;;  %vm135_vm7 = vcmask 937752   ;;  %s2792_s6 = smov 32   ;;  %s2793_s7 = smov 112  }
  0x90   :  { %686 = vrot.lane.b32.xlu0 %v685_v23, %s2736_s25  ;;  %vm116_vm8 = vcmask 745052   ;;  %vm155_vm9 = vcmask 941852   ;;  %vm196_vm10 = vcmask 1048540   ;;  %vm198_vm11 = vcmask 89092   ;;  %s2794_s8 = smov 64   ;;  %s2795_s2 = smov 48  }
  0x91   :  { %vm174_vm12 = vcmask 1044440   ;;  %vm176_vm13 = vcmask 84992   ;;  %v2745_v38 = vmov 10   ;;  %vm237_vm14 = vcmask 285852   ;;  %s2796_s9 = smov 120   ;;  %s2797_s3 = smov 40  }
  0x92   :  { %726 = vperm.xlu1 %2539, %v2985_v24   ;;  %vm217_vm15 = vcmask 281752   ;;  %vm276_vm0 = vcmask 482652   ;;  %vm256_vm1 = vcmask 478552   ;;  %vm315_vm2 = vcmask 679452   ;;  %s2798_s10 = smov 88   ;;  %s2800_s12 = smov 24  }
  0x93   :  { %vm295_vm3 = vcmask 675352   ;;  %vm354_vm4 = vcmask 876252   ;;  %vm334_vm5 = vcmask 872152   ;;  %s2801_s13 = smov 16   ;;  %s2802_s14 = smov 72  }
  0x94   :  { %719 = vperm.xlu0 %2538, %v2985_v24  }
  0x96   :  { %2541 = vset.pattern.permute.xlu1 %v2737_v25 }
  0x97   :  { %776 = vperm.xlu1 %2541, %v2985_v24  }
  0x98   :  { %2540 = vset.pattern.permute.xlu0 %v2738_v26 }
  0x99   :  { %751 = vperm.xlu0 %2540, %v2985_v24  }
  0x9b   :  { %2542 = vset.pattern.permute.xlu1 %v2739_v27 }
  0x9c   :  { %801 = vperm.xlu1 %2542, %v2985_v24  }
  0x9d   :  { %2546 = vset.pattern.permute.xlu0 %v2740_v28 }
  0x9e   :  { %884 = vperm.xlu0 %2546, %v2985_v24  }
  0xa0   :  { %2543 = vset.pattern.permute.xlu1 %v2741_v29 }
  0xa1   :  { %826 = vperm.xlu1 %2543, %v2985_v24  }
  0xa2   :  { %2547 = vset.pattern.permute.xlu0 %v2742_v30 }
  0xa3   :  { %915 = vperm.xlu0 %2547, %v2985_v24  }
  0xa5   :  { %2544 = vset.pattern.permute.xlu1 %v2743_v31 }
  0xa6   :  { %851 = vperm.xlu1 %2544, %v2985_v24  }
  0xa7   :  { %2548 = vset.pattern.permute.xlu0 %v2745_v38 }
  0xaa   :  { %2545 = vset.pattern.permute.xlu1 %v2744_v32 }
  0xab   :  { %876 = vperm.xlu1 %2545, %v2985_v24  }
  0xc4   :  { %v133_v33 = vpop.permute.xlu1 %132 }
  0xc5   :  { %v90_v34 = vpop.permute.xlu0 %89 }
  0xc6   :  { %93 = vst.msk [vmem:[#allocation2] sm:$0xf] %vm92_vm6, %v90_v34  ;;  %vm395_vm6 = vcmask 1048476  }
  0xc7   :  { %136 = vst.msk [vmem:[#allocation2] sm:$0xf] %vm135_vm7, %v133_v33  ;;  %vm397_vm7 = vcmask 23556  }
  0xc8   :  { %v153_v35 = vpop.permute.xlu1 %152 }
  0xca   :  { %v114_v36 = vpop.permute.xlu0 %113 }
  0xcb   :  { %117 = vst.msk [vmem:[#allocation2] sm:$0xf0] %vm116_vm8, %v114_v36  ;;  %vm373_vm8 = vcmask 1044376  }
  0xcc   :  { %v194_v37 = vpop.permute.xlu1 %193  ;;  %156 = vst.msk [vmem:[#allocation2] sm:$0xf0] %vm155_vm9, %v153_v35  ;;  %vm375_vm9 = vcmask 19456  }
  0xcd   :  { %197 = vst.msk [vmem:[#allocation2] sm:$0xf0] %vm196_vm10, %v194_v37  ;;  %vm436_vm10 = vcmask 220252  }
  0xce   :  { %199 = vst.msk [vmem:[#allocation2 + $0x8] sm:$0xf0] %vm198_vm11, %v194_v37  ;;  %v172_v39 = vpop.permute.xlu0 %171  ;;  %vm416_vm11 = vcmask 216152  }
  0xcf   :  { %175 = vst.msk [vmem:[#allocation2] sm:$0xf] %vm174_vm12, %v172_v39  ;;  %vm475_vm12 = vcmask 417052  }
  0xd0   :  { %177 = vst.msk [vmem:[#allocation2 + $0x8] sm:$0xf] %vm176_vm13, %v172_v39  ;;  %v235_v40 = vpop.permute.xlu1 %234  ;;  %vm455_vm13 = vcmask 412952  }
  0xd1   :  { %238 = vst.msk [vmem:[#allocation2 + $0x8] sm:$0xf0] %vm237_vm14, %v235_v40  ;;  %vm514_vm14 = vcmask 613852  }
  0xd2   :  { %v215_v41 = vpop.permute.xlu0 %214 }
  0xd3   :  { %218 = vst.msk [vmem:[#allocation2 + $0x8] sm:$0xf] %vm217_vm15, %v215_v41  ;;  %vm494_vm15 = vcmask 609752  }
  0xd4   :  { %v274_v42 = vpop.permute.xlu1 %273 }
  0xd5   :  { %277 = vst.msk [vmem:[#allocation2 + $0x8] sm:$0xf0] %vm276_vm0, %v274_v42  ;;  %vm553_vm0 = vcmask 810652  }
  0xd6   :  { %v254_v43 = vpop.permute.xlu0 %253  ;;  %v2997_v3 = vld [vmem:[#allocation2] sm:$0xff] }
  0xd7   :  { %257 = vst.msk [vmem:[#allocation2 + $0x8] sm:$0xf] %vm256_vm1, %v254_v43  ;;  %vm533_vm1 = vcmask 806552   ;;  %v2751_v43 = vmov 15  }
  0xd8   :  { %v313_v44 = vpop.permute.xlu1 %312 }
  0xd9   :  { %316 = vst.msk [vmem:[#allocation2 + $0x8] sm:$0xf0] %vm315_vm2, %v313_v44  ;;  %vm592_vm2 = vcmask 1007452   ;;  %v2752_v44 = vmov 16  }
  0xda   :  { %v293_v45 = vpop.permute.xlu0 %292  ;;  %2550 = vset.pattern.permute.xlu1 %v2752_v44  ;;  %v2781_v44 = vmov 45  }
  0xdb   :  { %296 = vst.msk [vmem:[#allocation2 + $0x8] sm:$0xf] %vm295_vm3, %v293_v45  ;;  %vm572_vm3 = vcmask 1003352  }
  0xdc   :  { %v352_v46 = vpop.permute.xlu1 %351 }
  0xdd   :  { %355 = vst.msk [vmem:[#allocation2 + $0x8] sm:$0xf0] %vm354_vm4, %v352_v46  ;;  %vm631_vm4 = vcmask 154652  }
  0xde   :  { %v332_v47 = vpop.permute.xlu0 %331 }
  0xdf   :  { %335 = vst.msk [vmem:[#allocation2 + $0x8] sm:$0xf] %vm334_vm5, %v332_v47  ;;  %vm611_vm5 = vcmask 150552  }
  0xe0   :  { %v393_v48 = vpop.permute.xlu1 %392 }
  0xe1   :  { %396 = vst.msk [vmem:[#allocation2 + $0x8] sm:$0xf0] %vm395_vm6, %v393_v48  ;;  %vm670_vm6 = vcmask 351452  }
  0xe2   :  { %398 = vst.msk [vmem:[#allocation2 + $0x10] sm:$0xf0] %vm397_vm7, %v393_v48  ;;  %v371_v49 = vpop.permute.xlu0 %370  ;;  %vm650_vm7 = vcmask 347352  }
  0xe3   :  { %374 = vst.msk [vmem:[#allocation2 + $0x8] sm:$0xf] %vm373_vm8, %v371_v49  ;;  %vm709_vm8 = vcmask 548252  }
  0xe4   :  { %376 = vst.msk [vmem:[#allocation2 + $0x10] sm:$0xf] %vm375_vm9, %v371_v49  ;;  %v434_v50 = vpop.permute.xlu1 %433  ;;  %vm689_vm9 = vcmask 544152  }
  0xe5   :  { %437 = vst.msk [vmem:[#allocation2 + $0x10] sm:$0xf0] %vm436_vm10, %v434_v50  ;;  %vm741_vm10 = vcmask 1039360  }
  0xe6   :  { %v414_v51 = vpop.permute.xlu0 %413 }
  0xe7   :  { %417 = vst.msk [vmem:[#allocation2 + $0x10] sm:$0xf] %vm416_vm11, %v414_v51  ;;  %vm766_vm11 = vcmask 1031168  }
  0xe8   :  { %v473_v52 = vpop.permute.xlu1 %472 }
  0xe9   :  { %476 = vst.msk [vmem:[#allocation2 + $0x10] sm:$0xf0] %vm475_vm12, %v473_v52  ;;  %vm791_vm12 = vcmask 1022976  }
  0xea   :  { %v453_v53 = vpop.permute.xlu0 %452  ;;  %v3021_v23 = vld [vmem:[#allocation2 + $0x8] sm:$0xff] }
  0xeb   :  { %456 = vst.msk [vmem:[#allocation2 + $0x10] sm:$0xf] %vm455_vm13, %v453_v53  ;;  %vm816_vm13 = vcmask 1014784  }
  0xec   :  { %v512_v54 = vpop.permute.xlu1 %511 }
  0xed   :  { %515 = vst.msk [vmem:[#allocation2 + $0x10] sm:$0xf0] %vm514_vm14, %v512_v54  ;;  %vm841_vm14 = vcmask 1006592  }
  0xee   :  { %v492_v55 = vpop.permute.xlu0 %491 }
  0xef   :  { %495 = vst.msk [vmem:[#allocation2 + $0x10] sm:$0xf] %vm494_vm15, %v492_v55  ;;  %vm866_vm15 = vcmask 998400  }
  0xf0   :  { %v551_v56 = vpop.permute.xlu1 %550 }
  0xf1   :  { %554 = vst.msk [vmem:[#allocation2 + $0x10] sm:$0xf0] %vm553_vm0, %v551_v56  ;;  %vm1081_vm0 = vcmask 850944  }
  0xf2   :  { %v531_v57 = vpop.permute.xlu0 %530 }
  0xf3   :  { %534 = vst.msk [vmem:[#allocation2 + $0x10] sm:$0xf] %vm533_vm1, %v531_v57  ;;  %vm1297_vm1 = vcmask 654336  }
  0xf4   :  { %v590_v58 = vpop.permute.xlu1 %589 }
  0xf5   :  { %593 = vst.msk [vmem:[#allocation2 + $0x10] sm:$0xf0] %vm592_vm2, %v590_v58  ;;  %vm1513_vm2 = vcmask 457728  }
  0xf6   :  { %v570_v59 = vpop.permute.xlu0 %569 }
  0xf7   :  { %573 = vst.msk [vmem:[#allocation2 + $0x10] sm:$0xf] %vm572_vm3, %v570_v59  ;;  %vm1729_vm3 = vcmask 261120  }
  0xf8   :  { %v629_v60 = vpop.permute.xlu1 %628 }
  0xf9   :  { %632 = vst.msk [vmem:[#allocation2 + $0x18] sm:$0xf0] %vm631_vm4, %v629_v60  ;;  %vm1945_vm4 = vcmask 64512  }
  0xfa   :  { %v609_v61 = vpop.permute.xlu0 %608 }
  0xfb   :  { %612 = vst.msk [vmem:[#allocation2 + $0x18] sm:$0xf] %vm611_vm5, %v609_v61  ;;  %vm2161_vm5 = vcmask 916480  }
  0xfc   :  { %v668_v62 = vpop.permute.xlu1 %667 }
  0xfd   :  { %671 = vst.msk [vmem:[#allocation2 + $0x18] sm:$0xf0] %vm670_vm6, %v668_v62  ;;  %v2753_v62 = vmov 11   ;;  %vm2171_vm6 = vcmask 130048  }
  0xfe   :  { %v648_v63 = vpop.permute.xlu0 %647  ;;  %v3027_v27 = vld [vmem:[#allocation2 + $0x10] sm:$0xff] }
  0xff   :  { %651 = vst.msk [vmem:[#allocation2 + $0x18] sm:$0xf] %vm650_vm7, %v648_v63  ;;  %v2754_v63 = vmov 29   ;;  %vm2177_vm7 = vcmask 261248  }
 0x100   :  { %v707_v0 = vpop.permute.xlu1 %706 }
 0x101   :  { %710 = vst.msk [vmem:[#allocation2 + $0x18] sm:$0xf0] %vm709_vm8, %v707_v0  ;;  %v2755_v0 = vmov 22   ;;  %vm2182_vm8 = vcmask 392448  }
 0x102   :  { %v687_v2 = vpop.permute.xlu0 %686 }
 0x103   :  { %690 = vst.msk [vmem:[#allocation2 + $0x18] sm:$0xf] %vm689_vm9, %v687_v2  ;;  %v2756_v2 = vmov 24   ;;  %vm2187_vm9 = vcmask 523648  }
 0x10a   :  { %v3011_v16 = vld [vmem:[#allocation2 + $0x18] sm:$0xff] }
 0x111   :  { %v727_v4 = vpop.permute.xlu1 %726 }
 0x112   :  { %v729_v5 = vmul.f32 %v727_v4, %v2997_v3  ;;  %v730_v26 = vmul.f32 %v727_v4, %v3021_v23  ;;  %v731_v28 = vmul.f32 %v727_v4, %v3027_v27  ;;  %v2757_v4 = vmov 17  }
 0x113   :  { %v3000_v6 = vpop.permute.xlu0 %719 }
 0x114   :  { %4388 = vst [vmem:[#allocation17_spill] sm:$0xff] %v3000_v6  ;;  %735 = vrot.lane.b32.xlu1 %v729_v5, %s2746_s0  ;;  %v2758_v5 = vmov 13  }
 0x116   :  { %v777_v7 = vpop.permute.xlu1 %776 }
 0x117   :  { %v779_v8 = vmul.f32 %v777_v7, %v2997_v3  ;;  %v781_v31 = vmul.f32 %v777_v7, %v3027_v27  ;;  %v780_v32 = vmul.f32 %v777_v7, %v3021_v23  ;;  %v2759_v7 = vmov 23  }
 0x118   :  { %v752_v9 = vpop.permute.xlu0 %751 }
 0x119   :  { %785 = vrot.lane.b32.xlu0 %v779_v8, %s2747_s18  ;;  %v754_v10 = vmul.f32 %v752_v9, %v2997_v3  ;;  %v756_v29 = vmul.f32 %v752_v9, %v3027_v27  ;;  %v755_v30 = vmul.f32 %v752_v9, %v3021_v23  ;;  %v2760_v8 = vmov 31  }
 0x11a   :  { %v2761_v9 = vmov 12  }
 0x11b   :  { %760 = vrot.lane.b32.xlu1 %v754_v10, %s2748_s26  ;;  %v802_v11 = vpop.permute.xlu1 %801  ;;  %v2762_v10 = vmov 20  }
 0x11c   :  { %v804_v12 = vmul.f32 %v802_v11, %v2997_v3  ;;  %v806_v33 = vmul.f32 %v802_v11, %v3027_v27  ;;  %v805_v34 = vmul.f32 %v802_v11, %v3021_v23  ;;  %v2763_v11 = vmov 18  }
 0x11d   :  { %v885_v13 = vpop.permute.xlu0 %884 }
 0x11e   :  { %810 = vrot.lane.b32.xlu0 %v804_v12, %s2749_s27  ;;  %v887_v14 = vmul.f32 %v885_v13, %v2997_v3  ;;  %v890_v18 = vmul.f32 %v885_v13, %v3011_v16  ;;  %v889_v39 = vmul.f32 %v885_v13, %v3027_v27  ;;  %v888_v40 = vmul.f32 %v885_v13, %v3021_v23 }
 0x11f   :  { %v2764_v13 = vmov 38  }
 0x120   :  { %895 = vrot.lane.b32.xlu1 %v887_v14, %s2746_s0  ;;  %v827_v15 = vpop.permute.xlu1 %826 }
 0x121   :  { %v829_v17 = vmul.f32 %v827_v15, %v2997_v3  ;;  %v831_v35 = vmul.f32 %v827_v15, %v3027_v27  ;;  %v830_v36 = vmul.f32 %v827_v15, %v3021_v23  ;;  %v2765_v15 = vmov 30  }
 0x122   :  { %v916_v19 = vpop.permute.xlu0 %915 }
 0x123   :  { %835 = vrot.lane.b32.xlu0 %v829_v17, %s2723_s1  ;;  %v918_v21 = vmul.f32 %v916_v19, %v2997_v3  ;;  %v921_v25 = vmul.f32 %v916_v19, %v3011_v16  ;;  %v920_v41 = vmul.f32 %v916_v19, %v3027_v27  ;;  %v919_v42 = vmul.f32 %v916_v19, %v3021_v23 }
 0x124   :  { %901 = vrot.lane.b32.xlu1 %v890_v18, %s2746_s0  ;;  %v2766_v17 = vmov 33   ;;  %v2767_v18 = vmov 36  }
 0x125   :  { %v852_v20 = vpop.permute.xlu1 %851 }
 0x126   :  { %v854_v22 = vmul.f32 %v852_v20, %v2997_v3  ;;  %v856_v37 = vmul.f32 %v852_v20, %v3027_v27  ;;  %v855_v38 = vmul.f32 %v852_v20, %v3021_v23  ;;  %v2768_v20 = vmov 34  }
 0x128   :  { %926 = vrot.lane.b32.xlu1 %v918_v21, %s2748_s26  ;;  %860 = vrot.lane.b32.xlu0 %v854_v22, %s2750_s28  ;;  %v2769_v21 = vmov 19  }
 0x12a   :  { %v3104_v12 = vpop.permute.xlu1 %876 }
 0x12c   :  { %932 = vrot.lane.b32.xlu1 %v921_v25, %s2748_s26  ;;  %737 = vrot.lane.b32.xlu0 %v730_v26, %s2746_s0  ;;  %v2770_v25 = vmov 41   ;;  %v2771_v26 = vmov 25  }
 0x130   :  { %739 = vrot.lane.b32.xlu1 %v731_v28, %s2746_s0  ;;  %764 = vrot.lane.b32.xlu0 %v756_v29, %s2748_s26  ;;  %v2772_v28 = vmov 14  }
 0x134   :  { %762 = vrot.lane.b32.xlu1 %v755_v30, %s2748_s26  ;;  %789 = vrot.lane.b32.xlu0 %v781_v31, %s2747_s18  ;;  %v2773_v30 = vmov 37   ;;  %v2774_v31 = vmov 35  }
 0x138   :  { %787 = vrot.lane.b32.xlu1 %v780_v32, %s2747_s18  ;;  %814 = vrot.lane.b32.xlu0 %v806_v33, %s2749_s27  ;;  %v2775_v33 = vmov 43  }
 0x13c   :  { %812 = vrot.lane.b32.xlu1 %v805_v34, %s2749_s27  ;;  %839 = vrot.lane.b32.xlu0 %v831_v35, %s2723_s1  ;;  %v2776_v35 = vmov 26  }
 0x140   :  { %837 = vrot.lane.b32.xlu1 %v830_v36, %s2723_s1  ;;  %864 = vrot.lane.b32.xlu0 %v856_v37, %s2750_s28  ;;  %v2777_v36 = vmov 32  }
 0x144   :  { %862 = vrot.lane.b32.xlu1 %v855_v38, %s2750_s28  ;;  %899 = vrot.lane.b32.xlu0 %v889_v39, %s2746_s0  ;;  %v2778_v38 = vmov 44  }
 0x148   :  { %897 = vrot.lane.b32.xlu1 %v888_v40, %s2746_s0  ;;  %930 = vrot.lane.b32.xlu0 %v920_v41, %s2748_s26  ;;  %v2779_v40 = vmov 27  }
 0x14c   :  { %928 = vrot.lane.b32.xlu1 %v919_v42, %s2748_s26  ;;  %946 = vperm.xlu0 %2548, %v2985_v24   ;;  %v2780_v42 = vmov 39  }
 0x150   :  { %2549 = vset.pattern.permute.xlu0 %v2751_v43 }
 0x186   :  { %v3108_v14 = vpop.permute.xlu1 %735 }
 0x187   :  { %4399 = vst [vmem:[#allocation28_spill] sm:$0xff] %v3108_v14 }
 0x18b   :  { %v3060_v45 = vpop.permute.xlu0 %785 }
 0x18c   :  { %4389 = vst [vmem:[#allocation18_spill] sm:$0xff] %v3060_v45 }
 0x18d   :  { %v3112_v19 = vpop.permute.xlu1 %760 }
 0x18e   :  { %4400 = vst [vmem:[#allocation29_spill] sm:$0xff] %v3112_v19 }
 0x190   :  { %v3062_v46 = vpop.permute.xlu0 %810 }
 0x191   :  { %4390 = vst [vmem:[#allocation19_spill] sm:$0xff] %v3062_v46 }
 0x192   :  { %v3117_v22 = vpop.permute.xlu1 %895 }
 0x195   :  { %v3064_v47 = vpop.permute.xlu0 %835 }
 0x196   :  { %4391 = vst [vmem:[#allocation20_spill] sm:$0xff] %v3064_v47  ;;  %v3121_v29 = vpop.permute.xlu1 %901 }
 0x19a   :  { %v3066_v48 = vpop.permute.xlu0 %860  ;;  %v3126_v32 = vpop.permute.xlu1 %926 }
 0x19b   :  { %4392 = vst [vmem:[#allocation21_spill] sm:$0xff] %v3066_v48 }
 0x19e   :  { %v3068_v49 = vpop.permute.xlu0 %737  ;;  %v3130_v34 = vpop.permute.xlu1 %932 }
 0x19f   :  { %4393 = vst [vmem:[#allocation22_spill] sm:$0xff] %v3068_v49 }
 0x1a2   :  { %v3070_v50 = vpop.permute.xlu0 %764  ;;  %v3133_v37 = vpop.permute.xlu1 %739 }
 0x1a3   :  { %4394 = vst [vmem:[#allocation23_spill] sm:$0xff] %v3070_v50  ;;  %4401 = vst [vmem:[#allocation30_spill] sm:$0xff] %v3133_v37 }
 0x1a6   :  { %v3072_v51 = vpop.permute.xlu0 %789  ;;  %v3137_v39 = vpop.permute.xlu1 %762 }
 0x1a7   :  { %4395 = vst [vmem:[#allocation24_spill] sm:$0xff] %v3072_v51  ;;  %4402 = vst [vmem:[#allocation31_spill] sm:$0xff] %v3137_v39 }
 0x1aa   :  { %v3074_v52 = vpop.permute.xlu0 %814  ;;  %v3140_v41 = vpop.permute.xlu1 %787 }
 0x1ab   :  { %4396 = vst [vmem:[#allocation25_spill] sm:$0xff] %v3074_v52  ;;  %4403 = vst [vmem:[#allocation32_spill] sm:$0xff] %v3140_v41 }
 0x1ae   :  { %v3076_v53 = vpop.permute.xlu0 %839  ;;  %v3143_v43 = vpop.permute.xlu1 %812 }
 0x1af   :  { %4397 = vst [vmem:[#allocation26_spill] sm:$0xff] %v3076_v53  ;;  %4404 = vst [vmem:[#allocation33_spill] sm:$0xff] %v3143_v43 }
 0x1b2   :  { %v3078_v54 = vpop.permute.xlu0 %864 }
 0x1b3   :  { %4398 = vst [vmem:[#allocation27_spill] sm:$0xff] %v3078_v54 }
 0x1b6   :  { %v3080_v55 = vpop.permute.xlu0 %899 }
 0x1ba   :  { %v3082_v56 = vpop.permute.xlu0 %930 }
 0x1cb   :  { %v947_v57 = vpop.permute.xlu0 %946 }
 0x1cc   :  { %v951_v58 = vmul.f32 %v947_v57, %v3027_v27  ;;  %v949_v59 = vmul.f32 %v947_v57, %v2997_v3  ;;  %v950_v60 = vmul.f32 %v947_v57, %v3021_v23  ;;  %v952_v61 = vmul.f32 %v947_v57, %v3011_v16  ;;  %v3146_v57 = vpop.permute.xlu1 %837 }
 0x1cd   :  { %4405 = vst [vmem:[#allocation34_spill] sm:$0xff] %v3146_v57 }
 0x1ce   :  { %961 = vrot.lane.b32.xlu0 %v951_v58, %s2747_s18  ;;  %957 = vrot.lane.b32.xlu1 %v949_v59, %s2747_s18  ;;  %v2782_v58 = vmov 40   ;;  %v2783_v59 = vmov 46  }
 0x1d2   :  { %1100 = vperm.xlu0 %2549, %v2985_v24   ;;  %959 = vrot.lane.b32.xlu1 %v950_v60, %s2747_s18  ;;  %v3149_v60 = vpop.permute.xlu1 %862 }
 0x1d3   :  { %4406 = vst [vmem:[#allocation35_spill] sm:$0xff] %v3149_v60 }
 0x1d6   :  { %2552 = vset.pattern.permute.xlu0 %v2753_v62  ;;  %963 = vrot.lane.b32.xlu1 %v952_v61, %s2747_s18  ;;  %v2784_v61 = vmov 47   ;;  %v3153_v62 = vpop.permute.xlu1 %897 }
 0x1d7   :  { %977 = vperm.xlu0 %2552, %v2985_v24  }
 0x1da   :  { %1131 = vperm.xlu1 %2550, %v2985_v24  }
 0x1db   :  { %2555 = vset.pattern.permute.xlu0 %v2754_v63  ;;  %v2785_v63 = vmov 48  }
 0x1dc   :  { %1532 = vperm.xlu0 %2555, %v2985_v24  }
 0x1de   :  { %2551 = vset.pattern.permute.xlu1 %v2755_v0  ;;  %v3156_v0 = vpop.permute.xlu1 %928 }
 0x1df   :  { %1316 = vperm.xlu1 %2551, %v2985_v24  }
 0x1e0   :  { %2558 = vset.pattern.permute.xlu0 %v2756_v2  ;;  %v2786_v2 = vmov 21  }
 0x1e1   :  { %1378 = vperm.xlu0 %2558, %v2985_v24  }
 0x1e3   :  { %2553 = vset.pattern.permute.xlu1 %v2757_v4 }
 0x1e4   :  { %1162 = vperm.xlu1 %2553, %v2985_v24  }
 0x1e5   :  { %2561 = vset.pattern.permute.xlu0 %v2758_v5  ;;  %v2787_v5 = vmov 28  }
 0x1e6   :  { %1039 = vperm.xlu0 %2561, %v2985_v24  }
 0x1e8   :  { %2554 = vset.pattern.permute.xlu1 %v2759_v7 }
 0x1e9   :  { %1347 = vperm.xlu1 %2554, %v2985_v24  }
 0x1ea   :  { %2564 = vset.pattern.permute.xlu0 %v2760_v8 }
 0x1eb   :  { %1594 = vperm.xlu0 %2564, %v2985_v24  }
 0x1ed   :  { %2556 = vset.pattern.permute.xlu1 %v2761_v9 }
 0x1ee   :  { %1008 = vperm.xlu1 %2556, %v2985_v24  }
 0x1ef   :  { %2567 = vset.pattern.permute.xlu0 %v2762_v10  ;;  %v2788_v10 = vmov 42  }
 0x1f0   :  { %1255 = vperm.xlu0 %2567, %v2985_v24  }
 0x1f2   :  { %2557 = vset.pattern.permute.xlu1 %v2763_v11 }
 0x1f3   :  { %1193 = vperm.xlu1 %2557, %v2985_v24  }
 0x1f4   :  { %2570 = vset.pattern.permute.xlu0 %v2764_v13 }
 0x1f5   :  { %1810 = vperm.xlu0 %2570, %v2985_v24  }
 0x1f7   :  { %2559 = vset.pattern.permute.xlu1 %v2765_v15 }
 0x1f8   :  { %1563 = vperm.xlu1 %2559, %v2985_v24  }
 0x1f9   :  { %2573 = vset.pattern.permute.xlu0 %v2766_v17 }
 0x1fa   :  { %1656 = vperm.xlu0 %2573, %v2985_v24  }
 0x1fc   :  { %2560 = vset.pattern.permute.xlu1 %v2767_v18 }
 0x1fd   :  { %1748 = vperm.xlu1 %2560, %v2985_v24  }
 0x1fe   :  { %2576 = vset.pattern.permute.xlu0 %v2768_v20 }
 0x1ff   :  { %1687 = vperm.xlu0 %2576, %v2985_v24  }
 0x201   :  { %2562 = vset.pattern.permute.xlu1 %v2769_v21 }
 0x202   :  { %1224 = vperm.xlu1 %2562, %v2985_v24  }
 0x203   :  { %2579 = vset.pattern.permute.xlu0 %v2770_v25 }
 0x204   :  { %1903 = vperm.xlu0 %2579, %v2985_v24  }
 0x206   :  { %2563 = vset.pattern.permute.xlu1 %v2771_v26 }
 0x207   :  { %1409 = vperm.xlu1 %2563, %v2985_v24  }
 0x208   :  { %2582 = vset.pattern.permute.xlu0 %v2772_v28 }
 0x209   :  { %1092 = vperm.xlu0 %2582, %v2985_v24  }
 0x20b   :  { %2565 = vset.pattern.permute.xlu1 %v2773_v30 }
 0x20c   :  { %1779 = vperm.xlu1 %2565, %v2985_v24  }
 0x20d   :  { %2585 = vset.pattern.permute.xlu0 %v2774_v31 }
 0x20e   :  { %1740 = vperm.xlu0 %2585, %v2985_v24  }
 0x210   :  { %2566 = vset.pattern.permute.xlu1 %v2775_v33 }
 0x211   :  { %1964 = vperm.xlu1 %2566, %v2985_v24  }
 0x212   :  { %2588 = vset.pattern.permute.xlu0 %v2719_v1 }
 0x215   :  { %2568 = vset.pattern.permute.xlu1 %v2776_v35 }
 0x216   :  { %1440 = vperm.xlu1 %2568, %v2985_v24  }
 0x21a   :  { %2569 = vset.pattern.permute.xlu1 %v2777_v36 }
 0x21b   :  { %1625 = vperm.xlu1 %2569, %v2985_v24  }
 0x21f   :  { %2571 = vset.pattern.permute.xlu1 %v2778_v38 }
 0x220   :  { %1995 = vperm.xlu1 %2571, %v2985_v24  }
 0x224   :  { %2572 = vset.pattern.permute.xlu1 %v2779_v40 }
 0x225   :  { %1471 = vperm.xlu1 %2572, %v2985_v24  }
 0x229   :  { %2574 = vset.pattern.permute.xlu1 %v2780_v42 }
 0x22a   :  { %1841 = vperm.xlu1 %2574, %v2985_v24  }
 0x22e   :  { %2575 = vset.pattern.permute.xlu1 %v2781_v44 }
 0x22f   :  { %2026 = vperm.xlu1 %2575, %v2985_v24  }
 0x233   :  { %2577 = vset.pattern.permute.xlu1 %v2782_v58 }
 0x234   :  { %1872 = vperm.xlu1 %2577, %v2985_v24  }
 0x238   :  { %2578 = vset.pattern.permute.xlu1 %v2783_v59 }
 0x239   :  { %2057 = vperm.xlu1 %2578, %v2985_v24  }
 0x23d   :  { %2580 = vset.pattern.permute.xlu1 %v2784_v61 }
 0x23e   :  { %2088 = vperm.xlu1 %2580, %v2985_v24  }
 0x240   :  { %v3159_v4 = vpop.permute.xlu1 %957  ;;  %v3161_v7 = vpop.permute.xlu0 %961 }
 0x242   :  { %2581 = vset.pattern.permute.xlu1 %v2785_v63 }
 0x243   :  { %2119 = vperm.xlu1 %2581, %v2985_v24  }
 0x244   :  { %v3164_v8 = vpop.permute.xlu1 %959 }
 0x247   :  { %2583 = vset.pattern.permute.xlu1 %v2786_v2 }
 0x248   :  { %1308 = vperm.xlu1 %2583, %v2985_v24   ;;  %v3170_v15 = vpop.permute.xlu1 %963 }
 0x24c   :  { %2584 = vset.pattern.permute.xlu1 %v2787_v5 }
 0x24d   :  { %1524 = vperm.xlu1 %2584, %v2985_v24  }
 0x251   :  { %v1101_v9 = vpop.permute.xlu0 %1100  ;;  %2586 = vset.pattern.permute.xlu1 %v2788_v10 }
 0x252   :  { %v1106_v11 = vmul.f32 %v1101_v9, %v3011_v16  ;;  %v1104_v13 = vmul.f32 %v1101_v9, %v3021_v23  ;;  %v1103_v17 = vmul.f32 %v1101_v9, %v2997_v3  ;;  %v1105_v18 = vmul.f32 %v1101_v9, %v3027_v27 }
 0x254   :  { %1117 = vrot.lane.b32.xlu0 %v1106_v11, %s2746_s0  ;;  %1113 = vrot.lane.b32.xlu1 %v1104_v13, %s2746_s0 }
 0x256   :  { %v978_v35 = vpop.permute.xlu0 %977 }
 0x257   :  { %v982_v36 = vmul.f32 %v978_v35, %v3027_v27  ;;  %v981_v40 = vmul.f32 %v978_v35, %v3021_v23  ;;  %v983_v44 = vmul.f32 %v978_v35, %v3011_v16 }
 0x258   :  { %1111 = vrot.lane.b32.xlu0 %v1103_v17, %s2746_s0  ;;  %1115 = vrot.lane.b32.xlu1 %v1105_v18, %s2746_s0 }
 0x259   :  { %v1132_v20 = vpop.permute.xlu1 %1131 }
 0x25a   :  { %v1136_v21 = vmul.f32 %v1132_v20, %v3027_v27  ;;  %v1135_v26 = vmul.f32 %v1132_v20, %v3021_v23  ;;  %v1137_v30 = vmul.f32 %v1132_v20, %v3011_v16 }
 0x25b   :  { %v1533_v10 = vpop.permute.xlu0 %1532 }
 0x25c   :  { %1956 = vperm.xlu1 %2586, %v2985_v24   ;;  %1146 = vrot.lane.b32.xlu0 %v1136_v21, %s2748_s26  ;;  %v1536_v13 = vmul.f32 %v1533_v10, %v3021_v23 }
 0x25e   :  { %v1317_v25 = vpop.permute.xlu1 %1316 }
 0x25f   :  { %v1320_v28 = vmul.f32 %v1317_v25, %v3021_v23  ;;  %v1322_v33 = vmul.f32 %v1317_v25, %v3011_v16  ;;  %v1321_v24 = vmul.f32 %v1317_v25, %v3027_v27  ;;  %v1319_v63 = vmul.f32 %v1317_v25, %v2997_v3 }
 0x260   :  { %1144 = vrot.lane.b32.xlu1 %v1135_v26, %s2748_s26  ;;  %v1537_v25 = vmul.f32 %v1533_v10, %v3027_v27 }
 0x261   :  { %1329 = vrot.lane.b32.xlu0 %v1320_v28, %s2746_s0  ;;  %2587 = vset.pattern.permute.xlu1 %v2719_v1  ;;  %v1134_v1 = vmul.f32 %v1132_v20, %v2997_v3  ;;  %v1538_v20 = vmul.f32 %v1533_v10, %v3011_v16 }
 0x263   :  { %v1163_v31 = vpop.permute.xlu1 %1162 }
 0x264   :  { %1148 = vrot.lane.b32.xlu1 %v1137_v30, %s2748_s26  ;;  %v1167_v58 = vmul.f32 %v1163_v31, %v3027_v27  ;;  %v1166_v61 = vmul.f32 %v1163_v31, %v3021_v23  ;;  %v1168_v2 = vmul.f32 %v1163_v31, %v3011_v16  ;;  %v980_v30 = vmul.f32 %v978_v35, %v2997_v3 }
 0x265   :  { %1333 = vrot.lane.b32.xlu0 %v1322_v33, %s2746_s0  ;;  %v1165_v35 = vmul.f32 %v1163_v31, %v2997_v3 }
 0x268   :  { %1331 = vrot.lane.b32.xlu1 %v1321_v24, %s2746_s0  ;;  %v1348_v38 = vpop.permute.xlu1 %1347 }
 0x269   :  { %992 = vrot.lane.b32.xlu0 %v982_v36, %s2749_s27  ;;  %v1352_v9 = vmul.f32 %v1348_v38, %v3027_v27  ;;  %v1351_v11 = vmul.f32 %v1348_v38, %v3021_v23  ;;  %v1353_v18 = vmul.f32 %v1348_v38, %v3011_v16 }
 0x26c   :  { %990 = vrot.lane.b32.xlu1 %v981_v40, %s2749_s27 }
 0x26d   :  { %1142 = vrot.lane.b32.xlu0 %v1134_v1, %s2748_s26  ;;  %v3196_v42 = vpop.permute.xlu1 %1008  ;;  %v1379_v1 = vpop.permute.xlu0 %1378 }
 0x26e   :  { %v1012_v26 = vmul.f32 %v3196_v42, %v3021_v23  ;;  %v1014_v33 = vmul.f32 %v3196_v42, %v3011_v16  ;;  %v1013_v24 = vmul.f32 %v3196_v42, %v3027_v27 }
 0x270   :  { %994 = vrot.lane.b32.xlu1 %v983_v44, %s2749_s27 }
 0x271   :  { %1177 = vrot.lane.b32.xlu0 %v1167_v58, %s2747_s18 }
 0x272   :  { %v3202_v59 = vpop.permute.xlu1 %1193 }
 0x273   :  { %v1197_v40 = vmul.f32 %v3202_v59, %v3021_v23  ;;  %v1199_v44 = vmul.f32 %v3202_v59, %v3011_v16 }
 0x274   :  { %1175 = vrot.lane.b32.xlu1 %v1166_v61, %s2747_s18  ;;  %v3253_v61 = vpop.permute.xlu0 %1039 }
 0x275   :  { %1327 = vrot.lane.b32.xlu0 %v1319_v63, %s2746_s0  ;;  %v1198_v63 = vmul.f32 %v3202_v59, %v3027_v27  ;;  %v1042_v52 = vmul.f32 %v3253_v61, %v2997_v3 }
 0x277   :  { %v3209_v5 = vpop.permute.xlu1 %1563 }
 0x278   :  { %1179 = vrot.lane.b32.xlu1 %v1168_v2, %s2747_s18  ;;  %v1382_v2 = vmul.f32 %v1379_v1, %v3021_v23 }
 0x279   :  { %1362 = vrot.lane.b32.xlu0 %v1352_v9, %s2748_s26  ;;  %v1350_v9 = vmul.f32 %v1348_v38, %v2997_v3 }
 0x27c   :  { %1360 = vrot.lane.b32.xlu1 %v1351_v11, %s2748_s26  ;;  %v3217_v17 = vpop.permute.xlu1 %1748  ;;  %v1384_v11 = vmul.f32 %v1379_v1, %v3011_v16 }
 0x27d   :  { %1545 = vrot.lane.b32.xlu0 %v1536_v13, %s2746_s0  ;;  %v3264_v13 = vpop.permute.xlu0 %1594 }
 0x27e   :  { %v1597_v14 = vmul.f32 %v3264_v13, %v2997_v3 }
 0x280   :  { %1364 = vrot.lane.b32.xlu1 %v1353_v18, %s2748_s26 }
 0x281   :  { %1549 = vrot.lane.b32.xlu0 %v1538_v20, %s2746_s0  ;;  %v3224_v21 = vpop.permute.xlu1 %1224  ;;  %v1383_v20 = vmul.f32 %v1379_v1, %v3027_v27  ;;  %v3275_v38 = vpop.permute.xlu0 %1255 }
 0x282   :  { %v1227_v43 = vmul.f32 %v3224_v21, %v2997_v3  ;;  %v1260_v19 = vmul.f32 %v3275_v38, %v3027_v27  ;;  %v1261_v41 = vmul.f32 %v3275_v38, %v3011_v16 }
 0x284   :  { %1547 = vrot.lane.b32.xlu1 %v1537_v25, %s2746_s0  ;;  %v1567_v25 = vmul.f32 %v3209_v5, %v3021_v23 }
 0x285   :  { %1021 = vrot.lane.b32.xlu0 %v1012_v26, %s2723_s1  ;;  %v1535_v26 = vmul.f32 %v1533_v10, %v2997_v3 }
 0x286   :  { %v3231_v28 = vpop.permute.xlu1 %1409 }
 0x288   :  { %988 = vrot.lane.b32.xlu1 %v980_v30, %s2749_s27 }
 0x289   :  { %1025 = vrot.lane.b32.xlu0 %v1014_v33, %s2723_s1  ;;  %v1569_v33 = vmul.f32 %v3209_v5, %v3011_v16 }
 0x28b   :  { %v3240_v36 = vpop.permute.xlu1 %1779 }
 0x28c   :  { %1023 = vrot.lane.b32.xlu1 %v1013_v24, %s2723_s1  ;;  %v1568_v24 = vmul.f32 %v3209_v5, %v3027_v27  ;;  %v1782_v6 = vmul.f32 %v3240_v36, %v2997_v3 }
 0x28d   :  { %1206 = vrot.lane.b32.xlu0 %v1197_v40, %s2749_s27  ;;  %v1753_v40 = vmul.f32 %v3217_v17, %v3027_v27 }
 0x290   :  { %1173 = vrot.lane.b32.xlu1 %v1165_v35, %s2747_s18  ;;  %v3250_v58 = vpop.permute.xlu1 %1964  ;;  %v3288_v35 = vpop.permute.xlu0 %1810 }
 0x291   :  { %1210 = vrot.lane.b32.xlu0 %v1199_v44, %s2749_s27  ;;  %v1752_v44 = vmul.f32 %v3217_v17, %v3021_v23  ;;  %v1815_v37 = vmul.f32 %v3288_v35, %v3027_v27 }
 0x294   :  { %1208 = vrot.lane.b32.xlu1 %v1198_v63, %s2749_s27  ;;  %v1011_v63 = vmul.f32 %v3196_v42, %v2997_v3  ;;  %v1043_v42 = vmul.f32 %v3253_v61, %v3021_v23 }
 0x295   :  { %1391 = vrot.lane.b32.xlu0 %v1382_v2, %s2747_s18  ;;  %v3260_v31 = vpop.permute.xlu1 %1440 }
 0x296   :  { %v1445_v51 = vmul.f32 %v3260_v31, %v3027_v27  ;;  %v1446_v39 = vmul.f32 %v3260_v31, %v3011_v16 }
 0x298   :  { %1358 = vrot.lane.b32.xlu1 %v1350_v9, %s2748_s26  ;;  %v3302_v9 = vpop.permute.xlu0 %1656 }
 0x299   :  { %1395 = vrot.lane.b32.xlu0 %v1384_v11, %s2747_s18  ;;  %v1754_v11 = vmul.f32 %v3217_v17, %v3011_v16 }
 0x29a   :  { %v3268_v18 = vpop.permute.xlu1 %1625 }
 0x29b   :  { %v1630_v50 = vmul.f32 %v3268_v18, %v3027_v27  ;;  %v1631_v49 = vmul.f32 %v3268_v18, %v3011_v16 }
 0x29c   :  { %1393 = vrot.lane.b32.xlu1 %v1383_v20, %s2747_s18  ;;  %v1044_v20 = vmul.f32 %v3253_v61, %v3027_v27 }
 0x29d   :  { %1576 = vrot.lane.b32.xlu0 %v1567_v25, %s2748_s26 }
 0x29f   :  { %v3278_v30 = vpop.permute.xlu1 %1995 }
 0x2a0   :  { %1543 = vrot.lane.b32.xlu1 %v1535_v26, %s2746_s0  ;;  %v1196_v26 = vmul.f32 %v3202_v59, %v2997_v3  ;;  %v1228_v59 = vmul.f32 %v3224_v21, %v3021_v23 }
 0x2a1   :  { %1580 = vrot.lane.b32.xlu0 %v1569_v33, %s2748_s26  ;;  %v3316_v33 = vpop.permute.xlu0 %1687 }
 0x2a4   :  { %1578 = vrot.lane.b32.xlu1 %v1568_v24, %s2748_s26  ;;  %v3291_v10 = vpop.permute.xlu1 %1471  ;;  %v1045_v24 = vmul.f32 %v3253_v61, %v3011_v16  ;;  %v1412_v61 = vmul.f32 %v3231_v28, %v2997_v3 }
 0x2a5   :  { %1763 = vrot.lane.b32.xlu0 %v1753_v40, %s2746_s0 }
 0x2a8   :  { %1761 = vrot.lane.b32.xlu1 %v1752_v44, %s2746_s0  ;;  %v1229_v44 = vmul.f32 %v3224_v21, %v3027_v27 }
 0x2a9   :  { %1019 = vrot.lane.b32.xlu0 %v1011_v63, %s2723_s1  ;;  %v3300_v2 = vpop.permute.xlu1 %1841  ;;  %v3328_v63 = vpop.permute.xlu0 %1903 }
 0x2ac   :  { %1765 = vrot.lane.b32.xlu1 %v1754_v11, %s2746_s0  ;;  %v1381_v11 = vmul.f32 %v1379_v1, %v2997_v3  ;;  %v1413_v1 = vmul.f32 %v3231_v28, %v3021_v23 }
 0x2ad   :  { %1054 = vrot.lane.b32.xlu0 %v1044_v20, %s2750_s28 }
 0x2ae   :  { %v3310_v25 = vpop.permute.xlu1 %2026 }
 0x2b0   :  { %1052 = vrot.lane.b32.xlu1 %v1043_v42, %s2750_s28  ;;  %v1230_v42 = vmul.f32 %v3224_v21, %v3011_v16  ;;  %v1259_v21 = vmul.f32 %v3275_v38, %v3021_v23 }
 0x2b1   :  { %1204 = vrot.lane.b32.xlu0 %v1196_v26, %s2749_s27  ;;  %v1414_v26 = vmul.f32 %v3231_v28, %v3027_v27 }
 0x2b3   :  { %v3322_v40 = vpop.permute.xlu1 %1872 }
 0x2b4   :  { %1056 = vrot.lane.b32.xlu1 %v1045_v24, %s2750_s28  ;;  %v3341_v24 = vpop.permute.xlu0 %1092 }
 0x2b5   :  { %1239 = vrot.lane.b32.xlu0 %v1229_v44, %s2723_s1 }
 0x2b8   :  { %1237 = vrot.lane.b32.xlu1 %v1228_v59, %s2723_s1  ;;  %v3334_v20 = vpop.permute.xlu1 %2057  ;;  %v1566_v59 = vmul.f32 %v3209_v5, %v2997_v3  ;;  %v1598_v5 = vmul.f32 %v3264_v13, %v3021_v23 }
 0x2b9   :  { %1389 = vrot.lane.b32.xlu0 %v1381_v11, %s2747_s18  ;;  %v3353_v11 = vpop.permute.xlu0 %1740 }
 0x2ba   :  { %4407 = vst [vmem:[#allocation36_spill] sm:$0xff] %v3353_v11  ;;  %v1258_v11 = vmul.f32 %v3275_v38, %v2997_v3  ;;  %v1443_v38 = vmul.f32 %v3260_v31, %v2997_v3 }
 0x2bc   :  { %1241 = vrot.lane.b32.xlu1 %v1230_v42, %s2723_s1  ;;  %v1415_v42 = vmul.f32 %v3231_v28, %v3011_v16  ;;  %v1444_v28 = vmul.f32 %v3260_v31, %v3021_v23  ;;  %v1660_v31 = vmul.f32 %v3302_v9, %v3021_v23 }
 0x2bd   :  { %1424 = vrot.lane.b32.xlu0 %v1414_v26, %s2749_s27  ;;  %v3345_v44 = vpop.permute.xlu1 %2088  ;;  %v1599_v26 = vmul.f32 %v3264_v13, %v3027_v27 }
 0x2c0   :  { %1422 = vrot.lane.b32.xlu1 %v1413_v1, %s2749_s27 }
 0x2c1   :  { %1574 = vrot.lane.b32.xlu0 %v1566_v59, %s2748_s26  ;;  %v1751_v59 = vmul.f32 %v3217_v17, %v2997_v3  ;;  %v1783_v17 = vmul.f32 %v3240_v36, %v3021_v23 }
 0x2c2   :  { %v3355_v48 = vpop.permute.xlu1 %2119 }
 0x2c4   :  { %1426 = vrot.lane.b32.xlu1 %v1415_v42, %s2749_s27  ;;  %v1600_v42 = vmul.f32 %v3264_v13, %v3011_v16  ;;  %v1629_v13 = vmul.f32 %v3268_v18, %v3021_v23 }
 0x2c5   :  { %1609 = vrot.lane.b32.xlu0 %v1599_v26, %s2747_s18  ;;  %v1784_v26 = vmul.f32 %v3240_v36, %v3027_v27 }
 0x2c6   :  { %v3363_v47 = vpop.permute.xlu0 %1117 }
 0x2c7   :  { %v3367_v1 = vpop.permute.xlu1 %1308 }
 0x2c8   :  { %4408 = vst [vmem:[#allocation37_spill] sm:$0xff] %v3367_v1  ;;  %1607 = vrot.lane.b32.xlu1 %v1598_v5, %s2747_s18  ;;  %v1968_v5 = vmul.f32 %v3250_v58, %v3027_v27  ;;  %v1662_v1 = vmul.f32 %v3302_v9, %v3011_v16 }
 0x2c9   :  { %1759 = vrot.lane.b32.xlu0 %v1751_v59, %s2746_s0 }
 0x2ca   :  { %v3373_v60 = vpop.permute.xlu0 %1111 }
 0x2cc   :  { %1611 = vrot.lane.b32.xlu1 %v1600_v42, %s2747_s18  ;;  %v3380_v54 = vpop.permute.xlu1 %1524  ;;  %v1785_v42 = vmul.f32 %v3240_v36, %v3011_v16  ;;  %v1814_v36 = vmul.f32 %v3288_v35, %v3021_v23 }
 0x2cd   :  { %4409 = vst [vmem:[#allocation38_spill] sm:$0xff] %v3380_v54  ;;  %1794 = vrot.lane.b32.xlu0 %v1784_v26, %s2748_s26  ;;  %v3397_v26 = vld [vmem:[#allocation2 + $0x20] sm:$0xff] }
 0x2ce   :  { %v3383_v46 = vpop.permute.xlu0 %1146  ;;  %v1970_v53 = vmul.f32 %v3397_v26, %v3250_v58 }
 0x2d0   :  { %1792 = vrot.lane.b32.xlu1 %v1783_v17, %s2748_s26  ;;  %v3390_v59 = vpop.permute.xlu1 %1113  ;;  %v1969_v17 = vmul.f32 %v3250_v58, %v3011_v16 }
 0x2d1   :  { %1977 = vrot.lane.b32.xlu0 %v1968_v5, %s2746_s0 }
 0x2d3   :  { %v3395_v57 = vpop.permute.xlu0 %1329 }
 0x2d4   :  { %4410 = vst [vmem:[#allocation39_spill] sm:$0xff] %v3395_v57  ;;  %1796 = vrot.lane.b32.xlu1 %v1785_v42, %s2748_s26  ;;  %v3405_v45 = vpop.permute.xlu1 %1115  ;;  %v1846_v57 = vmul.f32 %v3300_v2, %v3027_v27 }
 0x2d5   :  { %1981 = vrot.lane.b32.xlu0 %v1970_v53, %s2746_s0 }
 0x2d7   :  { %v3407_v5 = vpop.permute.xlu0 %1333 }
 0x2d8   :  { %4411 = vst [vmem:[#allocation40_spill] sm:$0xff] %v3407_v5  ;;  %1979 = vrot.lane.b32.xlu1 %v1969_v17, %s2746_s0  ;;  %v1847_v5 = vmul.f32 %v3300_v2, %v3011_v16 }
 0x2d9   :  { %1235 = vrot.lane.b32.xlu0 %v1227_v43, %s2723_s1 }
 0x2db   :  { %v3415_v42 = vpop.permute.xlu0 %992  ;;  %v3417_v53 = vpop.permute.xlu1 %1956 }
 0x2dc   :  { %4412 = vst [vmem:[#allocation41_spill] sm:$0xff] %v3417_v53  ;;  %1050 = vrot.lane.b32.xlu1 %v1042_v52, %s2750_s28  ;;  %v1816_v53 = vmul.f32 %v3288_v35, %v3011_v16 }
 0x2dd   :  { %1270 = vrot.lane.b32.xlu0 %v1260_v19, %s2750_s28 }
 0x2df   :  { %v3425_v17 = vpop.permute.xlu0 %1142  ;;  %v3427_v43 = vpop.permute.xlu1 %1144 }
 0x2e0   :  { %1268 = vrot.lane.b32.xlu1 %v1259_v21, %s2750_s28 }
 0x2e1   :  { %1420 = vrot.lane.b32.xlu0 %v1412_v61, %s2749_s27 }
 0x2e3   :  { %v3435_v52 = vpop.permute.xlu0 %1177  ;;  %v3437_v19 = vpop.permute.xlu1 %1148 }
 0x2e4   :  { %1272 = vrot.lane.b32.xlu1 %v1261_v41, %s2750_s28 }
 0x2e5   :  { %1455 = vrot.lane.b32.xlu0 %v1445_v51, %s2723_s1 }
 0x2e7   :  { %v3445_v21 = vpop.permute.xlu0 %1327  ;;  %v3447_v61 = vpop.permute.xlu1 %1331 }
 0x2e8   :  { %4413 = vst [vmem:[#allocation42_spill] sm:$0xff] %v3445_v21  ;;  %4414 = vst [vmem:[#allocation43_spill] sm:$0xff] %v3447_v61  ;;  %1453 = vrot.lane.b32.xlu1 %v1444_v28, %s2723_s1  ;;  %v1967_v21 = vmul.f32 %v3250_v58, %v3021_v23  ;;  %v1999_v58 = vmul.f32 %v3278_v30, %v3027_v27  ;;  %v1692_v61 = vmul.f32 %v3316_v33, %v3027_v27 }
 0x2e9   :  { %1605 = vrot.lane.b32.xlu0 %v1597_v14, %s2747_s18 }
 0x2eb   :  { %v3455_v41 = vpop.permute.xlu0 %1362  ;;  %v3457_v51 = vpop.permute.xlu1 %990 }
 0x2ec   :  { %4415 = vst [vmem:[#allocation44_spill] sm:$0xff] %v3455_v41  ;;  %1457 = vrot.lane.b32.xlu1 %v1446_v39, %s2723_s1  ;;  %v1475_v41 = vmul.f32 %v3291_v10, %v3021_v23 }
 0x2ed   :  { %1640 = vrot.lane.b32.xlu0 %v1630_v50, %s2749_s27 }
 0x2ef   :  { %v3465_v28 = vpop.permute.xlu0 %1545  ;;  %v3467_v14 = vpop.permute.xlu1 %994 }
 0x2f0   :  { %4416 = vst [vmem:[#allocation45_spill] sm:$0xff] %v3465_v28  ;;  %1638 = vrot.lane.b32.xlu1 %v1629_v13, %s2749_s27  ;;  %v2000_v28 = vmul.f32 %v3278_v30, %v3011_v16 }
 0x2f1   :  { %1790 = vrot.lane.b32.xlu0 %v1782_v6, %s2748_s26 }
 0x2f3   :  { %v3475_v39 = vpop.permute.xlu0 %1549  ;;  %v3477_v50 = vpop.permute.xlu1 %1175 }
 0x2f4   :  { %4417 = vst [vmem:[#allocation46_spill] sm:$0xff] %v3475_v39  ;;  %1642 = vrot.lane.b32.xlu1 %v1631_v49, %s2749_s27 }
 0x2f5   :  { %1825 = vrot.lane.b32.xlu0 %v1815_v37, %s2747_s18 }
 0x2f7   :  { %v3485_v13 = vpop.permute.xlu0 %1021  ;;  %v3487_v6 = vpop.permute.xlu1 %1179 }
 0x2f8   :  { %1823 = vrot.lane.b32.xlu1 %v1814_v36, %s2747_s18 }
 0x2f9   :  { %1975 = vrot.lane.b32.xlu0 %v1967_v21, %s2746_s0 }
 0x2fb   :  { %v3495_v49 = vpop.permute.xlu0 %1025  ;;  %v3497_v37 = vpop.permute.xlu1 %1360 }
 0x2fc   :  { %4418 = vst [vmem:[#allocation47_spill] sm:$0xff] %v3497_v37  ;;  %1827 = vrot.lane.b32.xlu1 %v1816_v53, %s2747_s18  ;;  %v2001_v37 = vmul.f32 %v3397_v26, %v3278_v30 }
 0x2fd   :  { %2010 = vrot.lane.b32.xlu0 %v2000_v28, %s2748_s26 }
 0x2ff   :  { %v3505_v36 = vpop.permute.xlu0 %1206  ;;  %v3507_v21 = vpop.permute.xlu1 %1364 }
 0x300   :  { %4419 = vst [vmem:[#allocation48_spill] sm:$0xff] %v3507_v21  ;;  %2008 = vrot.lane.b32.xlu1 %v1999_v58, %s2748_s26  ;;  %v1477_v21 = vmul.f32 %v3291_v10, %v3011_v16 }
 0x301   :  { %1266 = vrot.lane.b32.xlu0 %v1258_v11, %s2750_s28 }
 0x303   :  { %v3515_v53 = vpop.permute.xlu0 %1210  ;;  %v3517_v28 = vpop.permute.xlu1 %1547 }
 0x304   :  { %4420 = vst [vmem:[#allocation49_spill] sm:$0xff] %v3517_v28  ;;  %2012 = vrot.lane.b32.xlu1 %v2001_v37, %s2748_s26  ;;  %v1476_v28 = vmul.f32 %v3291_v10, %v3027_v27 }
 0x305   :  { %1484 = vrot.lane.b32.xlu0 %v1475_v41, %s2750_s28 }
 0x307   :  { %v3525_v58 = vpop.permute.xlu0 %1391  ;;  %v3527_v11 = vpop.permute.xlu1 %988 }
 0x308   :  { %4421 = vst [vmem:[#allocation50_spill] sm:$0xff] %v3525_v58  ;;  %1451 = vrot.lane.b32.xlu1 %v1443_v38, %s2723_s1  ;;  %v1628_v58 = vmul.f32 %v3268_v18, %v2997_v3  ;;  %v1845_v18 = vmul.f32 %v3300_v2, %v3021_v23 }
 0x309   :  { %1488 = vrot.lane.b32.xlu0 %v1477_v21, %s2750_s28 }
 0x30b   :  { %v3535_v37 = vpop.permute.xlu0 %1395  ;;  %v3537_v41 = vpop.permute.xlu1 %1023 }
 0x30c   :  { %4422 = vst [vmem:[#allocation51_spill] sm:$0xff] %v3535_v37  ;;  %1486 = vrot.lane.b32.xlu1 %v1476_v28, %s2750_s28  ;;  %v1661_v37 = vmul.f32 %v3302_v9, %v3027_v27 }
 0x30d   :  { %1669 = vrot.lane.b32.xlu0 %v1660_v31, %s2723_s1 }
 0x30f   :  { %v3545_v38 = vpop.permute.xlu0 %1576  ;;  %v3547_v21 = vpop.permute.xlu1 %1173 }
 0x310   :  { %4423 = vst [vmem:[#allocation52_spill] sm:$0xff] %v3545_v38  ;;  %1636 = vrot.lane.b32.xlu1 %v1628_v58, %s2749_s27  ;;  %v1813_v38 = vmul.f32 %v3288_v35, %v2997_v3  ;;  %v2030_v3 = vmul.f32 %v3310_v25, %v3027_v27  ;;  %v1998_v35 = vmul.f32 %v3278_v30, %v3021_v23 }
 0x311   :  { %1673 = vrot.lane.b32.xlu0 %v1662_v1, %s2723_s1 }
 0x313   :  { %v3555_v28 = vpop.permute.xlu0 %1580  ;;  %v3557_v31 = vpop.permute.xlu1 %1208 }
 0x314   :  { %4424 = vst [vmem:[#allocation53_spill] sm:$0xff] %v3555_v28  ;;  %1671 = vrot.lane.b32.xlu1 %v1661_v37, %s2723_s1 }
 0x315   :  { %1854 = vrot.lane.b32.xlu0 %v1845_v18, %s2749_s27 }
 0x317   :  { %v3565_v58 = vpop.permute.xlu0 %1763  ;;  %v3567_v1 = vpop.permute.xlu1 %1358 }
 0x318   :  { %4425 = vst [vmem:[#allocation54_spill] sm:$0xff] %v3565_v58  ;;  %4426 = vst [vmem:[#allocation55_spill] sm:$0xff] %v3567_v1  ;;  %1821 = vrot.lane.b32.xlu1 %v1813_v38, %s2747_s18  ;;  %v2032_v58 = vmul.f32 %v3397_v26, %v3310_v25  ;;  %v2031_v1 = vmul.f32 %v3310_v25, %v3011_v16 }
 0x319   :  { %1858 = vrot.lane.b32.xlu0 %v1847_v5, %s2749_s27 }
 0x31b   :  { %v3575_v37 = vpop.permute.xlu0 %1019  ;;  %v3577_v18 = vpop.permute.xlu1 %1393 }
 0x31c   :  { %4427 = vst [vmem:[#allocation56_spill] sm:$0xff] %v3577_v18  ;;  %1856 = vrot.lane.b32.xlu1 %v1846_v57, %s2749_s27  ;;  %v3599_v18 = vld [vmem:[#allocation2] sm:$0xff] }
 0x31d   :  { %2039 = vrot.lane.b32.xlu0 %v2030_v3, %s2747_s18  ;;  %v1659_v30 = vmul.f32 %v3599_v18, %v3302_v9  ;;  %v1691_v9 = vmul.f32 %v3316_v33, %v3021_v23  ;;  %v879_v39 = vmul.f32 %v3599_v18, %v3104_v12 }
 0x31f   :  { %v3585_v38 = vpop.permute.xlu0 %1054  ;;  %v3587_v5 = vpop.permute.xlu1 %1543 }
 0x320   :  { %4428 = vst [vmem:[#allocation57_spill] sm:$0xff] %v3587_v5  ;;  %2006 = vrot.lane.b32.xlu1 %v1998_v35, %s2748_s26  ;;  %v1474_v35 = vmul.f32 %v3599_v18, %v3291_v10  ;;  %v1844_v10 = vmul.f32 %v3599_v18, %v3300_v2  ;;  %v1876_v2 = vmul.f32 %v3322_v40, %v3021_v23 }
 0x321   :  { %2043 = vrot.lane.b32.xlu0 %v2032_v58, %s2747_s18 }
 0x323   :  { %v3595_v57 = vpop.permute.xlu0 %1204  ;;  %v3597_v3 = vpop.permute.xlu1 %1578 }
 0x324   :  { %4429 = vst [vmem:[#allocation58_spill] sm:$0xff] %v3595_v57  ;;  %4430 = vst [vmem:[#allocation59_spill] sm:$0xff] %v3597_v3  ;;  %2041 = vrot.lane.b32.xlu1 %v2031_v1, %s2747_s18  ;;  %v1693_v3 = vmul.f32 %v3316_v33, %v3011_v16  ;;  %v2029_v16 = vmul.f32 %v3310_v25, %v3021_v23  ;;  %v2061_v23 = vmul.f32 %v3334_v20, %v3027_v27 }
 0x325   :  { %1667 = vrot.lane.b32.xlu0 %v1659_v30, %s2723_s1 }
 0x327   :  { %v3607_v58 = vpop.permute.xlu0 %1239  ;;  %v3609_v5 = vpop.permute.xlu1 %1761 }
 0x328   :  { %4431 = vst [vmem:[#allocation60_spill] sm:$0xff] %v3609_v5  ;;  %1482 = vrot.lane.b32.xlu1 %v1474_v35, %s2750_s28  ;;  %v1877_v5 = vmul.f32 %v3322_v40, %v3027_v27 }
 0x329   :  { %1702 = vrot.lane.b32.xlu0 %v1692_v61, %s2750_s28 }
 0x32b   :  { %v3617_v1 = vpop.permute.xlu0 %1389  ;;  %v3619_v30 = vpop.permute.xlu1 %1765 }
 0x32c   :  { %4432 = vst [vmem:[#allocation61_spill] sm:$0xff] %v3617_v1  ;;  %4433 = vst [vmem:[#allocation62_spill] sm:$0xff] %v3619_v30  ;;  %1700 = vrot.lane.b32.xlu1 %v1691_v9, %s2750_s28  ;;  %v3645_v1 = vld [vmem:[#allocation2 + $0x18] sm:$0xff]  ;;  %v3673_v30 = vld [vmem:[#allocation2 + $0x8] sm:$0xff] }
 0x32d   :  { %1852 = vrot.lane.b32.xlu0 %v1844_v10, %s2749_s27  ;;  %v1907_v27 = vmul.f32 %v3673_v30, %v3328_v63  ;;  %v2091_v28 = vmul.f32 %v3673_v30, %v3345_v44  ;;  %v880_v54 = vmul.f32 %v3673_v30, %v3104_v12 }
 0x32f   :  { %v3627_v35 = vpop.permute.xlu0 %1424  ;;  %v3629_v61 = vpop.permute.xlu1 %1052 }
 0x330   :  { %4434 = vst [vmem:[#allocation63_spill] sm:$0xff] %v3627_v35  ;;  %1704 = vrot.lane.b32.xlu1 %v1693_v3, %s2750_s28  ;;  %v1878_v3 = vmul.f32 %v3645_v1, %v3322_v40 }
 0x331   :  { %1887 = vrot.lane.b32.xlu0 %v1877_v5, %s2723_s1 }
 0x333   :  { %v3637_v9 = vpop.permute.xlu0 %1574  ;;  %v3639_v10 = vpop.permute.xlu1 %1056 }
 0x334   :  { %4435 = vst [vmem:[#allocation64_spill] sm:$0xff] %v3637_v9  ;;  %1885 = vrot.lane.b32.xlu1 %v1876_v2, %s2723_s1  ;;  %v2062_v9 = vmul.f32 %v3645_v1, %v3334_v20 }
 0x335   :  { %2037 = vrot.lane.b32.xlu0 %v2029_v16, %s2747_s18  ;;  %v1690_v16 = vmul.f32 %v3599_v18, %v3316_v33  ;;  %v1875_v33 = vmul.f32 %v3599_v18, %v3322_v40 }
 0x337   :  { %v3649_v5 = vpop.permute.xlu0 %1609  ;;  %v3651_v35 = vpop.permute.xlu1 %1237 }
 0x338   :  { %4436 = vst [vmem:[#allocation65_spill] sm:$0xff] %v3649_v5  ;;  %1889 = vrot.lane.b32.xlu1 %v1878_v3, %s2723_s1  ;;  %v2063_v5 = vmul.f32 %v3397_v26, %v3334_v20 }
 0x339   :  { %2072 = vrot.lane.b32.xlu0 %v2062_v9, %s2749_s27 }
 0x33b   :  { %v3659_v25 = vpop.permute.xlu0 %1759  ;;  %v3661_v2 = vpop.permute.xlu1 %1241 }
 0x33c   :  { %4437 = vst [vmem:[#allocation66_spill] sm:$0xff] %v3659_v25  ;;  %2070 = vrot.lane.b32.xlu1 %v2061_v23, %s2749_s27  ;;  %v3689_v25 = vld [vmem:[#allocation2 + $0x10] sm:$0xff] }
 0x33d   :  { %1698 = vrot.lane.b32.xlu0 %v1690_v16, %s2750_s28  ;;  %v2092_v40 = vmul.f32 %v3689_v25, %v3345_v44 }
 0x33f   :  { %v3669_v3 = vpop.permute.xlu0 %1794  ;;  %v3671_v9 = vpop.permute.xlu1 %1422 }
 0x340   :  { %4438 = vst [vmem:[#allocation67_spill] sm:$0xff] %v3669_v3  ;;  %4439 = vst [vmem:[#allocation68_spill] sm:$0xff] %v3671_v9  ;;  %2074 = vrot.lane.b32.xlu1 %v2063_v5, %s2749_s27  ;;  %v1909_v3 = vmul.f32 %v3645_v1, %v3328_v63  ;;  %v1908_v5 = vmul.f32 %v3689_v25, %v3328_v63 }
 0x341   :  { %1916 = vrot.lane.b32.xlu0 %v1907_v27, %s2750_s28 }
 0x343   :  { %v3681_v23 = vpop.permute.xlu0 %1977  ;;  %v3683_v16 = vpop.permute.xlu1 %1426 }
 0x344   :  { %4440 = vst [vmem:[#allocation69_spill] sm:$0xff] %v3681_v23  ;;  %4441 = vst [vmem:[#allocation70_spill] sm:$0xff] %v3683_v16  ;;  %1883 = vrot.lane.b32.xlu1 %v1875_v33, %s2723_s1  ;;  %v2060_v33 = vmul.f32 %v3673_v30, %v3334_v20  ;;  %v2094_v16 = vmul.f32 %v3397_v26, %v3345_v44  ;;  %v905_v20 = vsel %vm741_vm10, %v3080_v55, %v3121_v29 }
 0x345   :  { %1920 = vrot.lane.b32.xlu0 %v1909_v3, %s2750_s28 }
 0x347   :  { %v3693_v27 = vpop.permute.xlu0 %1981  ;;  %v3695_v9 = vpop.permute.xlu1 %1607 }
 0x348   :  { %4442 = vst [vmem:[#allocation71_spill] sm:$0xff] %v3693_v27  ;;  %4443 = vst [vmem:[#allocation72_spill] sm:$0xff] %v3695_v9  ;;  %1918 = vrot.lane.b32.xlu1 %v1908_v5, %s2750_s28  ;;  %v882_v5 = vmul.f32 %v3645_v1, %v3104_v12  ;;  %v881_v27 = vmul.f32 %v3689_v25, %v3104_v12 }
 0x349   :  { %2101 = vrot.lane.b32.xlu0 %v2092_v40, %s2723_s1  ;;  %v2093_v40 = vmul.f32 %v3645_v1, %v3345_v44  ;;  %v935_v44 = vsel %vm766_vm11, %v3156_v0, %v3082_v56 }
 0x34b   :  { %v3703_v3 = vpop.permute.xlu0 %1235  ;;  %v3705_v23 = vpop.permute.xlu1 %1611 }
 0x34c   :  { %4444 = vst [vmem:[#allocation73_spill] sm:$0xff] %v3703_v3  ;;  %4445 = vst [vmem:[#allocation74_spill] sm:$0xff] %v3705_v23  ;;  %2068 = vrot.lane.b32.xlu1 %v2060_v33, %s2749_s27  ;;  %v903_v33 = vsel %vm741_vm10, %v3117_v22, %v3153_v62  ;;  %v936_v22 = vsel %vm766_vm11, %v3082_v56, %v3130_v34  ;;  %v967_v3 = vsel %vm791_vm12, %v3161_v7, %v3170_v15 }
 0x34d   :  { %2105 = vrot.lane.b32.xlu0 %v2094_v16, %s2723_s1  ;;  %v904_v16 = vsel %vm741_vm10, %v3153_v62, %v3080_v55  ;;  %v912_v55 = vadd.f32 %v905_v20, %v881_v27  ;;  %v934_v62 = vsel %vm766_vm11, %v3126_v32, %v3156_v0  ;;  %v913_v27 = vadd.f32 %v3121_v29, %v882_v5 }
 0x34e   :  { %v911_v12 = vadd.f32 %v904_v16, %v880_v54  ;;  %v2124_v56 = vmul.f32 %v3645_v1, %v3355_v48  ;;  %v965_v29 = vsel %vm791_vm12, %v3159_v4, %v3164_v8  ;;  %v1096_v5 = vmul.f32 %v3673_v30, %v3341_v24 }
 0x34f   :  { %v3726_v9 = vpop.permute.xlu0 %1270  ;;  %v3728_v23 = vpop.permute.xlu1 %1792  ;;  %v943_v20 = vadd.f32 %v936_v22, %v912_v55  ;;  %v1029_v16 = vsel %vm841_vm14, %v3537_v41, %v3495_v49  ;;  %v2123_v4 = vmul.f32 %v3689_v25, %v3355_v48  ;;  %v997_v22 = vsel %vm816_vm13, %v3457_v51, %v3415_v42 }
 0x350   :  { %4446 = vst [vmem:[#allocation75_spill] sm:$0xff] %v3728_v23  ;;  %2103 = vrot.lane.b32.xlu1 %v2093_v40, %s2723_s1  ;;  %v910_v23 = vadd.f32 %v903_v33, %v879_v39  ;;  %v1906_v40 = vmul.f32 %v3599_v18, %v3328_v63  ;;  %v942_v54 = vadd.f32 %v935_v44, %v911_v12 }
 0x351   :  { %2099 = vrot.lane.b32.xlu0 %v2091_v28, %s2723_s1  ;;  %v1120_v39 = vsel %vm741_vm10, %v3390_v59, %v3405_v45  ;;  %v998_v63 = vsel %vm816_vm13, %v3415_v42, %v3467_v14  ;;  %v966_v28 = vsel %vm791_vm12, %v3164_v8, %v3161_v7  ;;  %v1151_v33 = vsel %vm766_vm11, %v3427_v43, %v3383_v46  ;;  %s2799_s1 = smov 96  }
 0x352   :  { %v941_v0 = vadd.f32 %v934_v62, %v910_v23  ;;  %v974_v23 = vadd.f32 %v967_v3, %v943_v20  ;;  %v2122_v7 = vmul.f32 %v3673_v30, %v3355_v48  ;;  %v1121_v8 = vsel %vm741_vm10, %v3405_v45, %v3363_v47 }
 0x353   :  { %v3753_v32 = vpop.permute.xlu0 %1420  ;;  %v3755_v57 = vpop.permute.xlu1 %1796  ;;  %v1127_v3 = vadd.f32 %v1120_v39, %v1096_v5  ;;  %v973_v12 = vadd.f32 %v966_v28, %v942_v54  ;;  %v1182_v20 = vsel %vm791_vm12, %v3477_v50, %v3435_v52  ;;  %v1060_v45 = vsel %vm866_vm15, %v3585_v38, %v3639_v10 }
 0x354   :  { %4447 = vst [vmem:[#allocation76_spill] sm:$0xff] %v3755_v57  ;;  %1914 = vrot.lane.b32.xlu1 %v1906_v40, %s2750_s28  ;;  %v1005_v55 = vadd.f32 %v998_v63, %v974_v23  ;;  %v1097_v40 = vmul.f32 %v3689_v25, %v3341_v24  ;;  %v2125_v54 = vmul.f32 %v3397_v26, %v3355_v48 }
 0x355   :  { %2134 = vrot.lane.b32.xlu0 %v2124_v56, %s2750_s28  ;;  %v1158_v42 = vadd.f32 %v1151_v33, %v1127_v3  ;;  %v1028_v56 = vsel %vm841_vm14, %v3485_v13, %v3537_v41  ;;  %v1152_v28 = vsel %vm766_vm11, %v3383_v46, %v3437_v19  ;;  %v1004_v23 = vadd.f32 %v997_v22, %v973_v12 }
 0x356   :  { %v1036_v39 = vadd.f32 %v1029_v16, %v1005_v55  ;;  %v1128_v63 = vadd.f32 %v1121_v8, %v1097_v40  ;;  %v1213_v5 = vsel %vm816_vm13, %v3505_v36, %v3557_v31  ;;  %v996_v41 = vsel %vm816_vm13, %v3527_v11, %v3457_v51 }
 0x357   :  { %v3791_v62 = vpop.permute.xlu0 %1455  ;;  %v3793_v44 = vpop.permute.xlu1 %1979  ;;  %v1189_v33 = vadd.f32 %v1182_v20, %v1158_v42  ;;  %v1059_v16 = vsel %vm866_vm15, %v3629_v61, %v3585_v38  ;;  %v972_v8 = vadd.f32 %v965_v29, %v941_v0  ;;  %v1183_v46 = vsel %vm791_vm12, %v3435_v52, %v3487_v6 }
 0x358   :  { %4448 = vst [vmem:[#allocation77_spill] sm:$0xff] %v3793_v44  ;;  %2132 = vrot.lane.b32.xlu1 %v2123_v4, %s2750_s28  ;;  %v1067_v48 = vadd.f32 %v1060_v45, %v1036_v39  ;;  %v1035_v3 = vadd.f32 %v1028_v56, %v1004_v23  ;;  %v1244_v22 = vsel %vm841_vm14, %v3651_v35, %v3607_v58  ;;  %v4475_v44 = vld [vmem:[#allocation68_spill] sm:$0xff] }
 0x359   :  { %2130 = vrot.lane.b32.xlu0 %v2122_v7, %s2750_s28  ;;  %v944_v51 = vadd.f32 %v3130_v34, %v913_v27  ;;  %v1159_v11 = vadd.f32 %v1152_v28, %v1128_v63  ;;  %v1220_v38 = vadd.f32 %v1213_v5, %v1189_v33  ;;  %v1027_v55 = vsel %vm841_vm14, %v3575_v37, %v3485_v13 }
 0x35a   :  { %v1003_v0 = vadd.f32 %v996_v41, %v972_v8  ;;  %v1214_v52 = vsel %vm816_vm13, %v3557_v31, %v3515_v53  ;;  %v1066_v29 = vadd.f32 %v1059_v16, %v1035_v3  ;;  %v1245_v37 = vsel %vm841_vm14, %v3607_v58, %v3661_v2 }
 0x35b   :  { %v3822_v4 = vpop.permute.xlu0 %1605  ;;  %v1051_v7 = vpop.permute.xlu1 %1050  ;;  %v975_v12 = vadd.f32 %v3170_v15, %v944_v51  ;;  %v1190_v40 = vadd.f32 %v1183_v46, %v1159_v11  ;;  %v1251_v20 = vadd.f32 %v1244_v22, %v1220_v38  ;;  %v1119_v33 = vsel %vm741_vm10, %v3373_v60, %v3390_v59  ;;  %v4450_v60 = vld [vmem:[#allocation58_spill] sm:$0xff] }
 0x35c   :  { %2136 = vrot.lane.b32.xlu1 %v2125_v54, %s2750_s28  ;;  %v1058_v34 = vsel %vm866_vm15, %v1051_v7, %v3629_v61  ;;  %v1034_v13 = vadd.f32 %v1027_v55, %v1003_v0  ;;  %v1095_v41 = vmul.f32 %v3599_v18, %v3341_v24  ;;  %v1181_v7 = vsel %vm791_vm12, %v3547_v21, %v3477_v50 }
 0x35d   :  { %1077 = vrot.lane.b32.xlu0 %v1067_v48, %s2789_s29  ;;  %v1006_v15 = vadd.f32 %v3467_v14, %v975_v12  ;;  %v1221_v31 = vadd.f32 %v1214_v52, %v1190_v40  ;;  %v1212_v59 = vsel %vm816_vm13, %v4450_v60, %v3505_v36 }
 0x35e   :  { %v1065_v39 = vadd.f32 %v1058_v34, %v1034_v13  ;;  %v4456_v13 = vld [vmem:[#allocation53_spill] sm:$0xff] }
 0x35f   :  { %v3842_v27 = vpop.permute.xlu0 %1640  ;;  %v1269_v45 = vpop.permute.xlu1 %1268  ;;  %v1037_v61 = vadd.f32 %v3495_v49, %v1006_v15  ;;  %v1252_v54 = vadd.f32 %v1245_v37, %v1221_v31  ;;  %v4457_v31 = vld [vmem:[#allocation43_spill] sm:$0xff] }
 0x360   :  { %v1275_v42 = vsel %vm866_vm15, %v1269_v45, %v3726_v9  ;;  %1075 = vrot.lane.b32.xlu1 %v1066_v29, %s2789_s29  ;;  %v4453_v29 = vld [vmem:[#allocation38_spill] sm:$0xff] }
 0x361   :  { %v1282_v56 = vadd.f32 %v1275_v42, %v1251_v20  ;;  %v1068_v14 = vadd.f32 %v3639_v10, %v1037_v61  ;;  %v1126_v10 = vadd.f32 %v1119_v33, %v1095_v41  ;;  %v4454_v20 = vld [vmem:[#allocation46_spill] sm:$0xff]  ;;  %v4459_v61 = vld [vmem:[#allocation40_spill] sm:$0xff] }
 0x363   :  { %v3852_v63 = vpop.permute.xlu0 %1790  ;;  %1291 = vrot.lane.b32.xlu0 %v1282_v56, %s2790_s30  ;;  %v3855_v28 = vpop.permute.xlu1 %1272  ;;  %v4458_v56 = vld [vmem:[#allocation39_spill] sm:$0xff] }
 0x364   :  { %v1276_v58 = vsel %vm866_vm15, %v3726_v9, %v3855_v28  ;;  %1073 = vrot.lane.b32.xlu1 %v1065_v39, %s2789_s29  ;;  %v1150_v9 = vsel %vm766_vm11, %v3425_v17, %v3427_v43  ;;  %v4451_v17 = vld [vmem:[#allocation73_spill] sm:$0xff]  ;;  %v1336_v39 = vsel %vm741_vm10, %v4458_v56, %v4457_v31 }
 0x365   :  { %v1283_v23 = vadd.f32 %v1276_v58, %v1252_v54  ;;  %v1157_v8 = vadd.f32 %v1150_v9, %v1126_v10  ;;  %v1243_v43 = vsel %vm841_vm14, %v4451_v17, %v3651_v35  ;;  %v1530_v35 = vmul.f32 %v3645_v1, %v4453_v29  ;;  %v4460_v58 = vld [vmem:[#allocation74_spill] sm:$0xff]  ;;  %v4463_v9 = vld [vmem:[#allocation44_spill] sm:$0xff]  ;;  %v4464_v10 = vld [vmem:[#allocation47_spill] sm:$0xff] }
 0x366   :  { %v1337_v54 = vsel %vm741_vm10, %v4457_v31, %v4459_v61 }
 0x367   :  { %v1826_v5 = vpop.permute.xlu0 %1825  ;;  %1079 = vrot.lane.b32.xlu0 %v1068_v14, %s2789_s29  ;;  %v3863_v49 = vpop.permute.xlu1 %1453  ;;  %v1188_v46 = vadd.f32 %v1181_v7, %v1157_v8  ;;  %v1561_v34 = vadd.f32 %v4454_v20, %v1530_v35  ;;  %v1367_v7 = vsel %vm766_vm11, %v4464_v10, %v4463_v9  ;;  %v4465_v8 = vld [vmem:[#allocation48_spill] sm:$0xff] }
 0x368   :  { %1293 = vrot.lane.b32.xlu1 %v1283_v23, %s2790_s30  ;;  %v1368_v60 = vsel %vm766_vm11, %v4463_v9, %v4465_v8 }
 0x369   :  { %v1219_v51 = vadd.f32 %v1212_v59, %v1188_v46  ;;  %v1592_v37 = vadd.f32 %v4456_v13, %v1561_v34  ;;  %v4470_v34 = vld [vmem:[#allocation51_spill] sm:$0xff] }
 0x36b   :  { %v3874_v16 = vpop.permute.xlu0 %1975  ;;  %v3876_v48 = vpop.permute.xlu1 %1457  ;;  %v1250_v11 = vadd.f32 %v1243_v43, %v1219_v51  ;;  %v1623_v14 = vadd.f32 %v4460_v58, %v1592_v37  ;;  %v4466_v43 = vld [vmem:[#allocation36_spill] sm:$0xff] }
 0x36c   :  { %4449 = vst [vmem:[#allocation78_spill] sm:$0xff] %v3876_v48  ;;  %v1746_v51 = vmul.f32 %v3645_v1, %v4466_v43 }
 0x36f   :  { %v2011_v3 = vpop.permute.xlu0 %2010  ;;  %v3884_v22 = vpop.permute.xlu1 %1638 }
 0x373   :  { %v1267_v38 = vpop.permute.xlu0 %1266  ;;  %v3889_v55 = vpop.permute.xlu1 %1642 }
 0x374   :  { %v1274_v50 = vsel %vm866_vm15, %v1267_v38, %v1269_v45  ;;  %v1654_v59 = vadd.f32 %v3889_v55, %v1623_v14 }
 0x375   :  { %v1281_v21 = vadd.f32 %v1274_v50, %v1250_v11  ;;  %v4468_v50 = vld [vmem:[#allocation56_spill] sm:$0xff] }
 0x376   :  { %v1399_v37 = vsel %vm791_vm12, %v4468_v50, %v4470_v34 }
 0x377   :  { %v3892_v0 = vpop.permute.xlu0 %1484  ;;  %1289 = vrot.lane.b32.xlu1 %v1281_v21, %s2790_s30  ;;  %v3895_v36 = vpop.permute.xlu1 %1823  ;;  %v4469_v21 = vld [vmem:[#allocation50_spill] sm:$0xff] }
 0x378   :  { %v3899_v52 = vsel %vm791_vm12, %v3895_v36, %v1826_v5  ;;  %v1398_v35 = vsel %vm791_vm12, %v4469_v21, %v4468_v50 }
 0x379   :  { %4452 = vst [vmem:[#allocation58_spill] sm:$0xff] %v3899_v52  ;;  %v4476_v52 = vld [vmem:[#allocation70_spill] sm:$0xff] }
 0x37b   :  { %v3903_v12 = vpop.permute.xlu0 %1488  ;;  %v1828_v40 = vpop.permute.xlu1 %1827 }
 0x37c   :  { %v3907_v45 = vsel %vm791_vm12, %v1826_v5, %v1828_v40  ;;  %v4462_v5 = vld [vmem:[#allocation37_spill] sm:$0xff] }
 0x37d   :  { %4455 = vst [vmem:[#allocation73_spill] sm:$0xff] %v3907_v45  ;;  %v1312_v33 = vmul.f32 %v3673_v30, %v4462_v5  ;;  %v1313_v41 = vmul.f32 %v3689_v25, %v4462_v5 }
 0x37f   :  { %v3910_v42 = vpop.permute.xlu0 %1669  ;;  %v3912_v15 = vpop.permute.xlu1 %2008  ;;  %v1343_v46 = vadd.f32 %v1336_v39, %v1312_v33  ;;  %v1344_v17 = vadd.f32 %v1337_v54, %v1313_v41  ;;  %v1098_v54 = vmul.f32 %v3645_v1, %v3341_v24  ;;  %v4473_v41 = vld [vmem:[#allocation62_spill] sm:$0xff]  ;;  %v4477_v24 = vld [vmem:[#allocation45_spill] sm:$0xff] }
 0x380   :  { %v3923_v23 = vsel %vm766_vm11, %v3912_v15, %v2011_v3  ;;  %v1777_v9 = vadd.f32 %v4473_v41, %v1746_v51  ;;  %v1527_v51 = vmul.f32 %v3599_v18, %v4453_v29 }
 0x381   :  { %4461 = vst [vmem:[#allocation38_spill] sm:$0xff] %v3923_v23  ;;  %v1374_v14 = vadd.f32 %v1367_v7, %v1343_v46  ;;  %v1375_v33 = vadd.f32 %v1368_v60, %v1344_v17  ;;  %v4474_v23 = vld [vmem:[#allocation63_spill] sm:$0xff]  ;;  %v4478_v7 = vld [vmem:[#allocation57_spill] sm:$0xff]  ;;  %v1460_v17 = vsel %vm841_vm14, %v3863_v49, %v3791_v62 }
 0x382   :  { %v1429_v45 = vsel %vm816_vm13, %v4475_v44, %v4474_v23  ;;  %v1430_v50 = vsel %vm816_vm13, %v4474_v23, %v4476_v52  ;;  %v1551_v60 = vsel %vm741_vm10, %v4478_v7, %v4477_v24  ;;  %v1808_v46 = vadd.f32 %v3755_v57, %v1777_v9 }
 0x383   :  { %v3938_v11 = vpop.permute.xlu0 %1673  ;;  %v2013_v38 = vpop.permute.xlu1 %2012  ;;  %v1558_v57 = vadd.f32 %v1551_v60, %v1527_v51  ;;  %v4482_v60 = vld [vmem:[#allocation41_spill] sm:$0xff]  ;;  %v4483_v51 = vld [vmem:[#allocation71_spill] sm:$0xff] }
 0x384   :  { %4467 = vst [vmem:[#allocation46_spill] sm:$0xff] %v3938_v11  ;;  %v3947_v31 = vadd.f32 %v3938_v11, %v1654_v59  ;;  %v3950_v39 = vsel %vm766_vm11, %v2011_v3, %v2013_v38  ;;  %v1129_v59 = vadd.f32 %v3363_v47, %v1098_v54  ;;  %v1406_v3 = vadd.f32 %v1399_v37, %v1375_v33  ;;  %v4479_v54 = vld [vmem:[#allocation52_spill] sm:$0xff] }
 0x385   :  { %4472 = vst [vmem:[#allocation43_spill] sm:$0xff] %v3950_v39  ;;  %v1461_v47 = vsel %vm841_vm14, %v3791_v62, %v3876_v48  ;;  %v1839_v9 = vadd.f32 %v1828_v40, %v1808_v46  ;;  %v4481_v48 = vld [vmem:[#allocation72_spill] sm:$0xff]  ;;  %v1962_v46 = vmul.f32 %v3397_v26, %v4482_v60 }
 0x386   :  { %4471 = vst [vmem:[#allocation53_spill] sm:$0xff] %v3947_v31  ;;  %v1405_v31 = vadd.f32 %v1398_v35, %v1374_v14  ;;  %v1160_v23 = vadd.f32 %v3437_v19, %v1129_v59  ;;  %v1437_v37 = vadd.f32 %v1430_v50, %v1406_v3  ;;  %v4480_v14 = vld [vmem:[#allocation64_spill] sm:$0xff]  ;;  %v1613_v19 = vsel %vm791_vm12, %v3822_v4, %v4481_v48 }
 0x387   :  { %v3962_v39 = vpop.permute.xlu0 %1854  ;;  %v3964_v11 = vpop.permute.xlu1 %1451  ;;  %v1582_v33 = vsel %vm766_vm11, %v4480_v14, %v4479_v54  ;;  %v4484_v26 = vld [vmem:[#allocation60_spill] sm:$0xff]  ;;  %v1743_v14 = vmul.f32 %v3599_v18, %v4466_v43 }
 0x388   :  { %v1436_v35 = vadd.f32 %v1429_v45, %v1405_v31  ;;  %v1191_v7 = vadd.f32 %v3487_v6, %v1160_v23  ;;  %v1468_v52 = vadd.f32 %v1461_v47, %v1437_v37  ;;  %v1589_v50 = vadd.f32 %v1582_v33, %v1558_v57 }
 0x38a   :  { %v1467_v41 = vadd.f32 %v1460_v17, %v1436_v35  ;;  %v1222_v6 = vadd.f32 %v3515_v53, %v1191_v7  ;;  %v1620_v4 = vadd.f32 %v1613_v19, %v1589_v50  ;;  %v1993_v35 = vadd.f32 %v4483_v51, %v1962_v46  ;;  %v4486_v7 = vld [vmem:[#allocation75_spill] sm:$0xff]  ;;  %v4487_v46 = vld [vmem:[#allocation42_spill] sm:$0xff] }
 0x38b   :  { %v3983_v34 = vpop.permute.xlu0 %1858  ;;  %v1487_v62 = vpop.permute.xlu1 %1486 }
 0x38c   :  { %v3989_v45 = vadd.f32 %v3983_v34, %v1839_v9  ;;  %v1491_v31 = vsel %vm866_vm15, %v3892_v0, %v1487_v62  ;;  %v1492_v40 = vsel %vm866_vm15, %v1487_v62, %v3903_v12  ;;  %v1253_v17 = vadd.f32 %v3661_v2, %v1222_v6  ;;  %v4485_v2 = vld [vmem:[#allocation66_spill] sm:$0xff] }
 0x38d   :  { %v1498_v59 = vadd.f32 %v1491_v31, %v1467_v41  ;;  %v1499_v3 = vadd.f32 %v1492_v40, %v1468_v52  ;;  %v1767_v41 = vsel %vm741_vm10, %v4485_v2, %v4484_v26  ;;  %v2024_v37 = vadd.f32 %v2013_v38, %v1993_v35 }
 0x38e   :  { %v1284_v57 = vadd.f32 %v3855_v28, %v1253_v17  ;;  %v1798_v28 = vsel %vm766_vm11, %v3852_v63, %v4486_v7  ;;  %v1774_v19 = vadd.f32 %v1767_v41, %v1743_v14  ;;  %v1335_v63 = vsel %vm741_vm10, %v4487_v46, %v4458_v56  ;;  %v4488_v17 = vld [vmem:[#allocation69_spill] sm:$0xff] }
 0x38f   :  { %v3999_v47 = vpop.permute.xlu0 %2039  ;;  %1509 = vrot.lane.b32.xlu1 %v1499_v3, %s2791_s5  ;;  %1507 = vrot.lane.b32.xlu0 %v1498_v59, %s2791_s5  ;;  %v1637_v23 = vpop.permute.xlu1 %1636  ;;  %v1959_v35 = vmul.f32 %v3673_v30, %v4482_v60  ;;  %v4490_v14 = vld [vmem:[#allocation49_spill] sm:$0xff] }
 0x390   :  { %v1644_v53 = vsel %vm816_vm13, %v1637_v23, %v3884_v22  ;;  %v1805_v31 = vadd.f32 %v1798_v28, %v1774_v19  ;;  %v1311_v23 = vmul.f32 %v3599_v18, %v4462_v5  ;;  %v1552_v56 = vsel %vm741_vm10, %v4477_v24, %v4490_v14 }
 0x391   :  { %v4007_v52 = vadd.f32 %v1644_v53, %v1620_v4  ;;  %v1983_v4 = vsel %vm741_vm10, %v3874_v16, %v4488_v17  ;;  %v4491_v16 = vld [vmem:[#allocation61_spill] sm:$0xff] }
 0x392   :  { %v1990_v2 = vadd.f32 %v1983_v4, %v1959_v35  ;;  %v1397_v28 = vsel %vm791_vm12, %v4491_v16, %v4469_v21  ;;  %v1428_v21 = vsel %vm816_vm13, %v3753_v32, %v4475_v44  ;;  %v1314_v4 = vmul.f32 %v3645_v1, %v4462_v5 }
 0x393   :  { %v4014_v33 = vpop.permute.xlu0 %2043  ;;  %1295 = vrot.lane.b32.xlu0 %v1284_v57, %s2790_s30  ;;  %v4017_v9 = vpop.permute.xlu1 %1671  ;;  %v1342_v57 = vadd.f32 %v1335_v63, %v1311_v23  ;;  %v4492_v63 = vld [vmem:[#allocation59_spill] sm:$0xff]  ;;  %v1459_v32 = vsel %vm841_vm14, %v3964_v11, %v3863_v49  ;;  %v1529_v5 = vmul.f32 %v3689_v25, %v4453_v29 }
 0x394   :  { %v4023_v62 = vadd.f32 %v4014_v33, %v2024_v37  ;;  %v1583_v24 = vsel %vm766_vm11, %v4479_v54, %v4492_v63  ;;  %v1345_v44 = vadd.f32 %v4459_v61, %v1314_v4  ;;  %v4495_v4 = vld [vmem:[#allocation46_spill] sm:$0xff] }
 0x397   :  { %v4025_v40 = vpop.permute.xlu0 %1667  ;;  %v1822_v38 = vpop.permute.xlu1 %1821 }
 0x398   :  { %v1829_v6 = vsel %vm791_vm12, %v1822_v38, %v3895_v36  ;;  %v4489_v36 = vld [vmem:[#allocation55_spill] sm:$0xff] }
 0x399   :  { %v1836_v50 = vadd.f32 %v1829_v6, %v1805_v31  ;;  %v1366_v53 = vsel %vm766_vm11, %v4489_v36, %v4464_v10  ;;  %v1528_v10 = vmul.f32 %v3673_v30, %v4453_v29 }
 0x39a   :  { %v1373_v38 = vadd.f32 %v1366_v53, %v1342_v57  ;;  %v4493_v53 = vld [vmem:[#allocation65_spill] sm:$0xff] }
 0x39b   :  { %v4029_v59 = vpop.permute.xlu0 %1702  ;;  %v4031_v3 = vpop.permute.xlu1 %1856  ;;  %v1559_v23 = vadd.f32 %v1552_v56, %v1528_v10  ;;  %v1614_v54 = vsel %vm791_vm12, %v4481_v48, %v4493_v53  ;;  %v1376_v48 = vadd.f32 %v4465_v8, %v1345_v44  ;;  %v1615_v29 = vsel %vm791_vm12, %v4493_v53, %v4460_v58  ;;  %v4494_v58 = vld [vmem:[#allocation51_spill] sm:$0xff] }
 0x39c   :  { %v1676_v56 = vsel %vm841_vm14, %v3910_v42, %v4017_v9 }
 0x39d   :  { %v1590_v57 = vadd.f32 %v1583_v24, %v1559_v23  ;;  %v1407_v10 = vadd.f32 %v4494_v58, %v1376_v48  ;;  %v4496_v23 = vld [vmem:[#allocation70_spill] sm:$0xff] }
 0x39f   :  { %v1853_v41 = vpop.permute.xlu0 %1852  ;;  %v2007_v37 = vpop.permute.xlu1 %2006 }
 0x3a0   :  { %v1860_v19 = vsel %vm816_vm13, %v1853_v41, %v3962_v39  ;;  %v2014_v31 = vsel %vm766_vm11, %v2007_v37, %v3912_v15  ;;  %v1404_v15 = vadd.f32 %v1397_v28, %v1373_v38  ;;  %v1584_v41 = vsel %vm766_vm11, %v4492_v63, %v4456_v13 }
 0x3a1   :  { %v4058_v6 = vadd.f32 %v1860_v19, %v1836_v50  ;;  %v2021_v46 = vadd.f32 %v2014_v31, %v1990_v2  ;;  %v1553_v50 = vsel %vm741_vm10, %v4490_v14, %v4454_v20  ;;  %v1645_v20 = vsel %vm816_vm13, %v3884_v22, %v3842_v27 }
 0x3a2   :  { %v1435_v2 = vadd.f32 %v1428_v21, %v1404_v15  ;;  %v1560_v37 = vadd.f32 %v1553_v50, %v1529_v5  ;;  %v1621_v14 = vadd.f32 %v1614_v54, %v1590_v57  ;;  %v1646_v31 = vsel %vm816_vm13, %v3842_v27, %v3889_v55  ;;  %v4497_v55 = vld [vmem:[#allocation78_spill] sm:$0xff] }
 0x3a3   :  { %v4068_v35 = vpop.permute.xlu0 %1887  ;;  %v4070_v36 = vpop.permute.xlu1 %2041  ;;  %v1438_v15 = vadd.f32 %v4496_v23, %v1407_v10  ;;  %v1675_v5 = vsel %vm841_vm14, %v4025_v40, %v3910_v42  ;;  %v1861_v10 = vsel %vm816_vm13, %v3962_v39, %v4031_v3 }
 0x3a4   :  { %v1466_v49 = vadd.f32 %v1459_v32, %v1435_v2  ;;  %v1591_v8 = vadd.f32 %v1584_v41, %v1560_v37  ;;  %v1652_v16 = vadd.f32 %v1645_v20, %v1621_v14  ;;  %v1682_v20 = vadd.f32 %v1675_v5, %v4007_v52 }
 0x3a5   :  { %v1469_v53 = vadd.f32 %v4497_v55, %v1438_v15 }
 0x3a6   :  { %v1622_v38 = vadd.f32 %v1615_v29, %v1591_v8  ;;  %v1683_v63 = vadd.f32 %v1676_v56, %v1652_v16  ;;  %v4500_v29 = vld [vmem:[#allocation67_spill] sm:$0xff] }
 0x3a7   :  { %v2038_v11 = vpop.permute.xlu0 %2037  ;;  %v1483_v61 = vpop.permute.xlu1 %1482  ;;  %v1500_v57 = vadd.f32 %v3903_v12, %v1469_v53  ;;  %v1799_v56 = vsel %vm766_vm11, %v4486_v7, %v4500_v29  ;;  %v4502_v7 = vld [vmem:[#allocation58_spill] sm:$0xff] }
 0x3a8   :  { %v2045_v13 = vsel %vm791_vm12, %v2038_v11, %v3999_v47  ;;  %v1490_v22 = vsel %vm866_vm15, %v1483_v61, %v3892_v0  ;;  %v1677_v0 = vsel %vm841_vm14, %v4017_v9, %v4495_v4  ;;  %v1653_v50 = vadd.f32 %v1646_v31, %v1622_v38 }
 0x3a9   :  { %v4101_v28 = vadd.f32 %v2045_v13, %v2021_v46  ;;  %v1497_v19 = vadd.f32 %v1490_v22, %v1466_v49  ;;  %v4499_v49 = vld [vmem:[#allocation62_spill] sm:$0xff]  ;;  %v1744_v11 = vmul.f32 %v3673_v30, %v4466_v43  ;;  %v1745_v61 = vmul.f32 %v3689_v25, %v4466_v43  ;;  %v4501_v13 = vld [vmem:[#allocation76_spill] sm:$0xff] }
 0x3aa   :  { %v1684_v54 = vadd.f32 %v1677_v0, %v1653_v50  ;;  %v1800_v22 = vsel %vm766_vm11, %v4500_v29, %v4501_v13  ;;  %v1862_v43 = vsel %vm816_vm13, %v4031_v3, %v3983_v34 }
 0x3ab   :  { %v4107_v24 = vpop.permute.xlu0 %2072  ;;  %1505 = vrot.lane.b32.xlu1 %v1497_v19, %s2791_s5  ;;  %v1701_v21 = vpop.permute.xlu1 %1700 }
 0x3ac   :  { %v1707_v46 = vsel %vm866_vm15, %v1701_v21, %v4029_v59 }
 0x3ad   :  { %v1714_v27 = vadd.f32 %v1707_v46, %v1683_v63  ;;  %v4503_v63 = vld [vmem:[#allocation73_spill] sm:$0xff] }
 0x3af   :  { %v1699_v32 = vpop.permute.xlu0 %1698  ;;  %1723 = vrot.lane.b32.xlu0 %v1714_v27, %s2792_s6  ;;  %v1705_v44 = vpop.permute.xlu1 %1704 }
 0x3b0   :  { %v1708_v9 = vsel %vm866_vm15, %v4029_v59, %v1705_v44  ;;  %v1706_v41 = vsel %vm866_vm15, %v1699_v32, %v1701_v21  ;;  %v4498_v59 = vld [vmem:[#allocation54_spill] sm:$0xff] }
 0x3b1   :  { %v1715_v2 = vadd.f32 %v1708_v9, %v1684_v54  ;;  %v1713_v37 = vadd.f32 %v1706_v41, %v1682_v20  ;;  %v1768_v12 = vsel %vm741_vm10, %v4484_v26, %v4498_v59  ;;  %v1769_v52 = vsel %vm741_vm10, %v4498_v59, %v4499_v49 }
 0x3b2   :  { %v1775_v8 = vadd.f32 %v1768_v12, %v1744_v11  ;;  %v1776_v26 = vadd.f32 %v1769_v52, %v1745_v61  ;;  %v2046_v12 = vsel %vm791_vm12, %v3999_v47, %v4070_v36  ;;  %v4506_v52 = vld [vmem:[#allocation38_spill] sm:$0xff]  ;;  %v2047_v47 = vsel %vm791_vm12, %v4070_v36, %v4014_v33 }
 0x3b3   :  { %1511 = vrot.lane.b32.xlu0 %v1500_v57, %s2791_s5  ;;  %1725 = vrot.lane.b32.xlu1 %v1715_v2, %s2792_s6  ;;  %v1886_v48 = vpop.permute.xlu1 %1885  ;;  %v1917_v42 = vpop.permute.xlu0 %1916  ;;  %v1960_v57 = vmul.f32 %v3689_v25, %v4482_v60  ;;  %v4505_v2 = vld [vmem:[#allocation53_spill] sm:$0xff] }
 0x3b4   :  { %v1806_v31 = vadd.f32 %v1799_v56, %v1775_v8  ;;  %v1807_v58 = vadd.f32 %v1800_v22, %v1776_v26  ;;  %v1892_v0 = vsel %vm841_vm14, %v1886_v48, %v4068_v35  ;;  %v1716_v41 = vadd.f32 %v1705_v44, %v4505_v2 }
 0x3b6   :  { %v1837_v38 = vadd.f32 %v4502_v7, %v1806_v31  ;;  %v1838_v21 = vadd.f32 %v4503_v63, %v1807_v58 }
 0x3b7   :  { %1721 = vrot.lane.b32.xlu1 %v1713_v37, %s2792_s6  ;;  %v4129_v14 = vpop.permute.xlu1 %1889  ;;  %v4149_v16 = vpop.permute.xlu0 %1920 }
 0x3b8   :  { %v1893_v46 = vsel %vm841_vm14, %v4068_v35, %v4129_v14  ;;  %v1868_v23 = vadd.f32 %v1861_v10, %v1837_v38  ;;  %v1869_v15 = vadd.f32 %v1862_v43, %v1838_v21  ;;  %v4504_v35 = vld [vmem:[#allocation77_spill] sm:$0xff]  ;;  %v1901_v7 = vadd.f32 %v4129_v14, %v3989_v45 }
 0x3b9   :  { %v1984_v9 = vsel %vm741_vm10, %v4488_v17, %v4504_v35  ;;  %v1985_v59 = vsel %vm741_vm10, %v4504_v35, %v4483_v51  ;;  %v1961_v17 = vmul.f32 %v3645_v1, %v4482_v60  ;;  %v4507_v60 = vld [vmem:[#allocation43_spill] sm:$0xff] }
 0x3ba   :  { %v1899_v39 = vadd.f32 %v1892_v0, %v1868_v23  ;;  %v1900_v27 = vadd.f32 %v1893_v46, %v1869_v15  ;;  %v1991_v20 = vadd.f32 %v1984_v9, %v1960_v57  ;;  %v1932_v46 = vadd.f32 %v4149_v16, %v1901_v7  ;;  %v4508_v9 = vld [vmem:[#allocation30_spill] sm:$0xff] }
 0x3bb   :  { %v4131_v40 = vpop.permute.xlu1 %2070  ;;  %v2102_v50 = vpop.permute.xlu0 %2101  ;;  %v1992_v29 = vadd.f32 %v1985_v59, %v1961_v17  ;;  %v4509_v57 = vld [vmem:[#allocation22_spill] sm:$0xff]  ;;  %v4511_v59 = vld [vmem:[#allocation23_spill] sm:$0xff] }
 0x3bc   :  { %v2022_v11 = vadd.f32 %v4506_v52, %v1991_v20  ;;  %v2077_v61 = vsel %vm816_vm13, %v4131_v40, %v4107_v24  ;;  %v743_v2 = vsel %vm741_vm10, %v4509_v57, %v4508_v9  ;;  %v4513_v52 = vld [vmem:[#allocation28_spill] sm:$0xff] }
 0x3bd   :  { %v2023_v22 = vadd.f32 %v4507_v60, %v1992_v29  ;;  %v4518_v60 = vld [vmem:[#allocation33_spill] sm:$0xff] }
 0x3be   :  { %v2053_v56 = vadd.f32 %v2046_v12, %v2022_v11  ;;  %v4512_v12 = vld [vmem:[#allocation31_spill] sm:$0xff]  ;;  %v742_v11 = vsel %vm741_vm10, %v4513_v52, %v4509_v57  ;;  %vm2192_vm10 = vcmask 654848  }
 0x3bf   :  { %v2075_v19 = vpop.permute.xlu1 %2074  ;;  %v2106_v32 = vpop.permute.xlu0 %2105  ;;  %v2054_v58 = vadd.f32 %v2047_v47, %v2023_v22  ;;  %v4516_v47 = vld [vmem:[#allocation29_spill] sm:$0xff] }
 0x3c0   :  { %v2084_v8 = vadd.f32 %v2077_v61, %v2053_v56  ;;  %v2078_v31 = vsel %vm816_vm13, %v4107_v24, %v2075_v19  ;;  %v2086_v24 = vadd.f32 %v2075_v19, %v4023_v62  ;;  %v4515_v61 = vld [vmem:[#allocation32_spill] sm:$0xff] }
 0x3c1   :  { %v2085_v38 = vadd.f32 %v2078_v31, %v2054_v58  ;;  %v4519_v58 = vld [vmem:[#allocation18_spill] sm:$0xff] }
 0x3c3   :  { %v1884_v4 = vpop.permute.xlu1 %1883  ;;  %v2100_v44 = vpop.permute.xlu0 %2099 }
 0x3c4   :  { %v1891_v49 = vsel %vm841_vm14, %v1884_v4, %v1886_v48 }
 0x3c5   :  { %v1898_v51 = vadd.f32 %v1891_v49, %v4058_v6  ;;  %v768_v49 = vsel %vm766_vm11, %v4512_v12, %v4511_v59 }
 0x3c7   :  { %v1919_v55 = vpop.permute.xlu1 %1918  ;;  %v2135_v10 = vpop.permute.xlu0 %2134 }
 0x3c8   :  { %v1923_v34 = vsel %vm866_vm15, %v1917_v42, %v1919_v55  ;;  %v1924_v3 = vsel %vm866_vm15, %v1919_v55, %v4149_v16 }
 0x3c9   :  { %v1930_v53 = vadd.f32 %v1923_v34, %v1899_v39  ;;  %v1931_v54 = vadd.f32 %v1924_v3, %v1900_v27  ;;  %v2107_v39 = vsel %vm841_vm14, %v2100_v44, %v2102_v50  ;;  %v2117_v27 = vadd.f32 %v2106_v32, %v2086_v24  ;;  %v4514_v44 = vld [vmem:[#allocation24_spill] sm:$0xff]  ;;  %v4523_v24 = vld [vmem:[#allocation27_spill] sm:$0xff] }
 0x3ca   :  { %v793_v29 = vsel %vm791_vm12, %v4515_v61, %v4514_v44 }
 0x3cb   :  { %1941 = vrot.lane.b32.xlu1 %v1931_v54, %s2715_s11  ;;  %1939 = vrot.lane.b32.xlu0 %v1930_v53, %s2715_s11  ;;  %v2069_v5 = vpop.permute.xlu1 %2068  ;;  %v2131_v23 = vpop.permute.xlu0 %2130 }
 0x3cc   :  { %v2076_v33 = vsel %vm816_vm13, %v2069_v5, %v4131_v40 }
 0x3cd   :  { %v2083_v21 = vadd.f32 %v2076_v33, %v4101_v28 }
 0x3cf   :  { %1727 = vrot.lane.b32.xlu0 %v1716_v41, %s2792_s6  ;;  %v2104_v37 = vpop.permute.xlu1 %2103  ;;  %v2114_v14 = vadd.f32 %v2107_v39, %v2083_v21  ;;  %v4216_v19 = vpop.permute.xlu0 %1077  ;;  %v4510_v41 = vld [vmem:[#allocation17_spill] sm:$0xff] }
 0x3d0   :  { %v2108_v48 = vsel %vm841_vm14, %v2102_v50, %v2104_v37  ;;  %v2109_v36 = vsel %vm841_vm14, %v2104_v37, %v2106_v32  ;;  %v723_v20 = vmul.f32 %v3673_v30, %v4510_v41  ;;  %v722_v56 = vmul.f32 %v3599_v18, %v4510_v41 }
 0x3d1   :  { %v2115_v43 = vadd.f32 %v2108_v48, %v2084_v8  ;;  %v2116_v4 = vadd.f32 %v2109_v36, %v2085_v38  ;;  %v767_v48 = vsel %vm766_vm11, %v4516_v47, %v4512_v12  ;;  %v792_v18 = vsel %vm791_vm12, %v4519_v58, %v4515_v61  ;;  %v4522_v38 = vld [vmem:[#allocation19_spill] sm:$0xff] }
 0x3d2   :  { %v748_v17 = vadd.f32 %v743_v2, %v723_v20  ;;  %v747_v8 = vadd.f32 %v742_v11, %v722_v56  ;;  %vm2202_vm11 = vcmask 786048   ;;  %vm2199_vm12 = vcmask 719872  }
 0x3d3   :  { %v1915_v13 = vpop.permute.xlu1 %1914 }
 0x3d4   :  { %v1922_v1 = vsel %vm866_vm15, %v1915_v13, %v1917_v42  ;;  %v772_v36 = vadd.f32 %v767_v48, %v747_v8 }
 0x3d5   :  { %v1929_v26 = vadd.f32 %v1922_v1, %v1898_v51  ;;  %v1292_v55 = vpop.permute.xlu0 %1291  ;;  %v773_v51 = vadd.f32 %v768_v49, %v748_v17  ;;  %v4517_v1 = vld [vmem:[#allocation25_spill] sm:$0xff] }
 0x3d6   :  { %v818_v22 = vsel %vm816_vm13, %v4518_v60, %v4517_v1 }
 0x3d7   :  { %1937 = vrot.lane.b32.xlu1 %v1929_v26, %s2715_s11  ;;  %v2133_v6 = vpop.permute.xlu1 %2132  ;;  %v724_v26 = vmul.f32 %v3689_v25, %v4510_v41  ;;  %v798_v31 = vadd.f32 %v793_v29, %v773_v51  ;;  %v4524_v25 = vld [vmem:[#allocation35_spill] sm:$0xff] }
 0x3d8   :  { %v2139_v42 = vsel %vm866_vm15, %v2133_v6, %v2135_v10  ;;  %v2138_v45 = vsel %vm866_vm15, %v2131_v23, %v2133_v6  ;;  %v868_v21 = vsel %vm866_vm15, %v4524_v25, %v4523_v24 }
 0x3d9   :  { %v2146_v63 = vadd.f32 %v2139_v42, %v2115_v43  ;;  %v2145_v62 = vadd.f32 %v2138_v45, %v2114_v14  ;;  %v4218_v50 = vpop.permute.xlu0 %1079  ;;  %v4521_v43 = vld [vmem:[#allocation34_spill] sm:$0xff]  ;;  %v749_v33 = vadd.f32 %v4508_v9, %v724_v26  ;;  %v823_v42 = vadd.f32 %v818_v22, %v798_v31 }
 0x3da   :  { %v1084_v51 = vsel %vm1081_vm0, %v4216_v19, %v4218_v50 }
 0x3db   :  { %2155 = vrot.lane.b32.xlu0 %v2146_v63, %s2793_s7  ;;  %v2137_v0 = vpop.permute.xlu1 %2136  ;;  %v817_v63 = vsel %vm816_vm13, %v4522_v38, %v4518_v60  ;;  %v774_v39 = vadd.f32 %v4511_v59, %v749_v33  ;;  %vm2207_vm13 = vcmask 917248  }
 0x3dc   :  { %v2140_v40 = vsel %vm866_vm15, %v2135_v10, %v2137_v0  ;;  %v2148_v28 = vadd.f32 %v2137_v0, %v2117_v27  ;;  %v4520_v10 = vld [vmem:[#allocation26_spill] sm:$0xff]  ;;  %v4526_v27 = vld [vmem:[#allocation21_spill] sm:$0xff] }
 0x3dd   :  { %v2147_v15 = vadd.f32 %v2140_v40, %v2116_v4  ;;  %v843_v6 = vsel %vm841_vm14, %v4521_v43, %v4520_v10  ;;  %v797_v4 = vadd.f32 %v792_v18, %v772_v36  ;;  %v799_v9 = vadd.f32 %v4514_v44, %v774_v39 }
 0x3de   :  { %v848_v0 = vadd.f32 %v843_v6, %v823_v42 }
 0x3df   :  { %1943 = vrot.lane.b32.xlu0 %v1932_v46, %s2715_s11  ;;  %2157 = vrot.lane.b32.xlu1 %v2147_v15, %s2793_s7  ;;  %v1076_v16 = vpop.permute.xlu1 %1075  ;;  %v4525_v46 = vld [vmem:[#allocation20_spill] sm:$0xff]  ;;  %v822_v45 = vadd.f32 %v817_v63, %v797_v4  ;;  %v824_v49 = vadd.f32 %v4517_v1, %v799_v9 }
 0x3e0   :  { %v842_v23 = vsel %vm841_vm14, %v4525_v46, %v4521_v43  ;;  %v1083_v15 = vsel %vm1081_vm0, %v1076_v16, %v4216_v19  ;;  %v873_v14 = vadd.f32 %v868_v21, %v848_v0  ;;  %v2250_v63 = vld [vmem:[#allocation10] sm:$0xff]  ;;  %vm2212_vm14 = vcmask 1048448  }
 0x3e1   :  { %v847_v57 = vadd.f32 %v842_v23, %v822_v45  ;;  %v849_v61 = vadd.f32 %v4520_v10, %v824_v49 }
 0x3e2   :  { %v1089_v2 = vadd.f32 %v1083_v15, %v873_v14 }
 0x3e3   :  { %2159 = vrot.lane.b32.xlu0 %v2148_v28, %s2793_s7  ;;  %2153 = vrot.lane.b32.xlu1 %v2145_v62, %s2793_s7  ;;  %v1074_v34 = vpop.permute.xlu1 %1073  ;;  %v867_v62 = vsel %vm866_vm15, %v4526_v27, %v4524_v25  ;;  %vm2260_vm15 = vcmask 1043456  }
 0x3e4   :  { %v1082_v12 = vsel %vm1081_vm0, %v1074_v34, %v1076_v16  ;;  %v872_v17 = vadd.f32 %v867_v62, %v847_v57  ;;  %vm2256_vm0 = vcmask 31744  }
 0x3e6   :  { %v1088_v29 = vadd.f32 %v1082_v12, %v872_v17 }
 0x3e7   :  { %v4220_v3 = vpop.permute.xlu1 %1293 }
 0x3e8   :  { %v1299_v28 = vsel %vm1297_vm1, %v1292_v55, %v4220_v3 }
 0x3e9   :  { %v1305_v52 = vadd.f32 %v1299_v28, %v1089_v2 }
 0x3eb   :  { %v1290_v54 = vpop.permute.xlu1 %1289 }
 0x3ec   :  { %v1298_v11 = vsel %vm1297_vm1, %v1290_v54, %v1292_v55  ;;  %v874_v55 = vadd.f32 %v4523_v24, %v849_v61 }
 0x3ed   :  { %v1304_v54 = vadd.f32 %v1298_v11, %v1088_v29 }
 0x3ee   :  { %v1090_v8 = vadd.f32 %v1084_v51, %v874_v55 }
 0x401   :  { %v4222_v53 = vpop.permute.xlu0 %1507  ;;  %v4226_v5 = vpop.permute.xlu1 %1509 }
 0x402   :  { %v1515_v59 = vsel %vm1513_vm2, %v4222_v53, %v4226_v5 }
 0x403   :  { %v1521_v56 = vadd.f32 %v1515_v59, %v1305_v52 }
 0x405   :  { %v4224_v32 = vpop.permute.xlu0 %1295 }
 0x406   :  { %v1300_v60 = vsel %vm1297_vm1, %v4220_v3, %v4224_v32 }
 0x407   :  { %v1306_v18 = vadd.f32 %v1300_v60, %v1090_v8 }
 0x41d   :  { %v1506_v37 = vpop.permute.xlu1 %1505 }
 0x41e   :  { %v1514_v47 = vsel %vm1513_vm2, %v1506_v37, %v4222_v53 }
 0x41f   :  { %v1520_v26 = vadd.f32 %v1514_v47, %v1304_v54 }
 0x421   :  { %v4228_v35 = vpop.permute.xlu0 %1723 }
 0x425   :  { %v1512_v13 = vpop.permute.xlu0 %1511  ;;  %v4246_v30 = vpop.permute.xlu1 %1725 }
 0x426   :  { %v1731_v44 = vsel %vm1729_vm3, %v4228_v35, %v4246_v30  ;;  %v1516_v53 = vsel %vm1513_vm2, %v4226_v5, %v1512_v13 }
 0x427   :  { %v1737_v1 = vadd.f32 %v1731_v44, %v1521_v56  ;;  %v1522_v32 = vadd.f32 %v1516_v53, %v1306_v18 }
 0x429   :  { %v1722_v40 = vpop.permute.xlu1 %1721 }
 0x42a   :  { %v1730_v22 = vsel %vm1729_vm3, %v1722_v40, %v4228_v35 }
 0x42b   :  { %v1736_v10 = vadd.f32 %v1730_v22, %v1520_v26 }
 0x43d   :  { %v1940_v7 = vpop.permute.xlu0 %1939  ;;  %v1942_v41 = vpop.permute.xlu1 %1941 }
 0x43e   :  { %v1947_v48 = vsel %vm1945_vm4, %v1940_v7, %v1942_v41 }
 0x43f   :  { %v1953_v19 = vadd.f32 %v1947_v48, %v1737_v1 }
 0x441   :  { %v1728_v20 = vpop.permute.xlu0 %1727 }
 0x442   :  { %v1732_v3 = vsel %vm1729_vm3, %v4246_v30, %v1728_v20  ;;  %v2249_v20 = vld [vmem:[#allocation9] sm:$0xff] }
 0x443   :  { %v1738_v36 = vadd.f32 %v1732_v3, %v1522_v32 }
 0x449   :  { %v1938_v16 = vpop.permute.xlu1 %1937 }
 0x44a   :  { %v1946_v37 = vsel %vm1945_vm4, %v1938_v16, %v1940_v7 }
 0x44b   :  { %v1952_v35 = vadd.f32 %v1946_v37, %v1736_v10 }
 0x44d   :  { %v2156_v34 = vpop.permute.xlu0 %2155 }
 0x451   :  { %v1944_v50 = vpop.permute.xlu0 %1943  ;;  %v2158_v31 = vpop.permute.xlu1 %2157 }
 0x452   :  { %v2163_v58 = vsel %vm2161_vm5, %v2156_v34, %v2158_v31  ;;  %v1948_v5 = vsel %vm1945_vm4, %v1942_v41, %v1944_v50 }
 0x453   :  { %v2169_v43 = vadd.f32 %v2163_v58, %v1953_v19  ;;  %v1954_v38 = vadd.f32 %v1948_v5, %v1738_v36 }
 0x455   :  { %v2160_v6 = vpop.permute.xlu0 %2159  ;;  %2218 = vrot.lane.b32.xlu0 %v2169_v43, %s2791_s5  ;;  %2214 = vrot.lane.b32.xlu1 %v2169_v43, %s2794_s8  ;;  %v2154_v33 = vpop.permute.xlu1 %2153 }
 0x456   :  { %v2162_v13 = vsel %vm2161_vm5, %v2154_v33, %v2156_v34  ;;  %v2164_v7 = vsel %vm2161_vm5, %v2158_v31, %v2160_v6 }
 0x457   :  { %v2168_v42 = vadd.f32 %v2162_v13, %v1952_v35  ;;  %v2170_v30 = vadd.f32 %v2164_v7, %v1954_v38 }
 0x459   :  { %2222 = vrot.lane.b32.xlu0 %v2169_v43, %s2795_s2  ;;  %2174 = vrot.lane.b32.xlu1 %v2168_v42, %s2796_s9  ;;  %2172 = vst.msk [vmem:[#allocation3] sm:$0xff] %vm2171_vm6, %v2168_v42 }
 0x45d   :  { %2227 = vrot.lane.b32.xlu0 %v2170_v30, %s2797_s3  ;;  %2179 = vrot.lane.b32.xlu1 %v2168_v42, %s2793_s7 }
 0x461   :  { %2231 = vrot.lane.b32.xlu0 %v2170_v30, %s2792_s6  ;;  %2184 = vrot.lane.b32.xlu1 %v2168_v42, %s2789_s29 }
 0x465   :  { %2195 = vrot.lane.b32.xlu0 %v2168_v42, %s2798_s10  ;;  %2189 = vrot.lane.b32.xlu1 %v2168_v42, %s2799_s1 }
 0x469   :  { %2235 = vrot.lane.b32.xlu0 %v2170_v30, %s2800_s12  ;;  %2197 = vrot.lane.b32.xlu1 %v2169_v43, %s2798_s10 }
 0x46d   :  { %2204 = vrot.lane.b32.xlu0 %v2169_v43, %s2790_s30  ;;  %2239 = vrot.lane.b32.xlu1 %v2170_v30, %s2801_s13 }
 0x471   :  { %2209 = vrot.lane.b32.xlu0 %v2169_v43, %s2802_s14  ;;  %2243 = vrot.lane.b32.xlu1 %v2170_v30, %s2715_s11  ;;  %s2803_s11 = smov [#allocation12]  }
 0x472   :  { %s2425_s15 = sshll.u32 %s2803_s11, 4  ;;  %s2426_s15 = int_to_ptr.vmem [resolvable:$true] %s2425_s15 }
 0x473   :  { %s2682_s16 = scalar_lea.vmem %s2426_s15, 512  ;;  %p2687_p5 = scmp.lt.s32.totalorder %s2426_s15, %s2426_s15 }
 0x474   :  { %p2683_p4 = scmp.ne.s32.totalorder %s2426_s15, %s2682_s16  ;;  %p2688_p6 = scmp.lt.s32.totalorder %s2682_s16, %s2682_s16 }
 0x475   :  { %2253 = vperm.xlu1 %2587, %v2250_v63  }
 0x476   :  { %p2689_p7 = por %p2688_p6, %p2687_p5 }
 0x478   :  { %p2690_p8 = pnand %p2689_p7, %p2683_p4 }
 0x4c7   :  { %v2219_v24 = vpop.permute.xlu0 %2218  ;;  %v2215_v25 = vpop.permute.xlu1 %2214 }
 0x4c8   :  { %2217 = vst.msk [vmem:[#allocation3 + $0x8] sm:$0xff] %vm2171_vm6, %v2215_v25 }
 0x4c9   :  { %2221 = vst.msk [vmem:[#allocation3 + $0x8] sm:$0xff] %vm2177_vm7, %v2219_v24 }
 0x4cb   :  { %v2223_v21 = vpop.permute.xlu0 %2222  ;;  %v2175_v4 = vpop.permute.xlu1 %2174 }
 0x4cc   :  { %2225 = vst.msk [vmem:[#allocation3 + $0x8] sm:$0xff] %vm2182_vm8, %v2223_v21 }
 0x4cd   :  { %2178 = vst.msk [vmem:[#allocation3] sm:$0xff] %vm2177_vm7, %v2175_v4 }
 0x4cf   :  { %v2228_v0 = vpop.permute.xlu0 %2227  ;;  %v2180_v40 = vpop.permute.xlu1 %2179 }
 0x4d0   :  { %2230 = vst.msk [vmem:[#allocation3 + $0x8] sm:$0xff] %vm2187_vm9, %v2228_v0 }
 0x4d1   :  { %2183 = vst.msk [vmem:[#allocation3] sm:$0xff] %vm2182_vm8, %v2180_v40 }
 0x4d3   :  { %v2232_v46 = vpop.permute.xlu0 %2231  ;;  %v2185_v23 = vpop.permute.xlu1 %2184 }
 0x4d4   :  { %2234 = vst.msk [vmem:[#allocation3 + $0x8] sm:$0xff] %vm2192_vm10, %v2232_v46 }
 0x4d5   :  { %2188 = vst.msk [vmem:[#allocation3] sm:$0xff] %vm2187_vm9, %v2185_v23 }
 0x4d7   :  { %v2196_v15 = vpop.permute.xlu0 %2195  ;;  %v2190_v39 = vpop.permute.xlu1 %2189 }
 0x4d8   :  { %2193 = vst.msk [vmem:[#allocation3] sm:$0xff] %vm2192_vm10, %v2190_v39 }
 0x4db   :  { %v2236_v45 = vpop.permute.xlu0 %2235  ;;  %v2198_v14 = vpop.permute.xlu1 %2197 }
 0x4dc   :  { %2238 = vst.msk [vmem:[#allocation3 + $0x8] sm:$0xff] %vm2202_vm11, %v2236_v45  ;;  %v2200_v27 = vsel %vm2199_vm12, %v2196_v15, %v2198_v14 }
 0x4dd   :  { %2203 = vst.msk [vmem:[#allocation3] sm:$0xff] %vm2202_vm11, %v2200_v27 }
 0x4df   :  { %v2205_v62 = vpop.permute.xlu0 %2204  ;;  %v2240_v28 = vpop.permute.xlu1 %2239 }
 0x4e0   :  { %2208 = vst.msk [vmem:[#allocation3] sm:$0xff] %vm2207_vm13, %v2205_v62  ;;  %2242 = vst.msk [vmem:[#allocation3 + $0x8] sm:$0xff] %vm2207_vm13, %v2240_v28 }
 0x4e3   :  { %v2210_v9 = vpop.permute.xlu0 %2209  ;;  %v2244_v57 = vpop.permute.xlu1 %2243 }
 0x4e4   :  { %2213 = vst.msk [vmem:[#allocation3] sm:$0xff] %vm2212_vm14, %v2210_v9  ;;  %2246 = vst.msk [vmem:[#allocation3 + $0x8] sm:$0xff] %vm2212_vm14, %v2244_v57 }
 0x4eb   :  { %v2248_v2 = vld [vmem:[#allocation3 + $0x8] sm:$0xff]  ;;  %v2247_v41 = vld [vmem:[#allocation3] sm:$0xff] }
 0x4ec   :  { %2439 = vmatprep.subr.msk.mxu0 %vm2260_vm15, %v2248_v2  ;;  %v2340_v12 = vrot.slane %v2247_v41, 4  ;;  %v2341_v59 = vrot.slane %v2248_v2, 4 }
 0x4ed   :  { %2440 = vmatpush1.msk.msra.mxu0 %vm2260_vm15, %v2247_v41 }
 0x4ee   :  { %2442 = vmatprep.subr.msk.mxu1 %vm2260_vm15, %v2341_v59  ;;  %2441 = vmatmul.mubr.msk.f32.vlgmr.msra.gmra.mrb[0].mxu0 %vm2256_vm0, %v2249_v20 }
 0x4ef   :  { %2443 = vmatpush1.msk.msra.mxu1 %vm2260_vm15, %v2340_v12 }
 0x4f0   :  { %2444 = vmatmul.mubr.msk.f32.vlgmr.msra.gmra.mrb[0].mxu1 %vm2256_vm0, %v2249_v20 }
 0x4f4   :  { %v2254_v49 = vpop.permute.xlu1 %2253 }
 0x5c1   :  { %v2333_v17 = vpop.f32.mrb[0].mxu0 }
 0x5c2   :  { %v2334_v52 = vadd.f32 %v2333_v17, %v2254_v49  ;;  %v2335_v11 = vpop.f32.mrb[1].mxu0 }
 0x5c3   :  { %v2336_v44 = vadd.f32 %v2335_v11, %v2254_v49  ;;  %v2412_v61 = vpop.f32.mrb[0].mxu1 }
 0x5c4   :  { %2338 = vst [vmem:[#allocation12] sm:$0xff] %v2334_v52  ;;  %v2413_v29 = vadd.f32 %v2412_v61, %v2254_v49  ;;  %v2414_v56 = vpop.f32.mrb[1].mxu1 }
 0x5c5   :  { %2339 = vst [vmem:[#allocation12 + $0x8] sm:$0xff] %v2336_v44  ;;  %v2415_v16 = vadd.f32 %v2414_v56, %v2254_v49 }
 0x5c6   :  { %2418 = vst [vmem:[#allocation12 + $0x10] sm:$0xff] %v2413_v29 }
 0x5c7   :  { %2419 = vst [vmem:[#allocation12 + $0x18] sm:$0xff] %v2415_v16 }
 0x5c8   :  { %2693 = shalt.err (!%p2690_p8)
}
 0x5c9   :  { %s2694_s20 = scalar_lea.hbm %s4338_s4, 512 }
 0x5ca   :  { %p2695_p9 = scmp.ne.s32.totalorder %s4338_s4, %s2694_s20  ;;  %p2698_p10 = scmp.lt.u32.totalorder %s2694_s20, %s4338_s4 }
 0x5cc   :  { %p2700_p11 = pnand %p2698_p10, %p2695_p9 }
 0x5ce   :  { %2703 = shalt.err (!%p2700_p11)
}
 0x5cf   :  { %s2804_s25 = smov 256  }
 0x5d0   :  { %2431 = dma.vmem_to_hbm [thread:$0]  %s2426_s15, 512, %s4338_s4, [#allocation6], %s2804_s25, %s2804_s25, %s2801_s13  }
 0x5d1   :  { %2710 = dma.done.wait [#allocation6], 512  }
 0x5d2   :  { %2711 = vsyncadd [#allocation6], 4294966784 }
 0x5d3   :  { %2435 = vsyncpa [#allocation5], 1 }
 0x5d4   :  { %2436 = vsyncpa [#allocation8], 1 }
 0x5d5   :  { %2437 = vsyncpa [#allocation11], 1 }
 0x5d6   :  { %2438 = vsyncpa [#allocation6], 1 }

</bundles_post_ra>
